<compile_context>
chip_gen: v6e
topology: v6e:2x2x1
jax: 0.10.0
libtpu: 0.0.40
codegen_flags: <defaults>
</compile_context>

<pallas_src>
import functools
import math

import jax
import jax.numpy as jnp
import numpy as np
from jax.experimental import pallas as pl
from jax.experimental.pallas import tpu as pltpu


def _fft_block_kernel(
    xq_ref, kv_ref, mask_ref,
    wq_ref, bq_ref, wo_ref, bo_ref,
    g1_ref, be1_ref,
    w1_ref, b1_ref, w2_ref, b2_ref,
    g2_ref, be2_ref,
    o_ref,
    *, heads: int, eps: float, tk: int,
):
    D = xq_ref.shape[-1]
    L = kv_ref.shape[1]
    dh = D // heads
    n_kc = L // tk

    # ---- Residual / query-tile input (f32 for the LayerNorm path).
    x = xq_ref[0]                                                    # (tq, D) f32
    tq = x.shape[0]

    # ---- Q projection for this tile (1/sqrt(dh) pre-folded into wq/bq).
    q = jnp.dot(x.astype(jnp.bfloat16), wq_ref[...],
                preferred_element_type=jnp.float32) + bq_ref[...]
    q = q.astype(jnp.bfloat16)                                       # (tq, D)

    # Additive key-padding bias, computed once per tile (hoisted out of the
    # head/key loops; add instead of compare+select).
    neg_bias = (1.0 - mask_ref[0]) * (-1e9)                          # (1, L) f32

    # ---- Per-head attention with key-tiled online softmax; all state in regs.
    ctx_heads = []
    for h in range(heads):                                           # small static loop
        lo = h * dh
        qh = q[:, lo:lo + dh]                                        # (tq, dh) bf16
        m = jnp.full((tq, 1), -jnp.inf, jnp.float32)
        l = jnp.zeros((tq, 1), jnp.float32)
        acc = jnp.zeros((tq, dh), jnp.float32)
        for c in range(n_kc):                                        # static key-chunk loop
            r0 = c * tk
            kh = kv_ref[0, r0:r0 + tk, lo:lo + dh]                   # (tk, dh) bf16
            vh = kv_ref[0, r0:r0 + tk, D + lo:D + lo + dh]           # (tk, dh) bf16
            s = jax.lax.dot_general(                                 # (tq, tk) f32
                qh, kh, (((1,), (1,)), ((), ())),
                preferred_element_type=jnp.float32)
            s = s + neg_bias[:, r0:r0 + tk]
            m_new = jnp.maximum(m, jnp.max(s, axis=-1, keepdims=True))
            alpha = jnp.exp(m - m_new)
            p = jnp.exp(s - m_new)
            l = alpha * l + jnp.sum(p, axis=-1, keepdims=True)
            acc = alpha * acc + jnp.dot(p.astype(jnp.bfloat16), vh,
                                        preferred_element_type=jnp.float32)
            m = m_new
        ctx_heads.append(
            (acc * pl.reciprocal(l, approx=True)).astype(jnp.bfloat16))

    # ---- Single fused output projection (K = D, full-depth MXU matmul).
    ctx_all = jnp.concatenate(ctx_heads, axis=-1)                    # (tq, D) bf16
    attn = jnp.dot(ctx_all, wo_ref[...],
                   preferred_element_type=jnp.float32) + bo_ref[...]

    # ---- Residual connection 1: LayerNorm(attn + x), f32.
    y1 = attn + x
    mu1 = jnp.mean(y1, axis=-1, keepdims=True)
    var1 = jnp.mean(jnp.square(y1 - mu1), axis=-1, keepdims=True)
    sub1 = (y1 - mu1) * jax.lax.rsqrt(var1 + eps) * g1_ref[...] + be1_ref[...]

    # ---- Position-wise FFN (conv1d k=1 == per-position linear), ReLU.
    h1 = jnp.dot(sub1.astype(jnp.bfloat16), w1_ref[...],
                 preferred_element_type=jnp.float32) + b1_ref[...]
    h1 = jnp.maximum(h1, 0.0)
    ffn = jnp.dot(h1.astype(jnp.bfloat16), w2_ref[...],
                  preferred_element_type=jnp.float32) + b2_ref[...]

    # ---- Residual connection 2: LayerNorm(ffn + sub1), f32.
    y2 = ffn + sub1
    mu2 = jnp.mean(y2, axis=-1, keepdims=True)
    var2 = jnp.mean(jnp.square(y2 - mu2), axis=-1, keepdims=True)
    out = (y2 - mu2) * jax.lax.rsqrt(var2 + eps) * g2_ref[...] + be2_ref[...]

    o_ref[0] = out.astype(o_ref.dtype)


def fft_block(x, mask, params, *, heads: int, eps: float,
              tq: int | None = None, tk: int | None = None):
    """x: (B, L, D) f32; mask: (B, L) (1=valid key); returns (B, L, D) f32."""
    B, L, D = x.shape
    H = params["w1"].shape[1]
    assert D % heads == 0
    dh = D // heads
    # Lane-aligned head slices (see TODO above for other head dims).
    assert dh % 128 == 0, "head dim must be a multiple of 128 for this kernel"

    if tq is None:
        tq = min(128, L)
    if tk is None:
        tk = min(512, L)
    assert L % tq == 0 and tq % 8 == 0
    assert L % tk == 0 and tk % 128 == 0
    n_qt = L // tq

    # Fold 1/sqrt(dh) into the q projection; cast all matmul weights to bf16
    # (f32 accumulation inside the kernel).
    scale = 1.0 / math.sqrt(dh)
    wq = (params["wq"] * scale).astype(jnp.bfloat16)
    bq = (params["bq"] * scale).astype(jnp.float32)
    wo = params["wo"].astype(jnp.bfloat16)
    w1 = params["w1"].astype(jnp.bfloat16)
    w2 = params["w2"].astype(jnp.bfloat16)

    # Fused K/V projection, computed once per sequence as a plain XLA matmul
    # and streamed into the kernel as bf16. This halves the full-L block's
    # DMA/VMEM footprint vs. the f32 x source and removes the sequential
    # kv-cache dependency, so both grid axes can be "parallel".
    x = x.astype(jnp.float32)
    wkv = jnp.concatenate([params["wk"], params["wv"]], axis=1)
    bkv = jnp.concatenate([params["bk"], params["bv"]], axis=1)
    kv = (x @ wkv + bkv).astype(jnp.bfloat16)                         # (B, L, 2D)

    mask3 = mask.reshape(B, 1, L).astype(jnp.float32)

    full = lambda shape: pl.BlockSpec(shape, lambda b, qi: (0, 0))

    in_specs = [
        pl.BlockSpec((1, tq, D), lambda b, qi: (b, qi, 0)),   # x query/residual tile (f32)
        pl.BlockSpec((1, L, 2 * D), lambda b, qi: (b, 0, 0)),  # precomputed K | V (bf16)
        pl.BlockSpec((1, 1, L), lambda b, qi: (b, 0, 0)),     # key mask
        full((D, D)), full((1, D)),                           # wq (scaled), bq (scaled)
        full((D, D)), full((1, D)),                           # wo, bo
        full((1, D)), full((1, D)),                           # gamma1, beta1
        full((D, H)), full((1, H)),                           # w1, b1
        full((H, D)), full((1, D)),                           # w2, b2
        full((1, D)), full((1, D)),                           # gamma2, beta2
    ]

    kernel = functools.partial(_fft_block_kernel, heads=heads, eps=eps, tk=tk)

    return pl.pallas_call(
        kernel,
        out_shape=jax.ShapeDtypeStruct((B, L, D), jnp.float32),
        grid_spec=pltpu.PrefetchScalarGridSpec(
            num_scalar_prefetch=0,
            grid=(B, n_qt),
            in_specs=in_specs,
            out_specs=pl.BlockSpec((1, tq, D), lambda b, qi: (b, qi, 0)),
        ),
        compiler_params=pltpu.CompilerParams(
            dimension_semantics=("parallel", "parallel"),
            vmem_limit_bytes=32 * 1024 * 1024,
        ),
    )(
        x, kv, mask3,
        wq, bq, wo, params["bo"].astype(jnp.float32),
        params["gamma1"], params["beta1"],
        w1, params["b1"].astype(jnp.float32), w2, params["b2"].astype(jnp.float32),
        params["gamma2"], params["beta2"],
    )


def _reference(x, mask, params, *, heads: int, eps: float):
    """Pure-JAX f32 reference mirroring the PyTorch forward."""
    B, L, D = x.shape
    dh = D // heads

    def ln(y, g, b):
        mu = jnp.mean(y, axis=-1, keepdims=True)
        var = jnp.mean((y - mu) ** 2, axis=-1, keepdims=True)
        return (y - mu) / jnp.sqrt(var + eps) * g + b

    q = x @ params["wq"] + params["bq"]
    k = x @ params["wk"] + params["bk"]
    v = x @ params["wv"] + params["bv"]
    q = q.reshape(B, L, heads, dh).transpose(0, 2, 1, 3)
    k = k.reshape(B, L, heads, dh).transpose(0, 2, 1, 3)
    v = v.reshape(B, L, heads, dh).transpose(0, 2, 1, 3)
    s = jnp.einsum("bhqd,bhkd->bhqk", q, k) / jnp.sqrt(dh)
    s = jnp.where(mask[:, None, None, :] > 0.0, s, -1e9)
    p = jax.nn.softmax(s, axis=-1)
    attn = jnp.einsum("bhqk,bhkd->bhqd", p, v).transpose(0, 2, 1, 3).reshape(B, L, D)
    attn = attn @ params["wo"] + params["bo"]

    sub1 = ln(attn + x, params["gamma1"], params["beta1"])
    h1 = jax.nn.relu(sub1 @ params["w1"] + params["b1"])
    ffn = h1 @ params["w2"] + params["b2"]
    return ln(ffn + sub1, params["gamma2"], params["beta2"])


if __name__ == "__main__":
    # Small, lane-friendly shapes: D and dh multiples of 128, L tiled by tq/tk.
    B, L, D, HEADS, HIDDEN = 2, 128, 256, 2, 512
    EPS = 1e-5
    TQ = 128   # raised per review: single query tile at this L

    key = jax.random.PRNGKey(0)
    ks = jax.random.split(key, 12)

    def init_w(k, shape, scale=0.05):
        return (scale * jax.random.normal(k, shape)).astype(jnp.float32)

    params = {
        "wq": init_w(ks[0], (D, D)), "bq": init_w(ks[1], (1, D)),
        "wk": init_w(ks[2], (D, D)), "bk": init_w(ks[3], (1, D)),
        "wv": init_w(ks[4], (D, D)), "bv": init_w(ks[5], (1, D)),
        "wo": init_w(ks[6], (D, D)), "bo": init_w(ks[7], (1, D)),
        "w1": init_w(ks[8], (D, HIDDEN)), "b1": init_w(ks[9], (1, HIDDEN)),
        "w2": init_w(ks[10], (HIDDEN, D)), "b2": init_w(ks[11], (1, D)),
        "gamma1": jnp.ones((1, D), jnp.float32), "beta1": jnp.zeros((1, D), jnp.float32),
        "gamma2": jnp.ones((1, D), jnp.float32), "beta2": jnp.zeros((1, D), jnp.float32),
    }

    xk, _ = jax.random.split(key)
    x = jax.random.normal(xk, (B, L, D), dtype=jnp.float32)
    mask = jnp.ones((B, L), jnp.float32).at[1, L - 32:].set(0.0)  # pad last 32 keys of batch 1

    out = jax.block_until_ready(fft_block(x, mask, params, heads=HEADS, eps=EPS, tq=TQ))
    ref = _reference(x, mask, params, heads=HEADS, eps=EPS)

    # bf16 MXU inputs + approx reciprocal => relaxed tolerance vs f32 reference.
    np.testing.assert_allclose(np.asarray(out), np.asarray(ref), rtol=3e-2, atol=3e-2)
    print("KERNEL_OK")
</pallas_src>

<mosaic_0001>
module attributes {stable_mosaic.version = 11 : i64} {
  func.func @_fft_block_kernel(%arg0: i32, %arg1: i32, %arg2: memref<1x128x256xf32, #tpu.memory_space<vmem>>, %arg3: memref<1x128x512xbf16, #tpu.memory_space<vmem>>, %arg4: memref<1x1x128xf32, #tpu.memory_space<vmem>>, %arg5: memref<256x256xbf16, #tpu.memory_space<vmem>>, %arg6: memref<1x256xf32, #tpu.memory_space<vmem>>, %arg7: memref<256x256xbf16, #tpu.memory_space<vmem>>, %arg8: memref<1x256xf32, #tpu.memory_space<vmem>>, %arg9: memref<1x256xf32, #tpu.memory_space<vmem>>, %arg10: memref<1x256xf32, #tpu.memory_space<vmem>>, %arg11: memref<256x512xbf16, #tpu.memory_space<vmem>>, %arg12: memref<1x512xf32, #tpu.memory_space<vmem>>, %arg13: memref<512x256xbf16, #tpu.memory_space<vmem>>, %arg14: memref<1x256xf32, #tpu.memory_space<vmem>>, %arg15: memref<1x256xf32, #tpu.memory_space<vmem>>, %arg16: memref<1x256xf32, #tpu.memory_space<vmem>>, %arg17: memref<1x128x256xf32, #tpu.memory_space<vmem>>) attributes {dimension_semantics = [#tpu.dimension_semantics<parallel>, #tpu.dimension_semantics<parallel>], iteration_bounds = array<i64: 2, 1>, scalar_prefetch = 0 : i64, scratch_operands = 0 : i64, tpu.core_type = #tpu.core_type<tc>, window_params = [{transform_indices = @transform_0, window_bounds = array<i64: 1, 128, 256>}, {transform_indices = @transform_1, window_bounds = array<i64: 1, 128, 512>}, {transform_indices = @transform_2, window_bounds = array<i64: 1, 1, 128>}, {pipeline_mode = #tpu.pipeline_mode<synchronous>, transform_indices = @transform_3, window_bounds = array<i64: 256, 256>}, {pipeline_mode = #tpu.pipeline_mode<synchronous>, transform_indices = @transform_4, window_bounds = array<i64: 1, 256>}, {pipeline_mode = #tpu.pipeline_mode<synchronous>, transform_indices = @transform_5, window_bounds = array<i64: 256, 256>}, {pipeline_mode = #tpu.pipeline_mode<synchronous>, transform_indices = @transform_6, window_bounds = array<i64: 1, 256>}, {pipeline_mode = #tpu.pipeline_mode<synchronous>, transform_indices = @transform_7, window_bounds = array<i64: 1, 256>}, {pipeline_mode = #tpu.pipeline_mode<synchronous>, transform_indices = @transform_8, window_bounds = array<i64: 1, 256>}, {pipeline_mode = #tpu.pipeline_mode<synchronous>, transform_indices = @transform_9, window_bounds = array<i64: 256, 512>}, {pipeline_mode = #tpu.pipeline_mode<synchronous>, transform_indices = @transform_10, window_bounds = array<i64: 1, 512>}, {pipeline_mode = #tpu.pipeline_mode<synchronous>, transform_indices = @transform_11, window_bounds = array<i64: 512, 256>}, {pipeline_mode = #tpu.pipeline_mode<synchronous>, transform_indices = @transform_12, window_bounds = array<i64: 1, 256>}, {pipeline_mode = #tpu.pipeline_mode<synchronous>, transform_indices = @transform_13, window_bounds = array<i64: 1, 256>}, {pipeline_mode = #tpu.pipeline_mode<synchronous>, transform_indices = @transform_14, window_bounds = array<i64: 1, 256>}, {transform_indices = @transform_15, window_bounds = array<i64: 1, 128, 256>}]} {
    %c0 = arith.constant 0 : index
    %c0_0 = arith.constant 0 : index
    %c0_1 = arith.constant 0 : index
    %0 = vector.load %arg2[%c0, %c0_0, %c0_1] : memref<1x128x256xf32, #tpu.memory_space<vmem>>, vector<1x128x256xf32>
    %1 = vector.shape_cast %0 : vector<1x128x256xf32> to vector<128x256xf32>
    %2 = arith.truncf %1 : vector<128x256xf32> to vector<128x256xbf16>
    %c0_2 = arith.constant 0 : index
    %c0_3 = arith.constant 0 : index
    %3 = vector.load %arg5[%c0_2, %c0_3] : memref<256x256xbf16, #tpu.memory_space<vmem>>, vector<256x256xbf16>
    %cst = arith.constant dense<0.000000e+00> : vector<128x256xf32>
    %4 = tpu.matmul %2, %3, %cst {dimension_numbers = #tpu.dot_dimension_numbers<[1], [0], [0], [1], [0, 0, 1, 1], [], []>} : vector<128x256xbf16>, vector<256x256xbf16>, vector<128x256xf32> -> vector<128x256xf32>
    %c0_4 = arith.constant 0 : index
    %c0_5 = arith.constant 0 : index
    %5 = vector.load %arg6[%c0_4, %c0_5] : memref<1x256xf32, #tpu.memory_space<vmem>>, vector<1x256xf32>
    %6 = vector.broadcast %5 : vector<1x256xf32> to vector<128x256xf32>
    %7 = arith.addf %4, %6 : vector<128x256xf32>
    %8 = arith.truncf %7 : vector<128x256xf32> to vector<128x256xbf16>
    %c0_6 = arith.constant 0 : index
    %c0_7 = arith.constant 0 : index
    %c0_8 = arith.constant 0 : index
    %9 = vector.load %arg4[%c0_6, %c0_7, %c0_8] : memref<1x1x128xf32, #tpu.memory_space<vmem>>, vector<1x1x128xf32>
    %10 = vector.shape_cast %9 : vector<1x1x128xf32> to vector<1x128xf32>
    %cst_9 = arith.constant 1.000000e+00 : f32
    %11 = vector.broadcast %cst_9 : f32 to vector<1x128xf32>
    %12 = arith.subf %11, %10 : vector<1x128xf32>
    %cst_10 = arith.constant -1.000000e+09 : f32
    %13 = vector.broadcast %cst_10 : f32 to vector<1x128xf32>
    %14 = arith.mulf %12, %13 : vector<1x128xf32>
    %15 = vector.extract_strided_slice %8 {offsets = [0, 0], sizes = [128, 128], strides = [1, 1]} : vector<128x256xbf16> to vector<128x128xbf16>
    %cst_11 = arith.constant 0xFF800000 : f32
    %16 = vector.broadcast %cst_11 : f32 to vector<128x1xf32>
    %cst_12 = arith.constant 0.000000e+00 : f32
    %17 = vector.broadcast %cst_12 : f32 to vector<128x1xf32>
    %cst_13 = arith.constant 0.000000e+00 : f32
    %18 = vector.broadcast %cst_13 : f32 to vector<128x128xf32>
    %c0_14 = arith.constant 0 : index
    %c0_15 = arith.constant 0 : index
    %c0_16 = arith.constant 0 : index
    %19 = vector.load %arg3[%c0_14, %c0_15, %c0_16] : memref<1x128x512xbf16, #tpu.memory_space<vmem>>, vector<1x128x128xbf16>
    %20 = vector.shape_cast %19 : vector<1x128x128xbf16> to vector<128x128xbf16>
    %c0_17 = arith.constant 0 : index
    %c0_18 = arith.constant 0 : index
    %c256 = arith.constant 256 : index
    %21 = vector.load %arg3[%c0_17, %c0_18, %c256] : memref<1x128x512xbf16, #tpu.memory_space<vmem>>, vector<1x128x128xbf16>
    %22 = vector.shape_cast %21 : vector<1x128x128xbf16> to vector<128x128xbf16>
    %cst_19 = arith.constant dense<0.000000e+00> : vector<128x128xf32>
    %23 = tpu.matmul %15, %20, %cst_19 {dimension_numbers = #tpu.dot_dimension_numbers<[1], [1], [0], [0], [0, 0, 1, 0], [], []>} : vector<128x128xbf16>, vector<128x128xbf16>, vector<128x128xf32> -> vector<128x128xf32>
    %24 = vector.broadcast %14 : vector<1x128xf32> to vector<128x128xf32>
    %25 = arith.addf %23, %24 : vector<128x128xf32>
    %cst_20 = arith.constant dense<0xFF800000> : vector<128xf32>
    %26 = vector.multi_reduction <maximumf>, %25, %cst_20 [1] : vector<128x128xf32> to vector<128xf32>
    %27 = vector.shape_cast %26 : vector<128xf32> to vector<128x1xf32>
    %28 = arith.maximumf %16, %27 : vector<128x1xf32>
    %29 = arith.subf %16, %28 : vector<128x1xf32>
    %30 = math.exp %29 : vector<128x1xf32>
    %31 = vector.broadcast %28 : vector<128x1xf32> to vector<128x128xf32>
    %32 = arith.subf %25, %31 : vector<128x128xf32>
    %33 = math.exp %32 : vector<128x128xf32>
    %34 = arith.mulf %30, %17 : vector<128x1xf32>
    %cst_21 = arith.constant dense<0.000000e+00> : vector<128xf32>
    %35 = vector.multi_reduction <add>, %33, %cst_21 [1] : vector<128x128xf32> to vector<128xf32>
    %36 = vector.shape_cast %35 : vector<128xf32> to vector<128x1xf32>
    %37 = arith.addf %34, %36 : vector<128x1xf32>
    %38 = vector.broadcast %30 : vector<128x1xf32> to vector<128x128xf32>
    %39 = arith.mulf %38, %18 : vector<128x128xf32>
    %40 = arith.truncf %33 : vector<128x128xf32> to vector<128x128xbf16>
    %cst_22 = arith.constant dense<0.000000e+00> : vector<128x128xf32>
    %41 = tpu.matmul %40, %22, %cst_22 {dimension_numbers = #tpu.dot_dimension_numbers<[1], [0], [0], [1], [0, 0, 1, 1], [], []>} : vector<128x128xbf16>, vector<128x128xbf16>, vector<128x128xf32> -> vector<128x128xf32>
    %42 = arith.addf %39, %41 : vector<128x128xf32>
    %43 = tpu.reciprocal %37 {approx = true} : vector<128x1xf32> -> vector<128x1xf32>
    %44 = vector.broadcast %43 : vector<128x1xf32> to vector<128x128xf32>
    %45 = arith.mulf %42, %44 : vector<128x128xf32>
    %46 = arith.truncf %45 : vector<128x128xf32> to vector<128x128xbf16>
    %47 = vector.extract_strided_slice %8 {offsets = [0, 128], sizes = [128, 128], strides = [1, 1]} : vector<128x256xbf16> to vector<128x128xbf16>
    %cst_23 = arith.constant 0xFF800000 : f32
    %48 = vector.broadcast %cst_23 : f32 to vector<128x1xf32>
    %cst_24 = arith.constant 0.000000e+00 : f32
    %49 = vector.broadcast %cst_24 : f32 to vector<128x1xf32>
    %cst_25 = arith.constant 0.000000e+00 : f32
    %50 = vector.broadcast %cst_25 : f32 to vector<128x128xf32>
    %c0_26 = arith.constant 0 : index
    %c0_27 = arith.constant 0 : index
    %c128 = arith.constant 128 : index
    %51 = vector.load %arg3[%c0_26, %c0_27, %c128] : memref<1x128x512xbf16, #tpu.memory_space<vmem>>, vector<1x128x128xbf16>
    %52 = vector.shape_cast %51 : vector<1x128x128xbf16> to vector<128x128xbf16>
    %c0_28 = arith.constant 0 : index
    %c0_29 = arith.constant 0 : index
    %c384 = arith.constant 384 : index
    %53 = vector.load %arg3[%c0_28, %c0_29, %c384] : memref<1x128x512xbf16, #tpu.memory_space<vmem>>, vector<1x128x128xbf16>
    %54 = vector.shape_cast %53 : vector<1x128x128xbf16> to vector<128x128xbf16>
    %cst_30 = arith.constant dense<0.000000e+00> : vector<128x128xf32>
    %55 = tpu.matmul %47, %52, %cst_30 {dimension_numbers = #tpu.dot_dimension_numbers<[1], [1], [0], [0], [0, 0, 1, 0], [], []>} : vector<128x128xbf16>, vector<128x128xbf16>, vector<128x128xf32> -> vector<128x128xf32>
    %56 = vector.broadcast %14 : vector<1x128xf32> to vector<128x128xf32>
    %57 = arith.addf %55, %56 : vector<128x128xf32>
    %cst_31 = arith.constant dense<0xFF800000> : vector<128xf32>
    %58 = vector.multi_reduction <maximumf>, %57, %cst_31 [1] : vector<128x128xf32> to vector<128xf32>
    %59 = vector.shape_cast %58 : vector<128xf32> to vector<128x1xf32>
    %60 = arith.maximumf %48, %59 : vector<128x1xf32>
    %61 = arith.subf %48, %60 : vector<128x1xf32>
    %62 = math.exp %61 : vector<128x1xf32>
    %63 = vector.broadcast %60 : vector<128x1xf32> to vector<128x128xf32>
    %64 = arith.subf %57, %63 : vector<128x128xf32>
    %65 = math.exp %64 : vector<128x128xf32>
    %66 = arith.mulf %62, %49 : vector<128x1xf32>
    %cst_32 = arith.constant dense<0.000000e+00> : vector<128xf32>
    %67 = vector.multi_reduction <add>, %65, %cst_32 [1] : vector<128x128xf32> to vector<128xf32>
    %68 = vector.shape_cast %67 : vector<128xf32> to vector<128x1xf32>
    %69 = arith.addf %66, %68 : vector<128x1xf32>
    %70 = vector.broadcast %62 : vector<128x1xf32> to vector<128x128xf32>
    %71 = arith.mulf %70, %50 : vector<128x128xf32>
    %72 = arith.truncf %65 : vector<128x128xf32> to vector<128x128xbf16>
    %cst_33 = arith.constant dense<0.000000e+00> : vector<128x128xf32>
    %73 = tpu.matmul %72, %54, %cst_33 {dimension_numbers = #tpu.dot_dimension_numbers<[1], [0], [0], [1], [0, 0, 1, 1], [], []>} : vector<128x128xbf16>, vector<128x128xbf16>, vector<128x128xf32> -> vector<128x128xf32>
    %74 = arith.addf %71, %73 : vector<128x128xf32>
    %75 = tpu.reciprocal %69 {approx = true} : vector<128x1xf32> -> vector<128x1xf32>
    %76 = vector.broadcast %75 : vector<128x1xf32> to vector<128x128xf32>
    %77 = arith.mulf %74, %76 : vector<128x128xf32>
    %78 = arith.truncf %77 : vector<128x128xf32> to vector<128x128xbf16>
    %79 = tpu.concatenate %46, %78 in 1 : vector<128x128xbf16>, vector<128x128xbf16> -> vector<128x256xbf16>
    %c0_34 = arith.constant 0 : index
    %c0_35 = arith.constant 0 : index
    %80 = vector.load %arg7[%c0_34, %c0_35] : memref<256x256xbf16, #tpu.memory_space<vmem>>, vector<256x256xbf16>
    %cst_36 = arith.constant dense<0.000000e+00> : vector<128x256xf32>
    %81 = tpu.matmul %79, %80, %cst_36 {dimension_numbers = #tpu.dot_dimension_numbers<[1], [0], [0], [1], [0, 0, 1, 1], [], []>} : vector<128x256xbf16>, vector<256x256xbf16>, vector<128x256xf32> -> vector<128x256xf32>
    %c0_37 = arith.constant 0 : index
    %c0_38 = arith.constant 0 : index
    %82 = vector.load %arg8[%c0_37, %c0_38] : memref<1x256xf32, #tpu.memory_space<vmem>>, vector<1x256xf32>
    %83 = vector.broadcast %82 : vector<1x256xf32> to vector<128x256xf32>
    %84 = arith.addf %81, %83 : vector<128x256xf32>
    %85 = arith.addf %84, %1 : vector<128x256xf32>
    %cst_39 = arith.constant dense<0.000000e+00> : vector<128xf32>
    %86 = vector.multi_reduction <add>, %85, %cst_39 [1] : vector<128x256xf32> to vector<128xf32>
    %87 = vector.shape_cast %86 : vector<128xf32> to vector<128x1xf32>
    %cst_40 = arith.constant 2.560000e+02 : f32
    %88 = vector.broadcast %cst_40 : f32 to vector<128x1xf32>
    %89 = arith.divf %87, %88 : vector<128x1xf32>
    %90 = vector.broadcast %89 : vector<128x1xf32> to vector<128x256xf32>
    %91 = arith.subf %85, %90 : vector<128x256xf32>
    %92 = arith.mulf %91, %91 : vector<128x256xf32>
    %cst_41 = arith.constant dense<0.000000e+00> : vector<128xf32>
    %93 = vector.multi_reduction <add>, %92, %cst_41 [1] : vector<128x256xf32> to vector<128xf32>
    %94 = vector.shape_cast %93 : vector<128xf32> to vector<128x1xf32>
    %cst_42 = arith.constant 2.560000e+02 : f32
    %95 = vector.broadcast %cst_42 : f32 to vector<128x1xf32>
    %96 = arith.divf %94, %95 : vector<128x1xf32>
    %97 = vector.broadcast %89 : vector<128x1xf32> to vector<128x256xf32>
    %98 = arith.subf %85, %97 : vector<128x256xf32>
    %cst_43 = arith.constant 9.99999974E-6 : f32
    %99 = vector.broadcast %cst_43 : f32 to vector<128x1xf32>
    %100 = arith.addf %96, %99 : vector<128x1xf32>
    %101 = math.rsqrt %100 : vector<128x1xf32>
    %102 = vector.broadcast %101 : vector<128x1xf32> to vector<128x256xf32>
    %103 = arith.mulf %98, %102 : vector<128x256xf32>
    %c0_44 = arith.constant 0 : index
    %c0_45 = arith.constant 0 : index
    %104 = vector.load %arg9[%c0_44, %c0_45] : memref<1x256xf32, #tpu.memory_space<vmem>>, vector<1x256xf32>
    %105 = vector.broadcast %104 : vector<1x256xf32> to vector<128x256xf32>
    %106 = arith.mulf %103, %105 : vector<128x256xf32>
    %c0_46 = arith.constant 0 : index
    %c0_47 = arith.constant 0 : index
    %107 = vector.load %arg10[%c0_46, %c0_47] : memref<1x256xf32, #tpu.memory_space<vmem>>, vector<1x256xf32>
    %108 = vector.broadcast %107 : vector<1x256xf32> to vector<128x256xf32>
    %109 = arith.addf %106, %108 : vector<128x256xf32>
    %110 = arith.truncf %109 : vector<128x256xf32> to vector<128x256xbf16>
    %c0_48 = arith.constant 0 : index
    %c0_49 = arith.constant 0 : index
    %111 = vector.load %arg11[%c0_48, %c0_49] : memref<256x512xbf16, #tpu.memory_space<vmem>>, vector<256x512xbf16>
    %cst_50 = arith.constant dense<0.000000e+00> : vector<128x512xf32>
    %112 = tpu.matmul %110, %111, %cst_50 {dimension_numbers = #tpu.dot_dimension_numbers<[1], [0], [0], [1], [0, 0, 1, 1], [], []>} : vector<128x256xbf16>, vector<256x512xbf16>, vector<128x512xf32> -> vector<128x512xf32>
    %c0_51 = arith.constant 0 : index
    %c0_52 = arith.constant 0 : index
    %113 = vector.load %arg12[%c0_51, %c0_52] : memref<1x512xf32, #tpu.memory_space<vmem>>, vector<1x512xf32>
    %114 = vector.broadcast %113 : vector<1x512xf32> to vector<128x512xf32>
    %115 = arith.addf %112, %114 : vector<128x512xf32>
    %cst_53 = arith.constant 0.000000e+00 : f32
    %116 = vector.broadcast %cst_53 : f32 to vector<128x512xf32>
    %117 = arith.maximumf %115, %116 : vector<128x512xf32>
    %118 = arith.truncf %117 : vector<128x512xf32> to vector<128x512xbf16>
    %c0_54 = arith.constant 0 : index
    %c0_55 = arith.constant 0 : index
    %119 = vector.load %arg13[%c0_54, %c0_55] : memref<512x256xbf16, #tpu.memory_space<vmem>>, vector<512x256xbf16>
    %cst_56 = arith.constant dense<0.000000e+00> : vector<128x256xf32>
    %120 = tpu.matmul %118, %119, %cst_56 {dimension_numbers = #tpu.dot_dimension_numbers<[1], [0], [0], [1], [0, 0, 1, 1], [], []>} : vector<128x512xbf16>, vector<512x256xbf16>, vector<128x256xf32> -> vector<128x256xf32>
    %c0_57 = arith.constant 0 : index
    %c0_58 = arith.constant 0 : index
    %121 = vector.load %arg14[%c0_57, %c0_58] : memref<1x256xf32, #tpu.memory_space<vmem>>, vector<1x256xf32>
    %122 = vector.broadcast %121 : vector<1x256xf32> to vector<128x256xf32>
    %123 = arith.addf %120, %122 : vector<128x256xf32>
    %124 = arith.addf %123, %109 : vector<128x256xf32>
    %cst_59 = arith.constant dense<0.000000e+00> : vector<128xf32>
    %125 = vector.multi_reduction <add>, %124, %cst_59 [1] : vector<128x256xf32> to vector<128xf32>
    %126 = vector.shape_cast %125 : vector<128xf32> to vector<128x1xf32>
    %cst_60 = arith.constant 2.560000e+02 : f32
    %127 = vector.broadcast %cst_60 : f32 to vector<128x1xf32>
    %128 = arith.divf %126, %127 : vector<128x1xf32>
    %129 = vector.broadcast %128 : vector<128x1xf32> to vector<128x256xf32>
    %130 = arith.subf %124, %129 : vector<128x256xf32>
    %131 = arith.mulf %130, %130 : vector<128x256xf32>
    %cst_61 = arith.constant dense<0.000000e+00> : vector<128xf32>
    %132 = vector.multi_reduction <add>, %131, %cst_61 [1] : vector<128x256xf32> to vector<128xf32>
    %133 = vector.shape_cast %132 : vector<128xf32> to vector<128x1xf32>
    %cst_62 = arith.constant 2.560000e+02 : f32
    %134 = vector.broadcast %cst_62 : f32 to vector<128x1xf32>
    %135 = arith.divf %133, %134 : vector<128x1xf32>
    %136 = vector.broadcast %128 : vector<128x1xf32> to vector<128x256xf32>
    %137 = arith.subf %124, %136 : vector<128x256xf32>
    %cst_63 = arith.constant 9.99999974E-6 : f32
    %138 = vector.broadcast %cst_63 : f32 to vector<128x1xf32>
    %139 = arith.addf %135, %138 : vector<128x1xf32>
    %140 = math.rsqrt %139 : vector<128x1xf32>
    %141 = vector.broadcast %140 : vector<128x1xf32> to vector<128x256xf32>
    %142 = arith.mulf %137, %141 : vector<128x256xf32>
    %c0_64 = arith.constant 0 : index
    %c0_65 = arith.constant 0 : index
    %143 = vector.load %arg15[%c0_64, %c0_65] : memref<1x256xf32, #tpu.memory_space<vmem>>, vector<1x256xf32>
    %144 = vector.broadcast %143 : vector<1x256xf32> to vector<128x256xf32>
    %145 = arith.mulf %142, %144 : vector<128x256xf32>
    %c0_66 = arith.constant 0 : index
    %c0_67 = arith.constant 0 : index
    %146 = vector.load %arg16[%c0_66, %c0_67] : memref<1x256xf32, #tpu.memory_space<vmem>>, vector<1x256xf32>
    %147 = vector.broadcast %146 : vector<1x256xf32> to vector<128x256xf32>
    %148 = arith.addf %145, %147 : vector<128x256xf32>
    %c0_68 = arith.constant 0 : index
    %c0_69 = arith.constant 0 : index
    %c0_70 = arith.constant 0 : index
    %149 = vector.load %arg17[%c0_68, %c0_69, %c0_70] : memref<1x128x256xf32, #tpu.memory_space<vmem>>, vector<1x128x256xf32>
    %150 = vector.shape_cast %149 : vector<1x128x256xf32> to vector<128x256xf32>
    %151 = vector.shape_cast %148 : vector<128x256xf32> to vector<1x128x256xf32>
    tpu.vector_store %arg17[%c0_68, %c0_69, %c0_70], %151 {strides = array<i32>} : memref<1x128x256xf32, #tpu.memory_space<vmem>>, vector<1x128x256xf32>,
    return
  }
  func.func @transform_0(%arg0: i32, %arg1: i32) -> (i32, i32, i32) {
    %c0_i32 = arith.constant 0 : i32
    %c0_i32_0 = arith.constant 0 : i32
    return %arg0, %arg1, %c0_i32 : i32, i32, i32
  }
  func.func @transform_1(%arg0: i32, %arg1: i32) -> (i32, i32, i32) {
    %c0_i32 = arith.constant 0 : i32
    %c0_i32_0 = arith.constant 0 : i32
    %c0_i32_1 = arith.constant 0 : i32
    return %arg0, %c0_i32, %c0_i32_0 : i32, i32, i32
  }
  func.func @transform_2(%arg0: i32, %arg1: i32) -> (i32, i32, i32) {
    %c0_i32 = arith.constant 0 : i32
    %c0_i32_0 = arith.constant 0 : i32
    %c0_i32_1 = arith.constant 0 : i32
    return %arg0, %c0_i32, %c0_i32_0 : i32, i32, i32
  }
  func.func @transform_3(%arg0: i32, %arg1: i32) -> (i32, i32) {
    %c0_i32 = arith.constant 0 : i32
    %c0_i32_0 = arith.constant 0 : i32
    %c0_i32_1 = arith.constant 0 : i32
    return %c0_i32, %c0_i32_0 : i32, i32
  }
  func.func @transform_4(%arg0: i32, %arg1: i32) -> (i32, i32) {
    %c0_i32 = arith.constant 0 : i32
    %c0_i32_0 = arith.constant 0 : i32
    %c0_i32_1 = arith.constant 0 : i32
    return %c0_i32, %c0_i32_0 : i32, i32
  }
  func.func @transform_5(%arg0: i32, %arg1: i32) -> (i32, i32) {
    %c0_i32 = arith.constant 0 : i32
    %c0_i32_0 = arith.constant 0 : i32
    %c0_i32_1 = arith.constant 0 : i32
    return %c0_i32, %c0_i32_0 : i32, i32
  }
  func.func @transform_6(%arg0: i32, %arg1: i32) -> (i32, i32) {
    %c0_i32 = arith.constant 0 : i32
    %c0_i32_0 = arith.constant 0 : i32
    %c0_i32_1 = arith.constant 0 : i32
    return %c0_i32, %c0_i32_0 : i32, i32
  }
  func.func @transform_7(%arg0: i32, %arg1: i32) -> (i32, i32) {
    %c0_i32 = arith.constant 0 : i32
    %c0_i32_0 = arith.constant 0 : i32
    %c0_i32_1 = arith.constant 0 : i32
    return %c0_i32, %c0_i32_0 : i32, i32
  }
  func.func @transform_8(%arg0: i32, %arg1: i32) -> (i32, i32) {
    %c0_i32 = arith.constant 0 : i32
    %c0_i32_0 = arith.constant 0 : i32
    %c0_i32_1 = arith.constant 0 : i32
    return %c0_i32, %c0_i32_0 : i32, i32
  }
  func.func @transform_9(%arg0: i32, %arg1: i32) -> (i32, i32) {
    %c0_i32 = arith.constant 0 : i32
    %c0_i32_0 = arith.constant 0 : i32
    %c0_i32_1 = arith.constant 0 : i32
    return %c0_i32, %c0_i32_0 : i32, i32
  }
  func.func @transform_10(%arg0: i32, %arg1: i32) -> (i32, i32) {
    %c0_i32 = arith.constant 0 : i32
    %c0_i32_0 = arith.constant 0 : i32
    %c0_i32_1 = arith.constant 0 : i32
    return %c0_i32, %c0_i32_0 : i32, i32
  }
  func.func @transform_11(%arg0: i32, %arg1: i32) -> (i32, i32) {
    %c0_i32 = arith.constant 0 : i32
    %c0_i32_0 = arith.constant 0 : i32
    %c0_i32_1 = arith.constant 0 : i32
    return %c0_i32, %c0_i32_0 : i32, i32
  }
  func.func @transform_12(%arg0: i32, %arg1: i32) -> (i32, i32) {
    %c0_i32 = arith.constant 0 : i32
    %c0_i32_0 = arith.constant 0 : i32
    %c0_i32_1 = arith.constant 0 : i32
    return %c0_i32, %c0_i32_0 : i32, i32
  }
  func.func @transform_13(%arg0: i32, %arg1: i32) -> (i32, i32) {
    %c0_i32 = arith.constant 0 : i32
    %c0_i32_0 = arith.constant 0 : i32
    %c0_i32_1 = arith.constant 0 : i32
    return %c0_i32, %c0_i32_0 : i32, i32
  }
  func.func @transform_14(%arg0: i32, %arg1: i32) -> (i32, i32) {
    %c0_i32 = arith.constant 0 : i32
    %c0_i32_0 = arith.constant 0 : i32
    %c0_i32_1 = arith.constant 0 : i32
    return %c0_i32, %c0_i32_0 : i32, i32
  }
  func.func @transform_15(%arg0: i32, %arg1: i32) -> (i32, i32, i32) {
    %c0_i32 = arith.constant 0 : i32
    %c0_i32_0 = arith.constant 0 : i32
    return %arg0, %arg1, %c0_i32 : i32, i32, i32
  }
}

</mosaic_0001>

<bundles_post_ra>
// kernel: tpu_custom_call.1
= control target key start
LH: loop header
LB: loop body
LE: loop exit
PB: predicated region body
PF: predicated region fallthrough
CT: control target
= control target key end

     0   :  { %s8731_s0 = inlined_call_operand.hbm [shape: f32[2,128,256], index: 0, kind: input, shape index: {}]   ;;  %s8732_s1 = inlined_call_operand.hbm [shape: bf16[2,128,512], index: 1, kind: input, shape index: {}]   ;;  %s8733_s2 = inlined_call_operand.vmem [shape: f32[2,1,128], index: 2, kind: input, shape index: {}]   ;;  %s8734_s3 = inlined_call_operand.hbm [shape: bf16[256,256], index: 3, kind: input, shape index: {}]   ;;  %s8735_s4 = inlined_call_operand.hbm [shape: f32[1,256], index: 4, kind: input, shape index: {}]   ;;  %s8736_s5 = inlined_call_operand.hbm [shape: bf16[256,256], index: 5, kind: input, shape index: {}]   ;;  %s8737_s6 = inlined_call_operand.vmem [shape: f32[1,256], index: 6, kind: input, shape index: {}]   ;;  %s8738_s7 = inlined_call_operand.vmem [shape: f32[1,256], index: 7, kind: input, shape index: {}]   ;;  %s8739_s8 = inlined_call_operand.vmem [shape: f32[1,256], index: 8, kind: input, shape index: {}]   ;;  %s8740_s9 = inlined_call_operand.hbm [shape: bf16[256,512], index: 9, kind: input, shape index: {}]   ;;  %s8741_s10 = inlined_call_operand.vmem [shape: f32[1,512], index: 10, kind: input, shape index: {}]   ;;  %s8742_s11 = inlined_call_operand.hbm [shape: bf16[512,256], index: 11, kind: input, shape index: {}]   ;;  %s8743_s12 = inlined_call_operand.vmem [shape: f32[1,256], index: 12, kind: input, shape index: {}]   ;;  %s8744_s13 = inlined_call_operand.vmem [shape: f32[1,256], index: 13, kind: input, shape index: {}]   ;;  %s8745_s14 = inlined_call_operand.vmem [shape: f32[1,256], index: 14, kind: input, shape index: {}]   ;;  %s8746_s15 = inlined_call_operand.hbm [shape: f32[2,128,256], index: 15, kind: output, shape index: {}]  }
   0x1   :  { %8799 = sst [smem:[#allocation58_spill]] %s8734_s3 }
   0x2   :  { %8800 = sst [smem:[#allocation59_spill]] %s8735_s4 }
   0x3   :  { %8801 = sst [smem:[#allocation60_spill]] %s8736_s5 }
   0x4   :  { %8802 = sst [smem:[#allocation61_spill]] %s8740_s9 }
   0x5   :  { %8803 = sst [smem:[#allocation62_spill]] %s8741_s10 }
   0x6   :  { %8804 = sst [smem:[#allocation63_spill]] %s8742_s11 }
   0x7   :  { %8805 = sst [smem:[#allocation64_spill]] %s8743_s12 }
   0x8   :  { %8806 = sst [smem:[#allocation65_spill]] %s8744_s13 }
   0x9   :  { %8807 = sst [smem:[#allocation66_spill]] %s8745_s14 }
   0xa   :  { %8808 = sst [smem:[#allocation67_spill]] %s8746_s15 }
   0xb   :  { %20 = vsyncpa [#allocation3], 0 }
   0xc   :  { %22 = vsyncpa [#allocation3 + $0x1], 0 }
   0xd   :  { %23 = vsyncpa [#allocation6], 0 }
   0xe   :  { %25 = vsyncpa [#allocation6 + $0x1], 0 }
   0xf   :  { %26 = vsyncpa [#allocation9], 0 }
  0x10   :  { %27 = vsyncpa [#allocation12], 0 }
  0x11   :  { %28 = vsyncpa [#allocation4], 0 }
  0x12   :  { %30 = vsyncpa [#allocation4 + $0x1], 0  ;;  %s6446_s18 = smov 0   ;;  %s6448_s19 = smov 0  }
  0x13   :  { %s6450_s20 = smov 0   ;;  %s6452_s21 = smov 0  }
  0x14   :  { %s6454_s22 = smov 0   ;;  %s6456_s23 = smov 0  }
  0x15 LB: > { %8809 = sst [smem:[#allocation21_spill]] %s6338_s20  ;;  %s6477_s24 = sadd.s32 4294967295, %s6350_s23   ;;  %s6350_s23 = sphi %s6456_s23, %s36_s23   ;;  %s6346_s22 = sphi %s6454_s22, %s8951_s22   ;;  %s6342_s21 = sphi %s6452_s21, %s8950_s21   ;;  %s6338_s20 = sphi %s6450_s20, %s8949_s20   ;;  %s6334_s19 = sphi %s6448_s19, %s8953_s19   ;;  %s6330_s18 = sphi %s6446_s18, %s8952_s18  }
  0x16   : > { %8810 = sst [smem:[#allocation22_spill]] %s6346_s22  ;;  %p4858_p0 = scmp.ge.s32.totalorder %s6350_s23, 1 }
  0x17   : > { %p8748_p1 = scmp.eq.s32.totalorder %s6477_s24, 0  ;;  %p413_p2 = scmp.lt.s32.totalorder %s6350_s23, 3 }
  0x18   : > { %s6352_s26 = smov [#allocation7]   ;;  %s6353_s29 = smov [#allocation8]  }
  0x19   : > { %p6482_p3 = pnand %p4858_p0, %p413_p2  ;;  %s425_s27 = sshll.u32 %s6352_s26, 4  ;;  %s426_s27 = int_to_ptr.vmem [resolvable:$true] %s425_s27 }
  0x1a   : > { %s439_s30 = sshll.u32 %s6353_s29, 4  ;;  %s6354_s16 = smov [#allocation11]   ;;  %s440_s30 = int_to_ptr.vmem [resolvable:$true] %s439_s30 }
  0x1b   : > { %s8811_s25 = scalar_select %p6482_p3, 1, 0 }
  0x1c   : > { %p5362_p4 = pneg %p6482_p3  ;;  %s471_s17 = sshll.u32 %s6354_s16, 4  ;;  %s472_s17 = int_to_ptr.vmem [resolvable:$true] %s471_s17 }
  0x1d   : > { %s6079_s26 = scalar_lea.vmem %s426_s27, 4096  ;;  %p6087_p11 = scmp.lt.s32.totalorder %s426_s27, %s426_s27 }
  0x1e   : > { %p6491_p6 = pnand %p5362_p4, %p8748_p1  ;;  %p6080_p8 = scmp.ne.s32.totalorder %s426_s27, %s6079_s26 }
  0x1f   : > { %p6088_p12 = scmp.lt.s32.totalorder %s6079_s26, %s6079_s26 }
  0x20   : > { %p6497_p7 = pneg %p6491_p6 }
  0x21   : > { %p6089_p13 = por %p6088_p12, %p6087_p11 }
  0x22   : > { %p6082_p9 = pnand %p6080_p8, %p6497_p7 }
  0x24   : > { %p6083_p10 = pneg %p6082_p9 }
  0x26   : > { %p6090_p0 = pnand %p6089_p13, %p6083_p10 }
  0x28   : > { %6093 = shalt.err (!%p6090_p0)
}
  0x29   : > { %s8750_s29 = smov 128   ;;  %s8752_s16 = smov 8  }
  0x2a   : > { %s8814_s3 = sld [smem:[#allocation58_spill]]  ;;  %s6105_s12 = scalar_lea.vmem %s440_s30, 32 }
  0x2b   : > { %p6106_p2 = scmp.ne.s32.totalorder %s440_s30, %s6105_s12  ;;  %p6113_p9 = scmp.lt.s32.totalorder %s440_s30, %s440_s30 }
  0x2c   : > { %p6114_p10 = scmp.lt.s32.totalorder %s6105_s12, %s6105_s12 }
  0x2d   : > { %p6108_p4 = pnand %p6106_p2, %p6497_p7 }
  0x2e   : > { %p6115_p11 = por %p6114_p10, %p6113_p9 }
  0x2f   : > { %p6109_p8 = pneg %p6108_p4 }
  0x30   : > { %5365 = dma.hbm_to_vmem [thread:$0]  (!%p6491_p6), %s8814_s3, 4096, %s426_s27, [#allocation6], %s8750_s29, %s8750_s29, %s8752_s16  }
  0x31   : > { %p6116_p12 = pnand %p6115_p11, %p6109_p8 }
  0x33   : > { %6119 = shalt.err (!%p6116_p12)
}
  0x34   : > { %s8815_s4 = sld [smem:[#allocation59_spill]]  ;;  %s6131_s13 = scalar_lea.vmem %s472_s17, 8192 }
  0x35   : > { %p6132_p13 = scmp.ne.s32.totalorder %s472_s17, %s6131_s13  ;;  %p6139_p2 = scmp.lt.s32.totalorder %s472_s17, %s472_s17 }
  0x36   : > { %p6140_p4 = scmp.lt.s32.totalorder %s6131_s13, %s6131_s13 }
  0x37   : > { %p6134_p0 = pnand %p6132_p13, %p6497_p7 }
  0x38   : > { %p6141_p1 = por %p6140_p4, %p6139_p2 }
  0x39   : > { %p6135_p5 = pneg %p6134_p0 }
  0x3a   : > { %5368 = dma.hbm_to_vmem [thread:$0]  (!%p6491_p6), %s8815_s4, 32, %s440_s30, [#allocation9]  }
  0x3b   : > { %p6142_p3 = pnand %p6141_p1, %p6135_p5 }
  0x3d   : > { %6145 = shalt.err (!%p6142_p3)
}
  0x3e   : > { %s8754_s12 = smov 256   ;;  %s8756_s14 = smov 16  }
  0x3f   : > { %s8816_s9 = sld [smem:[#allocation61_spill]]  ;;  %s6359_s30 = smov [#allocation10]  }
  0x40   : > { %s449_s26 = sshll.u32 %s6359_s30, 4  ;;  %s6360_s29 = smov [#allocation13]   ;;  %s450_s26 = int_to_ptr.vmem [resolvable:$true] %s449_s26 }
  0x41   : > { %s487_s13 = sshll.u32 %s6360_s29, 4  ;;  %s6157_s16 = scalar_lea.vmem %s450_s26, 4096  ;;  %s488_s13 = int_to_ptr.vmem [resolvable:$true] %s487_s13 }
  0x42   : > { %p6158_p1 = scmp.ne.s32.totalorder %s450_s26, %s6157_s16  ;;  %p6165_p8 = scmp.lt.s32.totalorder %s450_s26, %s450_s26 }
  0x43   : > { %p6166_p9 = scmp.lt.s32.totalorder %s6157_s16, %s6157_s16 }
  0x44   : > { %p6160_p3 = pnand %p6158_p1, %p6497_p7 }
  0x45   : > { %5374 = dma.hbm_to_vmem [thread:$0]  (!%p6491_p6), %s8816_s9, 8192, %s472_s17, [#allocation12], %s8754_s12, %s8754_s12, %s8756_s14  }
  0x46   : > { %p6161_p5 = pneg %p6160_p3  ;;  %p6167_p10 = por %p6166_p9, %p6165_p8 }
  0x48   : > { %p6168_p11 = pnand %p6167_p10, %p6161_p5 }
  0x4a   : > { %6171 = shalt.err (!%p6168_p11)
}
  0x4b   : > { %s8817_s3 = smov 8   ;;  %s8818_s10 = smov 128  }
  0x4c   : > { %s8819_s5 = sld [smem:[#allocation60_spill]]  ;;  %s6183_s29 = scalar_lea.vmem %s488_s13, 8192 }
  0x4d   : > { %p6184_p12 = scmp.ne.s32.totalorder %s488_s13, %s6183_s29  ;;  %p6191_p2 = scmp.lt.s32.totalorder %s488_s13, %s488_s13 }
  0x4e   : > { %p6192_p4 = scmp.lt.s32.totalorder %s6183_s29, %s6183_s29 }
  0x4f   : > { %p6186_p13 = pnand %p6184_p12, %p6497_p7 }
  0x50   : > { %p6193_p1 = por %p6192_p4, %p6191_p2 }
  0x51   : > { %p6187_p0 = pneg %p6186_p13 }
  0x52   : > { %5371 = dma.hbm_to_vmem [thread:$0]  (!%p6491_p6), %s8819_s5, 4096, %s450_s26, [#allocation9], %s8818_s10, %s8818_s10, %s8817_s3  }
  0x53   : > { %p6194_p3 = pnand %p6193_p1, %p6187_p0 }
  0x55   : > { %6197 = shalt.err (!%p6194_p3)
}
  0x56   : > { %s8820_s11 = sld [smem:[#allocation63_spill]]  ;;  %s4857_s15 = sadd.s32 4294967294, %s6350_s23  }
  0x57   : > { %s48_s28 = sadd.s32 1, %s6346_s22  ;;  %s57_s26 = sadd.s32 1, %s6338_s20 }
  0x58   : > { %p50_p7 = scmp.ge.s32.totalorder %s48_s28, 2  ;;  %p64_p5 = scmp.ne.s32.totalorder %s6338_s20, %s6334_s19 }
  0x59   : > { %p65_p8 = scmp.eq.s32.totalorder %s6350_s23, 0  ;;  %p70_p9 = scmp.ne.s32.totalorder %s6334_s19, %s6330_s18 }
  0x5a   : > { %s8955_s28 = smov (%p50_p7, %s48_s28), 0  ;;  %p8823_p11 = scmp.eq.s32.totalorder %s6477_s24, 0 }
  0x5b   : > { %8821 = sst [smem:[#allocation23_spill]] %s8955_s28  ;;  %p6558_p10 = por %p65_p8, %p64_p5 }
  0x5c   : > { %5377 = dma.hbm_to_vmem [thread:$0]  (!%p6491_p6), %s8820_s11, 8192, %s488_s13, [#allocation12], %s8818_s10, %s8818_s10, %s8817_s3  }
  0x5d   : > { %p6564_p6 = por %p8823_p11, %p70_p9  ;;  %s52_s13 = ssub.s32 %s6346_s22, %s8955_s28 }
  0x5e   : > { %p400_p12 = scmp.eq.s32.totalorder %s6477_s24, 1  ;;  %p55_p13 = scmp.eq.s32.totalorder %s52_s13, 0 }
  0x5f   : > { %p406_p0 = scmp.eq.s32.totalorder %s4857_s15, 1  ;;  %p5394_p4 = scmp.lt.s32.totalorder %s6350_s23, 2 }
  0x60   : > { %p6571_p2 = por %p400_p12, %p64_p5  ;;  %s510_s16 = sand.u32 1, %s6338_s20  }
  0x61   : > { %s6577_s27 = scalar_select %p55_p13, %s6338_s20, %s57_s26  }
  0x62   : > { %p6579_p1 = por %p406_p0, %p70_p9  ;;  %s4865_s30 = sshll.u32 %s510_s16, 8 }
  0x63   : > { %8826 = sst [smem:[#allocation24_spill]] %s6577_s27  ;;  %s5109_s12 = sshll.u32 %s6346_s22, 12 }
  0x64   : > { %s523_s5 = scalar_lea.hbm %s8731_s0, %s5109_s12  ;;  %s514_s13 = scalar_lea.vmem [#allocation2], %s4865_s30 }
  0x65   : > { %s524_s15 = sshll.u32 %s514_s13, 4  ;;  %p6590_p3 = pnand %p5394_p4, %p6558_p10  ;;  %s525_s15 = int_to_ptr.vmem [resolvable:$true] %s524_s15 }
  0x66   : > { %s6597_s28 = scalar_lea.hbm %s8732_s1, %s5109_s12  ;;  %s538_s22 = scalar_lea.vmem [#allocation5], %s4865_s30 }
  0x67   : > { %s545_s27 = sshll.u32 %s538_s22, 4  ;;  %s511_s20 = scalar_lea.sflag [#allocation3], %s510_s16  ;;  %s546_s27 = int_to_ptr.vmem [resolvable:$true] %s545_s27 }
  0x68   : > { %p6200_p7 = pneg %p6590_p3  ;;  %s6211_s4 = scalar_lea.vmem %s525_s15, 4096 }
  0x69   : > { %p6212_p5 = scmp.ne.s32.totalorder %s525_s15, %s6211_s4  ;;  %s6361_s14 = smov [#allocation2]  }
  0x6a   : > { %s6216_s17 = sshll.u32 %s6361_s14, 4  ;;  %s6217_s17 = int_to_ptr.vmem [resolvable:$false] %s6216_s17 }
  0x6b   : > { %p6214_p8 = pnand %p6212_p5, %p6200_p7  ;;  %s6218_s13 = scalar_lea.vmem %s6217_s17, 8192 }
  0x6c   : > { %p6219_p10 = scmp.lt.s32.totalorder %s525_s15, %s6217_s17  ;;  %p6220_p11 = scmp.lt.s32.totalorder %s6218_s13, %s6211_s4 }
  0x6d   : > { %p6215_p9 = pneg %p6214_p8 }
  0x6e   : > { %p6221_p12 = por %p6220_p11, %p6219_p10 }
  0x70   : > { %p6222_p13 = pnand %p6221_p12, %p6215_p9 }
  0x72   : > { %6225 = shalt.err (!%p6222_p13)
}
  0x73   : > { %s8829_s11 = smov 16   ;;  %s8830_s22 = smov 256  }
  0x74   : > { %5381 = dma.hbm_to_vmem [thread:$0]  (!%p6590_p3), %s523_s5, 4096, %s525_s15, %s511_s20, %s8830_s22, %s8830_s22, %s8829_s11  }
  0x75   : > { %s534_s12 = sand.u32 1, %s6350_s23   ;;  %s6239_s30 = scalar_lea.vmem %s546_s27, 4096 }
  0x76   : > { %s535_s16 = scalar_lea.sflag [#allocation6], %s534_s12  ;;  %p6240_p0 = scmp.ne.s32.totalorder %s546_s27, %s6239_s30 }
  0x77   : > { %s6362_s26 = smov [#allocation5]  }
  0x78   : > { %p6242_p4 = pnand %p6240_p0, %p6200_p7  ;;  %s6244_s4 = sshll.u32 %s6362_s26, 4  ;;  %s6245_s4 = int_to_ptr.vmem [resolvable:$false] %s6244_s4 }
  0x79   : > { %s6246_s14 = scalar_lea.vmem %s6245_s4, 8192  ;;  %p6247_p8 = scmp.lt.s32.totalorder %s546_s27, %s6245_s4 }
  0x7a   : > { %p6243_p5 = pneg %p6242_p4  ;;  %p6248_p9 = scmp.lt.s32.totalorder %s6246_s14, %s6239_s30 }
  0x7c   : > { %p6249_p10 = por %p6248_p9, %p6247_p8 }
  0x7e   : > { %p6250_p11 = pnand %p6249_p10, %p6243_p5 }
  0x80   : > { %6253 = shalt.err (!%p6250_p11)
}
  0x81   : > { %5384 = dma.hbm_to_vmem [thread:$0]  (!%p6590_p3), %s6597_s28, 4096, %s546_s27, %s535_s16, %s8830_s22, %s8830_s22, %s8829_s11  }
  0x82   : > { %p8831_p12 = scmp.ne.s32.totalorder %s8811_s25, 0 }
  0x84   : > { %563 = sbr.rel (%p8831_p12) target bundleno = 2391 (0x957), region = 80 }
  0x89   : > { %s6622_s5 = sand.u32 1, %s6334_s19  }
  0x8a   : > { %s6625_s20 = sshll.u32 %s6622_s5, 8  ;;  %s566_s15 = scalar_lea.sflag [#allocation3], %s6622_s5 }
  0x8b   : > { %s6629_s17 = scalar_lea.vmem [#allocation2], %s6625_s20 }
  0x8c   : > { %6305 = dma.done.wait (%p6564_p6), %s566_s15, 4096  }
  0x8d   : > { %6307 = vsyncadd (%p6564_p6), %s566_s15, 4294963200  ;;  %s574_s9 = sand.u32 1, %s6477_s24   ;;  %s6637_s28 = scalar_lea.vmem [#allocation5], %s6625_s20 }
  0x8e   : > { %s575_s25 = scalar_lea.sflag [#allocation6], %s574_s9 }
  0x8f   : > { %6309 = dma.done.wait (%p6564_p6), %s575_s25, 4096  }
  0x90   : > { %6311 = vsyncadd (%p6564_p6), %s575_s25, 4294963200  ;;  %p8832_p3 = scmp.eq.s32.totalorder %s6477_s24, 0 }
  0x92   : > { %6313 = dma.done.wait (%p8832_p3), [#allocation6], 4096   ;;  %p8833_p7 = pmov %p8832_p3 }
  0x93   : > { %p8834_p13 = pmov %p8832_p3 }
  0x94   : > { %6315 = vsyncadd (%p8833_p7), [#allocation6], 4294963200 }
  0x95   : > { %6317 = dma.done.wait (%p8834_p13), [#allocation9], 4128   ;;  %p8835_p0 = pmov %p8832_p3 }
  0x97   : > { %6319 = vsyncadd (%p8835_p0), [#allocation9], 4294963168  ;;  %p8836_p4 = pmov %p8835_p0 }
  0x98   : > { %p8837_p5 = pmov %p8835_p0 }
  0x99   : > { %6321 = dma.done.wait (%p8836_p4), [#allocation12], 16384  }
  0x9a   : > { %6323 = vsyncadd (%p8837_p5), [#allocation12], 4294950912  ;;  %v5460_v0 = vld [vmem:[#allocation7 + $0x74] ss:$8 sps:$4 sm:$0xff]   ;;  %v5462_v1 = vld [vmem:[#allocation7 + $0x70] ss:$8 sps:$4 sm:$0xff]  }
  0x9b   : > { %911 = vmatprep.subr.bf16.mxu0 %v5460_v0  ;;  %v5463_v2 = vld [vmem:[#allocation7 + $0x64] ss:$8 sps:$4 sm:$0xff]   ;;  %v5465_v3 = vld [vmem:[#allocation7 + $0x60] ss:$8 sps:$4 sm:$0xff]   ;;  %v5466_v4 = vld [vmem:[#allocation7 + $0x54] ss:$8 sps:$4 sm:$0xff]  }
  0x9c   : > { %912 = vmatpush1.bf16.msra.mxu0 %v5462_v1  ;;  %v5468_v5 = vld [vmem:[#allocation7 + $0x50] ss:$8 sps:$4 sm:$0xff]   ;;  %v5469_v6 = vld [vmem:[#allocation7 + $0x44] ss:$8 sps:$4 sm:$0xff]   ;;  %v5471_v7 = vld [vmem:[#allocation7 + $0x40] ss:$8 sps:$4 sm:$0xff]  }
  0x9d   : > { %913 = vmatprep.subr.bf16.mxu0 %v5463_v2  ;;  %v5472_v8 = vld [vmem:[#allocation7 + $0x34] ss:$8 sps:$4 sm:$0xff]   ;;  %v5474_v9 = vld [vmem:[#allocation7 + $0x30] ss:$8 sps:$4 sm:$0xff]   ;;  %v5475_v10 = vld [vmem:[#allocation7 + $0x24] ss:$8 sps:$4 sm:$0xff]  }
  0x9e   : > { %v5477_v11 = vld [vmem:[#allocation7 + $0x20] ss:$8 sps:$4 sm:$0xff]   ;;  %v5478_v12 = vld [vmem:[#allocation7 + $0x14] ss:$8 sps:$4 sm:$0xff]   ;;  %v5480_v16 = vld [vmem:[#allocation7 + $0x10] ss:$8 sps:$4 sm:$0xff]  }
  0x9f   : > { %v660_v13 = vld [vmem:[%s6629_s17 + $0x8] sm:$0xff]  ;;  %v662_v14 = vld [vmem:[%s6629_s17 + $0x18] sm:$0xff]  ;;  %v5508_v22 = vld [vmem:[%s6637_s28 + $0xe0] ss:$16 sps:$4 sm:$0xff]   ;;  %p654_p6 = scmp.lt.s32.totalorder %s6342_s21, 1  ;;  %s8910_s15 = sld [smem:[#allocation62_spill]] }
  0xa0   : > { %914 = vmatpush1.bf16.msra.mxu0 %v5465_v3  ;;  %v692_v15 = vpack.c.bf16 %v662_v14, %v660_v13  ;;  %v5481_v17 = vld [vmem:[#allocation7 + $0x4] ss:$8 sps:$4 sm:$0xff]   ;;  %v5483_v18 = vld [vmem:[#allocation7] ss:$8 sps:$4 sm:$0xff]   ;;  %v5484_v19 = vld [vmem:[#allocation7 + $0xf4] ss:$8 sps:$4 sm:$0xff]   ;;  %5176 = vmatprep.subr.bf16.mxu1 %v5508_v22 }
  0xa1   : > { %915 = vmatprep.subr.bf16.mxu0 %v5466_v4  ;;  %v5486_v20 = vld [vmem:[#allocation7 + $0xf0] ss:$8 sps:$4 sm:$0xff]   ;;  %v5487_v21 = vld [vmem:[#allocation7 + $0xe4] ss:$8 sps:$4 sm:$0xff]   ;;  %v5489_v24 = vld [vmem:[#allocation7 + $0xe0] ss:$8 sps:$4 sm:$0xff]   ;;  %5177 = vmatpush3.bf16.xpose.msra.mxu1 %v5508_v22 }
  0xa2   : > { %943 = vmatprep.mubr.bf16.mxu0 %v692_v15  ;;  %v5510_v23 = vld [vmem:[%s6637_s28 + $0xc0] ss:$16 sps:$4 sm:$0xff]   ;;  %v5490_v25 = vld [vmem:[#allocation7 + $0xd4] ss:$8 sps:$4 sm:$0xff]   ;;  %v5493_v27 = vld [vmem:[#allocation7 + $0xc4] ss:$8 sps:$4 sm:$0xff]  }
  0xa3   : > { %5178 = vmatprep.subr.bf16.mxu1 %v5510_v23  ;;  %v5492_v26 = vld [vmem:[#allocation7 + $0xd0] ss:$8 sps:$4 sm:$0xff]   ;;  %v5495_v29 = vld [vmem:[#allocation7 + $0xc0] ss:$8 sps:$4 sm:$0xff]   ;;  %v5496_v30 = vld [vmem:[#allocation7 + $0xb4] ss:$8 sps:$4 sm:$0xff]  }
  0xa4   : > { %916 = vmatpush1.bf16.msra.mxu0 %v5468_v5  ;;  %v5512_v28 = vld [vmem:[%s6637_s28 + $0xa0] ss:$16 sps:$4 sm:$0xff]   ;;  %v5499_v32 = vld [vmem:[#allocation7 + $0xa4] ss:$8 sps:$4 sm:$0xff]   ;;  %v5502_v35 = vld [vmem:[#allocation7 + $0x94] ss:$8 sps:$4 sm:$0xff]  }
  0xa5   : > { %917 = vmatprep.subr.bf16.mxu0 %v5469_v6  ;;  %v5498_v31 = vld [vmem:[#allocation7 + $0xb0] ss:$8 sps:$4 sm:$0xff]   ;;  %v5501_v34 = vld [vmem:[#allocation7 + $0xa0] ss:$8 sps:$4 sm:$0xff]   ;;  %v5505_v37 = vld [vmem:[#allocation7 + $0x84] ss:$8 sps:$4 sm:$0xff]  }
  0xa6   : > { %v5514_v33 = vld [vmem:[%s6637_s28 + $0x80] ss:$16 sps:$4 sm:$0xff]   ;;  %v664_v42 = vld [vmem:[%s6629_s17 + $0x28] sm:$0xff]  ;;  %v666_v43 = vld [vmem:[%s6629_s17 + $0x38] sm:$0xff]  ;;  %s655_s24 = scalar_select %p654_p6, %s6342_s21, 1 }
  0xa7   : > { %v5504_v36 = vld [vmem:[#allocation7 + $0x90] ss:$8 sps:$4 sm:$0xff]   ;;  %v5507_v39 = vld [vmem:[#allocation7 + $0x80] ss:$8 sps:$4 sm:$0xff]   ;;  %v5509_v44 = vld [vmem:[%s6637_s28 + $0xe4] ss:$16 sps:$4 sm:$0xff]   ;;  %v694_v47 = vpack.c.bf16 %v666_v43, %v664_v42 }
  0xa8   : > { %918 = vmatpush1.bf16.msra.mxu0 %v5471_v7  ;;  %v5516_v38 = vld [vmem:[%s6637_s28 + $0x60] ss:$16 sps:$4 sm:$0xff]   ;;  %v5511_v46 = vld [vmem:[%s6637_s28 + $0xc4] ss:$16 sps:$4 sm:$0xff]   ;;  %v668_v51 = vld [vmem:[%s6629_s17 + $0x48] sm:$0xff]  ;;  %s656_s13 = scalar_lea.vmem %s8733_s2, %s655_s24  ;;  %s8911_s25 = sld [smem:[#allocation64_spill]] }
  0xa9   : > { %919 = vmatprep.subr.bf16.mxu0 %v5472_v8  ;;  %5179 = vmatpush3.bf16.xpose.msra.mxu1 %v5510_v23  ;;  %v659_v40 = vld [vmem:[%s6629_s17] sm:$0xff]  ;;  %v661_v41 = vld [vmem:[%s6629_s17 + $0x10] sm:$0xff]  ;;  %v670_v52 = vld [vmem:[%s6629_s17 + $0x58] sm:$0xff]  ;;  %s8944_s3 = sld [smem:[#allocation65_spill]]  ;;  %s8554_s22 = scalar_lea.vmem [#allocation14], %s6625_s20 }
  0xaa   : > { %5180 = vmatprep.subr.bf16.mxu1 %v5512_v28  ;;  %v691_v45 = vpack.c.bf16 %v661_v41, %v659_v40  ;;  %v5518_v48 = vld [vmem:[%s6637_s28 + $0x40] ss:$16 sps:$4 sm:$0xff]   ;;  %v5513_v54 = vld [vmem:[%s6637_s28 + $0xa4] ss:$16 sps:$4 sm:$0xff]   ;;  %v696_v55 = vpack.c.bf16 %v670_v52, %v668_v51  ;;  %v672_v58 = vld [vmem:[%s6629_s17 + $0x68] sm:$0xff]  ;;  %s8945_s11 = sld [smem:[#allocation66_spill]] }
  0xab   : > { %v663_v49 = vld [vmem:[%s6629_s17 + $0x20] sm:$0xff]  ;;  %v665_v50 = vld [vmem:[%s6629_s17 + $0x30] sm:$0xff]  ;;  %v674_v59 = vld [vmem:[%s6629_s17 + $0x78] sm:$0xff]  ;;  %s5111_s20 = sshll.u32 %s6342_s21, 12  ;;  %s4690_s12 = sshll.u32 %s8554_s22, 4  ;;  %s8679_s12 = int_to_ptr.vmem [resolvable:$true] %s4690_s12 }
  0xac   : > { %920 = vmatpush1.bf16.msra.mxu0 %v5474_v9  ;;  %v693_v53 = vpack.c.bf16 %v665_v50, %v663_v49  ;;  %v667_v56 = vld [vmem:[%s6629_s17 + $0x40] sm:$0xff]  ;;  %v669_v57 = vld [vmem:[%s6629_s17 + $0x50] sm:$0xff]  ;;  %v698_v62 = vpack.c.bf16 %v674_v59, %v672_v58  ;;  %v676_v1 = vld [vmem:[%s6629_s17 + $0x88] sm:$0xff]  ;;  %s8946_s26 = sld [smem:[#allocation67_spill]]  ;;  %s4674_s21 = scalar_lea.sflag [#allocation4], %s6622_s5 }
  0xad   : > { %921 = vmatprep.subr.bf16.mxu0 %v5475_v10  ;;  %v695_v60 = vpack.c.bf16 %v669_v57, %v667_v56  ;;  %v5515_v61 = vld [vmem:[%s6637_s28 + $0x84] ss:$16 sps:$4 sm:$0xff]   ;;  %v678_v2 = vld [vmem:[%s6629_s17 + $0x98] sm:$0xff]  ;;  %v680_v8 = vld [vmem:[%s6629_s17 + $0xa8] sm:$0xff]  ;;  %s6254_s14 = scalar_lea.vmem %s8679_s12, 4096 }
  0xae   : > { %v671_v63 = vld [vmem:[%s6629_s17 + $0x60] sm:$0xff]  ;;  %v673_v0 = vld [vmem:[%s6629_s17 + $0x70] sm:$0xff]  ;;  %v700_v5 = vpack.c.bf16 %v678_v2, %v676_v1  ;;  %v682_v9 = vld [vmem:[%s6629_s17 + $0xb8] sm:$0xff]  ;;  %p6255_p8 = scmp.ne.s32.totalorder %s8679_s12, %s6254_s14 }
  0xaf   : > { %v697_v3 = vpack.c.bf16 %v673_v0, %v671_v63  ;;  %v5517_v4 = vld [vmem:[%s6637_s28 + $0x64] ss:$16 sps:$4 sm:$0xff]   ;;  %v684_v15 = vld [vmem:[%s6629_s17 + $0xc8] sm:$0xff]  ;;  %v690_v22 = vld [vmem:[%s6629_s17 + $0xf8] sm:$0xff] }
  0xb0   : > { %922 = vmatpush1.bf16.msra.mxu0 %v5477_v11  ;;  %v675_v6 = vld [vmem:[%s6629_s17 + $0x80] sm:$0xff]  ;;  %v677_v7 = vld [vmem:[%s6629_s17 + $0x90] sm:$0xff]  ;;  %p6256_p9 = pnand %p6255_p8, %p6571_p2 }
  0xb1   : > { %923 = vmatprep.subr.bf16.mxu0 %v5478_v12  ;;  %5181 = vmatpush3.bf16.xpose.msra.mxu1 %v5512_v28  ;;  %v699_v10 = vpack.c.bf16 %v677_v7, %v675_v6  ;;  %v5519_v11 = vld [vmem:[%s6637_s28 + $0x44] ss:$16 sps:$4 sm:$0xff]   ;;  %v702_v12 = vpack.c.bf16 %v682_v9, %v680_v8  ;;  %v5520_v28 = vld [vmem:[%s6637_s28 + $0x20] ss:$16 sps:$4 sm:$0xff]  }
  0xb2   : > { %5182 = vmatprep.subr.bf16.mxu1 %v5514_v33  ;;  %v679_v13 = vld [vmem:[%s6629_s17 + $0xa0] sm:$0xff]  ;;  %v681_v14 = vld [vmem:[%s6629_s17 + $0xb0] sm:$0xff]  ;;  %s8677_s4 = scalar_lea.hbm %s8946_s26, %s5111_s20  ;;  %p6257_p10 = pneg %p6256_p9 }
  0xb4   : > { %924 = vmatpush1.bf16.msra.mxu0 %v5480_v16  ;;  %v686_v16 = vld [vmem:[%s6629_s17 + $0xd8] sm:$0xff] }
  0xb5   : > { %925 = vmatprep.subr.bf16.mxu0 %v5481_v17  ;;  %v701_v17 = vpack.c.bf16 %v681_v14, %v679_v13 }
  0xb8   : > { %926 = vmatpush1.bf16.msra.mxu0 %v5483_v18  ;;  %v704_v18 = vpack.c.bf16 %v686_v16, %v684_v15 }
  0xb9   : > { %927 = vmatprep.subr.bf16.mxu0 %v5484_v19  ;;  %5183 = vmatpush3.bf16.xpose.msra.mxu1 %v5514_v33  ;;  %v683_v19 = vld [vmem:[%s6629_s17 + $0xc0] sm:$0xff] }
  0xba   : > { %5184 = vmatprep.subr.bf16.mxu1 %v5516_v38 }
  0xbc   : > { %928 = vmatpush2.bf16.msra.mxu0 %v5486_v20  ;;  %v685_v20 = vld [vmem:[%s6629_s17 + $0xd0] sm:$0xff] }
  0xbd   : > { %929 = vmatprep.subr.bf16.mxu0 %v5487_v21  ;;  %v688_v21 = vld [vmem:[%s6629_s17 + $0xe8] sm:$0xff]  ;;  %v703_v23 = vpack.c.bf16 %v685_v20, %v683_v19 }
  0xc0   : > { %930 = vmatpush2.bf16.msra.mxu0 %v5489_v24  ;;  %v706_v24 = vpack.c.bf16 %v690_v22, %v688_v21 }
  0xc1   : > { %931 = vmatprep.subr.bf16.mxu0 %v5490_v25  ;;  %5185 = vmatpush3.bf16.xpose.msra.mxu1 %v5516_v38  ;;  %v687_v25 = vld [vmem:[%s6629_s17 + $0xe0] sm:$0xff] }
  0xc2   : > { %5186 = vmatprep.subr.bf16.mxu1 %v5518_v48 }
  0xc4   : > { %932 = vmatpush2.bf16.msra.mxu0 %v5492_v26  ;;  %v689_v26 = vld [vmem:[%s6629_s17 + $0xf0] sm:$0xff] }
  0xc5   : > { %933 = vmatprep.subr.bf16.mxu0 %v5493_v27  ;;  %v705_v27 = vpack.c.bf16 %v689_v26, %v687_v25 }
  0xc8   : > { %934 = vmatpush2.bf16.msra.mxu0 %v5495_v29  ;;  %v5521_v29 = vld [vmem:[%s6637_s28 + $0x24] ss:$16 sps:$4 sm:$0xff]  }
  0xc9   : > { %935 = vmatprep.subr.bf16.mxu0 %v5496_v30  ;;  %5187 = vmatpush3.bf16.xpose.msra.mxu1 %v5518_v48  ;;  %v5522_v30 = vld [vmem:[%s6637_s28] ss:$16 sps:$4 sm:$0xff]  }
  0xca   : > { %5188 = vmatprep.subr.bf16.mxu1 %v5520_v28 }
  0xcc   : > { %936 = vmatpush2.bf16.msra.mxu0 %v5498_v31  ;;  %v5523_v31 = vld [vmem:[%s6637_s28 + $0x4] ss:$16 sps:$4 sm:$0xff]  }
  0xcd   : > { %937 = vmatprep.subr.bf16.mxu0 %v5499_v32  ;;  %v741_v32 = vlaneseq }
  0xcf   : > { %v6703_v33 = vshrl.u32 %v741_v32, 7 }
  0xd0   : > { %938 = vmatpush2.bf16.msra.mxu0 %v5501_v34 }
  0xd1   : > { %939 = vmatprep.subr.bf16.mxu0 %v5502_v35  ;;  %5189 = vmatpush3.bf16.xpose.msra.mxu1 %v5520_v28  ;;  %8838 = vst [vmem:[#allocation25_spill] sm:$0xff] %v6703_v33  ;;  %v6706_v34 = vsub.s32 0, %v6703_v33  ;;  %v739_v35 = vld [vmem:[#allocation8] sm:$0x3] }
  0xd2   : > { %5190 = vmatprep.subr.bf16.mxu1 %v5522_v30 }
  0xd3   : > { %8839 = vst [vmem:[#allocation26_spill] sm:$0xff] %v6706_v34  ;;  %v6712_v38 = vrot.slane %v739_v35, %v6706_v34 }
  0xd4   : > { %940 = vmatpush2.bf16.msra.mxu0 %v5504_v36  ;;  %v6709_v36 = vsub.s32 1, %v6703_v33 }
  0xd5   : > { %941 = vmatprep.subr.bf16.mxu0 %v5505_v37 }
  0xd6   : > { %8840 = vst [vmem:[#allocation27_spill] sm:$0xff] %v6709_v36  ;;  %v6715_v40 = vrot.slane %v739_v35, %v6709_v36 }
  0xd8   : > { %942 = vmatpush2.bf16.msra.mxu0 %v5507_v39 }
  0xd9   : > { %5240 = vmatprep.subr.bf16.mxu0 %v5509_v44  ;;  %5191 = vmatpush3.bf16.xpose.msra.mxu1 %v5522_v30 }
  0xdb   : > { %944 = vmatmul.mubr.bf16.vlgmr.msra.gmra.mxu0 %v691_v45 }
  0xdc   : > { %953 = vmatprep.mubr.bf16.mxu0 %v694_v47  ;;  %5241 = vmatpush3.bf16.xpose.msra.mxu0 %v5509_v44 }
  0xdd   : > { %5242 = vmatprep.subr.bf16.mxu0 %v5511_v46 }
  0xe3   : > { %954 = vmatmul.mubr.bf16.gmra.mxu0 %v693_v53 }
  0xe4   : > { %963 = vmatprep.mubr.bf16.mxu0 %v696_v55  ;;  %5243 = vmatpush3.bf16.xpose.msra.mxu0 %v5511_v46 }
  0xe5   : > { %5244 = vmatprep.subr.bf16.mxu0 %v5513_v54 }
  0xeb   : > { %964 = vmatmul.mubr.bf16.gmra.mxu0 %v695_v60 }
  0xec   : > { %973 = vmatprep.mubr.bf16.mxu0 %v698_v62  ;;  %5245 = vmatpush3.bf16.xpose.msra.mxu0 %v5513_v54 }
  0xed   : > { %5246 = vmatprep.subr.bf16.mxu0 %v5515_v61 }
  0xf3   : > { %974 = vmatmul.mubr.bf16.gmra.mxu0 %v697_v3 }
  0xf4   : > { %983 = vmatprep.mubr.bf16.mxu0 %v700_v5  ;;  %5247 = vmatpush3.bf16.xpose.msra.mxu0 %v5515_v61 }
  0xf5   : > { %5248 = vmatprep.subr.bf16.mxu0 %v5517_v4 }
  0xfb   : > { %984 = vmatmul.mubr.bf16.gmra.mxu0 %v699_v10 }
  0xfc   : > { %993 = vmatprep.mubr.bf16.mxu0 %v702_v12  ;;  %5249 = vmatpush3.bf16.xpose.msra.mxu0 %v5517_v4 }
  0xfd   : > { %5250 = vmatprep.subr.bf16.mxu0 %v5519_v11 }
 0x103   : > { %994 = vmatmul.mubr.bf16.gmra.mxu0 %v701_v17 }
 0x104   : > { %1003 = vmatprep.mubr.bf16.mxu0 %v704_v18  ;;  %5251 = vmatpush3.bf16.xpose.msra.mxu0 %v5519_v11 }
 0x105   : > { %5252 = vmatprep.subr.bf16.mxu0 %v5521_v29 }
 0x10b   : > { %1004 = vmatmul.mubr.bf16.gmra.mxu0 %v703_v23 }
 0x10c   : > { %1013 = vmatprep.mubr.bf16.mxu0 %v706_v24  ;;  %5253 = vmatpush3.bf16.xpose.msra.mxu0 %v5521_v29 }
 0x10d   : > { %5254 = vmatprep.subr.bf16.mxu0 %v5523_v31 }
 0x113   : > { %1014 = vmatmul.mubr.bf16.gmra.mxu0 %v705_v27 }
 0x114   : > { %5255 = vmatpush3.bf16.xpose.msra.mxu0 %v5523_v31 }
 0x19b   : > { %v945_v37 = vpop.f32.mrf.mxu0 }
 0x19c   : > { %v946_v42 = vadd.f32 %v945_v37, %v6712_v38 }
 0x19d   : > { %v947_v39 = vpop.f32.mrf.mxu0 }
 0x19e   : > { %v948_v45 = vadd.f32 %v947_v39, %v6715_v40 }
 0x19f   : > { %v949_v41 = vpop.f32.mrf.mxu0 }
 0x1a0   : > { %v950_v43 = vadd.f32 %v949_v41, %v6712_v38 }
 0x1a1   : > { %v951_v44 = vpop.f32.mrf.mxu0 }
 0x1a2   : > { %v952_v46 = vadd.f32 %v951_v44, %v6715_v40  ;;  %v1024_v47 = vpack.c.bf16 %v950_v43, %v946_v42 }
 0x1a3   : > { %v955_v48 = vpop.f32.mrf.mxu0 }
 0x1a4   : > { %v1025_v49 = vpack.c.bf16 %v952_v46, %v948_v45  ;;  %5192 = vmatprep.mubr.bf16.mxu1 %v1024_v47  ;;  %v956_v52 = vadd.f32 %v955_v48, %v6712_v38 }
 0x1a5   : > { %v957_v50 = vpop.f32.mrf.mxu0 }
 0x1a6   : > { %5256 = vmatprep.mubr.bf16.mxu0 %v1025_v49  ;;  %v958_v55 = vadd.f32 %v957_v50, %v6715_v40 }
 0x1a7   : > { %v959_v51 = vpop.f32.mrf.mxu0 }
 0x1a8   : > { %v960_v53 = vadd.f32 %v959_v51, %v6712_v38 }
 0x1a9   : > { %v961_v54 = vpop.f32.mrf.mxu0 }
 0x1aa   : > { %v1026_v56 = vpack.c.bf16 %v960_v53, %v956_v52  ;;  %v962_v57 = vadd.f32 %v961_v54, %v6715_v40 }
 0x1ab   : > { %v965_v58 = vpop.f32.mrf.mxu0 }
 0x1ac   : > { %v1027_v59 = vpack.c.bf16 %v962_v57, %v958_v55  ;;  %5193 = vmatmul.mubr.bf16.vlgmr.msra.gmra.mxu1 %v1026_v56  ;;  %v966_v62 = vadd.f32 %v965_v58, %v6712_v38 }
 0x1ad   : > { %v967_v60 = vpop.f32.mrf.mxu0 }
 0x1ae   : > { %5257 = vmatmul.mubr.bf16.vlgmr.msra.gmra.mxu0 %v1027_v59  ;;  %v968_v1 = vadd.f32 %v967_v60, %v6715_v40  ;;  %v5524_v60 = vld [vmem:[%s6637_s28 + $0xe8] ss:$16 sps:$4 sm:$0xff]  }
 0x1af   : > { %v969_v61 = vpop.f32.mrf.mxu0  ;;  %5208 = vmatprep.subr.bf16.mxu1 %v5524_v60 }
 0x1b0   : > { %v970_v63 = vadd.f32 %v969_v61, %v6712_v38  ;;  %v5525_v61 = vld [vmem:[%s6637_s28 + $0xc8] ss:$16 sps:$4 sm:$0xff]   ;;  %5209 = vmatpush3.bf16.msra.mxu1 %v5524_v60 }
 0x1b1   : > { %v971_v0 = vpop.f32.mrf.mxu0  ;;  %5210 = vmatprep.subr.bf16.mxu1 %v5525_v61 }
 0x1b2   : > { %v1028_v2 = vpack.c.bf16 %v970_v63, %v966_v62  ;;  %v972_v3 = vadd.f32 %v971_v0, %v6715_v40 }
 0x1b3   : > { %v975_v4 = vpop.f32.mrf.mxu0 }
 0x1b4   : > { %v1029_v5 = vpack.c.bf16 %v972_v3, %v968_v1  ;;  %5196 = vmatprep.mubr.bf16.mxu1 %v1028_v2  ;;  %v976_v8 = vadd.f32 %v975_v4, %v6712_v38  ;;  %5211 = vmatpush3.bf16.msra.mxu1 %v5525_v61 }
 0x1b5   : > { %v977_v6 = vpop.f32.mrf.mxu0 }
 0x1b6   : > { %5260 = vmatprep.mubr.bf16.mxu0 %v1029_v5  ;;  %v978_v11 = vadd.f32 %v977_v6, %v6715_v40 }
 0x1b7   : > { %v979_v7 = vpop.f32.mrf.mxu0 }
 0x1b8   : > { %v980_v9 = vadd.f32 %v979_v7, %v6712_v38 }
 0x1b9   : > { %v981_v10 = vpop.f32.mrf.mxu0 }
 0x1ba   : > { %v1030_v12 = vpack.c.bf16 %v980_v9, %v976_v8  ;;  %v982_v13 = vadd.f32 %v981_v10, %v6715_v40  ;;  %v5526_v8 = vld [vmem:[%s6637_s28 + $0xa8] ss:$16 sps:$4 sm:$0xff]  }
 0x1bb   : > { %v985_v14 = vpop.f32.mrf.mxu0  ;;  %5212 = vmatprep.subr.bf16.mxu1 %v5526_v8 }
 0x1bc   : > { %v1031_v15 = vpack.c.bf16 %v982_v13, %v978_v11  ;;  %5197 = vmatmul.mubr.bf16.gmra.mxu1 %v1030_v12  ;;  %v986_v18 = vadd.f32 %v985_v14, %v6712_v38  ;;  %v5527_v12 = vld [vmem:[%s6637_s28 + $0x88] ss:$16 sps:$4 sm:$0xff]  }
 0x1bd   : > { %v987_v16 = vpop.f32.mrf.mxu0  ;;  %5213 = vmatpush3.bf16.msra.mxu1 %v5526_v8 }
 0x1be   : > { %5261 = vmatmul.mubr.bf16.gmra.mxu0 %v1031_v15  ;;  %v988_v21 = vadd.f32 %v987_v16, %v6715_v40  ;;  %5214 = vmatprep.subr.bf16.mxu1 %v5527_v12 }
 0x1bf   : > { %v989_v17 = vpop.f32.mrf.mxu0 }
 0x1c0   : > { %v990_v19 = vadd.f32 %v989_v17, %v6712_v38  ;;  %v5528_v17 = vld [vmem:[%s6637_s28 + $0x68] ss:$16 sps:$4 sm:$0xff]  }
 0x1c1   : > { %v991_v20 = vpop.f32.mrf.mxu0  ;;  %5215 = vmatpush3.bf16.msra.mxu1 %v5527_v12 }
 0x1c2   : > { %v1032_v22 = vpack.c.bf16 %v990_v19, %v986_v18  ;;  %v992_v23 = vadd.f32 %v991_v20, %v6715_v40  ;;  %v5529_v18 = vld [vmem:[%s6637_s28 + $0x48] ss:$16 sps:$4 sm:$0xff]   ;;  %5216 = vmatprep.subr.bf16.mxu1 %v5528_v17 }
 0x1c3   : > { %v995_v24 = vpop.f32.mrf.mxu0 }
 0x1c4   : > { %v1033_v25 = vpack.c.bf16 %v992_v23, %v988_v21  ;;  %5200 = vmatprep.mubr.bf16.mxu1 %v1032_v22  ;;  %v996_v28 = vadd.f32 %v995_v24, %v6712_v38  ;;  %v5530_v21 = vld [vmem:[%s6637_s28 + $0x28] ss:$16 sps:$4 sm:$0xff]  }
 0x1c5   : > { %v997_v26 = vpop.f32.mrf.mxu0  ;;  %5217 = vmatpush3.bf16.msra.mxu1 %v5528_v17 }
 0x1c6   : > { %5264 = vmatprep.mubr.bf16.mxu0 %v1033_v25  ;;  %v998_v31 = vadd.f32 %v997_v26, %v6715_v40  ;;  %5218 = vmatprep.subr.bf16.mxu1 %v5529_v18 }
 0x1c7   : > { %v999_v27 = vpop.f32.mrf.mxu0 }
 0x1c8   : > { %v1000_v29 = vadd.f32 %v999_v27, %v6712_v38  ;;  %v5531_v27 = vld [vmem:[%s6637_s28 + $0x8] ss:$16 sps:$4 sm:$0xff]  }
 0x1c9   : > { %v1001_v30 = vpop.f32.mrf.mxu0  ;;  %5219 = vmatpush3.bf16.msra.mxu1 %v5529_v18 }
 0x1ca   : > { %v1034_v32 = vpack.c.bf16 %v1000_v29, %v996_v28  ;;  %v1002_v35 = vadd.f32 %v1001_v30, %v6715_v40  ;;  %5220 = vmatprep.subr.bf16.mxu1 %v5530_v21 }
 0x1cb   : > { %v1005_v37 = vpop.f32.mrf.mxu0 }
 0x1cc   : > { %v1035_v39 = vpack.c.bf16 %v1002_v35, %v998_v31  ;;  %5201 = vmatmul.mubr.bf16.gmra.mxu1 %v1034_v32  ;;  %v1006_v43 = vadd.f32 %v1005_v37, %v6712_v38 }
 0x1cd   : > { %v1007_v41 = vpop.f32.mrf.mxu0  ;;  %5221 = vmatpush3.bf16.msra.mxu1 %v5530_v21 }
 0x1ce   : > { %5265 = vmatmul.mubr.bf16.gmra.mxu0 %v1035_v39  ;;  %v1008_v46 = vadd.f32 %v1007_v41, %v6715_v40  ;;  %5222 = vmatprep.subr.bf16.mxu1 %v5531_v27 }
 0x1cf   : > { %v1009_v42 = vpop.f32.mrf.mxu0 }
 0x1d0   : > { %v1010_v44 = vadd.f32 %v1009_v42, %v6712_v38 }
 0x1d1   : > { %v1011_v45 = vpop.f32.mrf.mxu0  ;;  %5223 = vmatpush3.bf16.msra.mxu1 %v5531_v27 }
 0x1d2   : > { %v1036_v47 = vpack.c.bf16 %v1010_v44, %v1006_v43  ;;  %v1012_v48 = vadd.f32 %v1011_v45, %v6715_v40 }
 0x1d3   : > { %v1015_v49 = vpop.f32.mrf.mxu0 }
 0x1d4   : > { %v1037_v50 = vpack.c.bf16 %v1012_v48, %v1008_v46  ;;  %5204 = vmatprep.mubr.bf16.mxu1 %v1036_v47  ;;  %v1016_v53 = vadd.f32 %v1015_v49, %v6712_v38 }
 0x1d5   : > { %v1017_v51 = vpop.f32.mrf.mxu0 }
 0x1d6   : > { %5268 = vmatprep.mubr.bf16.mxu0 %v1037_v50  ;;  %v1018_v56 = vadd.f32 %v1017_v51, %v6715_v40 }
 0x1d7   : > { %v1019_v52 = vpop.f32.mrf.mxu0 }
 0x1d8   : > { %v1020_v54 = vadd.f32 %v1019_v52, %v6712_v38  ;;  %v1040_v38 = vld [vmem:[%s656_s13] sm:$0x1] }
 0x1d9   : > { %v1021_v55 = vpop.f32.mrf.mxu0  ;;  %v1041_v62 = vsub.f32 1.0, %v1040_v38 }
 0x1da   : > { %v1038_v57 = vpack.c.bf16 %v1020_v54, %v1016_v53  ;;  %v1022_v58 = vadd.f32 %v1021_v55, %v6715_v40 }
 0x1db   : > { %v1042_v63 = vmul.f32 -1e+09, %v1041_v62 }
 0x1dc   : > { %v1039_v59 = vpack.c.bf16 %v1022_v58, %v1018_v56  ;;  %5205 = vmatmul.mubr.bf16.gmra.mxu1 %v1038_v57 }
 0x1dd   : > { %v6757_v40 = vrot.slane %v1042_v63, %v6706_v34 }
 0x1de   : > { %5269 = vmatmul.mubr.bf16.gmra.mxu0 %v1039_v59  ;;  %v6848_v59 = vld [vmem:[%s6637_s28 + $0xec] ss:$16 sps:$4 sm:$0xff]  }
 0x1df   : > { %5272 = vmatprep.subr.bf16.mxu1 %v6848_v59 }
 0x26c   : > { %v5194_v0 = vpop.f32.mrf.mxu1 }
 0x26d   : > { %v6760_v1 = vadd.f32 %v5194_v0, %v6757_v40 }
 0x26e   : > { %v1163_v2 = vpop.f32.mrf.mxu1  ;;  %v5258_v20 = vpop.f32.mrf.mxu0 }
 0x26f   : > { %v6763_v3 = vadd.f32 %v1163_v2, %v6757_v40  ;;  %1230 = vmax.xlane.f32.xlu1 %v6760_v1  ;;  %v6834_v54 = vadd.f32 %v5258_v20, %v6757_v40 }
 0x270   : > { %v5195_v4 = vpop.f32.mrf.mxu1  ;;  %v1741_v23 = vpop.f32.mrf.mxu0 }
 0x271   : > { %v6767_v5 = vadd.f32 %v5195_v4, %v6757_v40  ;;  %1226 = vmax.xlane.f32.xlu0 %v6763_v3  ;;  %v6826_v51 = vadd.f32 %v1741_v23, %v6757_v40 }
 0x272   : > { %v1166_v6 = vpop.f32.mrf.mxu1  ;;  %v5259_v28 = vpop.f32.mrf.mxu0 }
 0x273   : > { %1232 = vmax.xlane.f32.xlu1 %v6767_v5  ;;  %v6772_v7 = vadd.f32 %v1166_v6, %v6757_v40  ;;  %v6842_v57 = vadd.f32 %v5259_v28, %v6757_v40 }
 0x274   : > { %v1744_v32 = vpop.f32.mrf.mxu0 }
 0x275   : > { %1228 = vmax.xlane.f32.xlu0 %v6772_v7  ;;  %v6837_v55 = vadd.f32 %v1744_v32, %v6757_v40 }
 0x27c   : > { %v5198_v9 = vpop.f32.mrf.mxu1 }
 0x27d   : > { %v6782_v15 = vadd.f32 %v5198_v9, %v6757_v40 }
 0x27e   : > { %v1179_v10 = vpop.f32.mrf.mxu1  ;;  %v5262_v37 = vpop.f32.mrf.mxu0 }
 0x27f   : > { %v6777_v11 = vadd.f32 %v1179_v10, %v6757_v40  ;;  %v6854_v61 = vadd.f32 %v5262_v37, %v6757_v40 }
 0x280   : > { %v5199_v13 = vpop.f32.mrf.mxu1  ;;  %v1757_v39 = vpop.f32.mrf.mxu0 }
 0x281   : > { %1234 = vmax.xlane.f32.xlu0 %v6777_v11  ;;  %v6792_v19 = vadd.f32 %v5199_v13, %v6757_v40  ;;  %v6845_v58 = vadd.f32 %v1757_v39, %v6757_v40 }
 0x282   : > { %v1182_v14 = vpop.f32.mrf.mxu1  ;;  %v5263_v44 = vpop.f32.mrf.mxu0 }
 0x283   : > { %v6785_v16 = vadd.f32 %v1182_v14, %v6757_v40  ;;  %v6862_v63 = vadd.f32 %v5263_v44, %v6757_v40 }
 0x284   : > { %v1760_v49 = vpop.f32.mrf.mxu0 }
 0x285   : > { %1236 = vmax.xlane.f32.xlu1 %v6785_v16  ;;  %1238 = vmax.xlane.f32.xlu0 %v6782_v15  ;;  %v6857_v38 = vadd.f32 %v1760_v49, %v6757_v40 }
 0x289   : > { %1240 = vmax.xlane.f32.xlu1 %v6792_v19 }
 0x28c   : > { %v5202_v22 = vpop.f32.mrf.mxu1 }
 0x28d   : > { %v6802_v30 = vadd.f32 %v5202_v22, %v6757_v40 }
 0x28e   : > { %v1195_v24 = vpop.f32.mrf.mxu1  ;;  %v5266_v50 = vpop.f32.mrf.mxu0 }
 0x28f   : > { %v6797_v25 = vadd.f32 %v1195_v24, %v6757_v40  ;;  %v6870_v4 = vadd.f32 %v5266_v50, %v6757_v40 }
 0x290   : > { %v5203_v26 = vpop.f32.mrf.mxu1  ;;  %v1773_v53 = vpop.f32.mrf.mxu0 }
 0x291   : > { %1242 = vmax.xlane.f32.xlu0 %v6797_v25  ;;  %v6810_v35 = vadd.f32 %v5203_v26, %v6757_v40  ;;  %v6865_v0 = vadd.f32 %v1773_v53, %v6757_v40 }
 0x292   : > { %v1198_v29 = vpop.f32.mrf.mxu1  ;;  %v5267_v56 = vpop.f32.mrf.mxu0 }
 0x293   : > { %v6805_v31 = vadd.f32 %v1198_v29, %v6757_v40  ;;  %v6878_v9 = vadd.f32 %v5267_v56, %v6757_v40  ;;  %v5533_v56 = vld [vmem:[%s6637_s28 + $0xcc] ss:$16 sps:$4 sm:$0xff]  }
 0x294   : > { %v1776_v60 = vpop.f32.mrf.mxu0 }
 0x295   : > { %1244 = vmax.xlane.f32.xlu1 %v6805_v31  ;;  %1246 = vmax.xlane.f32.xlu0 %v6802_v30  ;;  %v6873_v6 = vadd.f32 %v1776_v60, %v6757_v40 }
 0x299   : > { %1248 = vmax.xlane.f32.xlu1 %v6810_v35 }
 0x29c   : > { %v5206_v41 = vpop.f32.mrf.mxu1 }
 0x29d   : > { %v6818_v47 = vadd.f32 %v5206_v41, %v6757_v40 }
 0x29e   : > { %v1211_v42 = vpop.f32.mrf.mxu1  ;;  %v5270_v62 = vpop.f32.mrf.mxu0 }
 0x29f   : > { %v6814_v43 = vadd.f32 %v1211_v42, %v6757_v40  ;;  %v6886_v13 = vadd.f32 %v5270_v62, %v6757_v40  ;;  %v5534_v62 = vld [vmem:[%s6637_s28 + $0xac] ss:$16 sps:$4 sm:$0xff]  }
 0x2a0   : > { %v5207_v45 = vpop.f32.mrf.mxu1  ;;  %v1789_v2 = vpop.f32.mrf.mxu0 }
 0x2a1   : > { %1250 = vmax.xlane.f32.xlu0 %v6814_v43  ;;  %v6829_v52 = vadd.f32 %v5207_v45, %v6757_v40  ;;  %v6881_v10 = vadd.f32 %v1789_v2, %v6757_v40 }
 0x2a2   : > { %v1214_v46 = vpop.f32.mrf.mxu1  ;;  %v5271_v8 = vpop.f32.mrf.mxu0 }
 0x2a3   : > { %v6821_v48 = vadd.f32 %v1214_v46, %v6757_v40  ;;  %v6894_v17 = vadd.f32 %v5271_v8, %v6757_v40  ;;  %v5535_v8 = vld [vmem:[%s6637_s28 + $0x8c] ss:$16 sps:$4 sm:$0xff]  }
 0x2a4   : > { %v1792_v12 = vpop.f32.mrf.mxu0 }
 0x2a5   : > { %1252 = vmax.xlane.f32.xlu1 %v6821_v48  ;;  %1254 = vmax.xlane.f32.xlu0 %v6818_v47  ;;  %v6889_v14 = vadd.f32 %v1792_v12, %v6757_v40 }
 0x2a9   : > { %1256 = vmax.xlane.f32.xlu1 %v6829_v52  ;;  %1804 = vmax.xlane.f32.xlu0 %v6826_v51 }
 0x2ad   : > { %1806 = vmax.xlane.f32.xlu1 %v6837_v55  ;;  %1808 = vmax.xlane.f32.xlu0 %v6834_v54 }
 0x2b1   : > { %1810 = vmax.xlane.f32.xlu1 %v6842_v57  ;;  %1812 = vmax.xlane.f32.xlu0 %v6845_v58 }
 0x2b5   : > { %1814 = vmax.xlane.f32.xlu1 %v6857_v38  ;;  %1816 = vmax.xlane.f32.xlu0 %v6854_v61 }
 0x2b9   : > { %1818 = vmax.xlane.f32.xlu1 %v6862_v63  ;;  %1820 = vmax.xlane.f32.xlu0 %v6865_v0 }
 0x2bd   : > { %1822 = vmax.xlane.f32.xlu1 %v6873_v6  ;;  %1824 = vmax.xlane.f32.xlu0 %v6870_v4 }
 0x2c1   : > { %1826 = vmax.xlane.f32.xlu1 %v6878_v9  ;;  %1828 = vmax.xlane.f32.xlu0 %v6881_v10 }
 0x2c5   : > { %1830 = vmax.xlane.f32.xlu1 %v6889_v14  ;;  %1832 = vmax.xlane.f32.xlu0 %v6886_v13 }
 0x2c9   : > { %1834 = vmax.xlane.f32.xlu1 %v6894_v17 }
 0x2f8   : > { %v6897_v18 = vpop.xlane.xlu1 %1230 }
 0x2f9   : > { %v1308_v23 = vsub.f32 %v6760_v1, %v6897_v18 }
 0x2fa   : > { %v6899_v20 = vpop.xlane.xlu0 %1226 }
 0x2fb   : > { %v1306_v21 = vsub.f32 %v6763_v3, %v6899_v20  ;;  %v1326_v29 = vmul.f32 1.442695, %v1308_v23 }
 0x2fc   : > { %v6903_v22 = vpop.xlane.xlu1 %1232 }
 0x2fd   : > { %v1322_v24 = vmul.f32 1.442695, %v1306_v21  ;;  %v1309_v26 = vsub.f32 %v6767_v5, %v6903_v22 }
 0x2fe   : > { %v6909_v40 = vpop.xlane.xlu0 %1228 }
 0x2ff   : > { %v1307_v27 = vsub.f32 %v6772_v7, %v6909_v40  ;;  %v1328_v28 = vmul.f32 1.442695, %v1309_v26  ;;  %5780 = vpow2.f32 %v1322_v24  ;;  %v5536_v24 = vld [vmem:[%s6637_s28 + $0x6c] ss:$16 sps:$4 sm:$0xff]  }
 0x301   : > { %v1324_v32 = vmul.f32 1.442695, %v1307_v27  ;;  %5782 = vpow2.f32 %v1328_v28 }
 0x303   : > { %5784 = vpow2.f32 %v1324_v32 }
 0x304   : > { %5786 = vpow2.f32 %v1326_v29 }
 0x30a   : > { %v6913_v3 = vpop.xlane.xlu0 %1234 }
 0x30b   : > { %v1310_v1 = vsub.f32 %v6777_v11, %v6913_v3 }
 0x30c   : > { %v6921_v39 = vpop.eup %5780 }
 0x30d   : > { %v1330_v7 = vmul.f32 1.442695, %v1310_v1 }
 0x30e   : > { %v6917_v37 = vpop.xlane.xlu1 %1236  ;;  %v6919_v5 = vpop.xlane.xlu0 %1238 }
 0x30f   : > { %v1311_v41 = vsub.f32 %v6785_v16, %v6917_v37  ;;  %v6925_v42 = vpop.eup %5782  ;;  %v1312_v44 = vsub.f32 %v6782_v15, %v6919_v5  ;;  %5788 = vpow2.f32 %v1330_v7  ;;  %v5537_v7 = vld [vmem:[%s6637_s28 + $0x4c] ss:$16 sps:$4 sm:$0xff]  }
 0x310   : > { %v6929_v45 = vpop.eup %5784 }
 0x311   : > { %v1332_v46 = vmul.f32 1.442695, %v1311_v41  ;;  %v6931_v11 = vpop.eup %5786  ;;  %v1418_v50 = vpack.c.bf16 %v6929_v45, %v6921_v39  ;;  %v1334_v53 = vmul.f32 1.442695, %v1312_v44 }
 0x312   : > { %v6933_v49 = vpop.xlane.xlu1 %1240  ;;  %v1419_v15 = vpack.c.bf16 %v6925_v42, %v6931_v11 }
 0x313   : > { %v1313_v16 = vsub.f32 %v6792_v19, %v6933_v49  ;;  %5790 = vpow2.f32 %v1332_v46  ;;  %5224 = vmatprep.mubr.bf16.mxu1 %v1418_v50  ;;  %v5538_v50 = vld [vmem:[%s6637_s28 + $0x2c] ss:$16 sps:$4 sm:$0xff]  }
 0x314   : > { %5225 = vmatmul.mubr.bf16.vlgmr.msra.gmra.mxu1 %v1419_v15  ;;  %5792 = vpow2.f32 %v1334_v53 }
 0x315   : > { %v1336_v60 = vmul.f32 1.442695, %v1313_v16  ;;  %5273 = vmatpush3.bf16.msra.mxu1 %v6848_v59  ;;  %v5539_v16 = vld [vmem:[%s6637_s28 + $0xc] ss:$16 sps:$4 sm:$0xff]  }
 0x316   : > { %5274 = vmatprep.subr.bf16.mxu1 %v5533_v56 }
 0x317   : > { %5794 = vpow2.f32 %v1336_v60 }
 0x319   : > { %5275 = vmatpush3.bf16.msra.mxu1 %v5533_v56 }
 0x31a   : > { %v6944_v2 = vpop.xlane.xlu0 %1242  ;;  %5276 = vmatprep.subr.bf16.mxu1 %v5534_v62 }
 0x31b   : > { %v1314_v19 = vsub.f32 %v6797_v25, %v6944_v2 }
 0x31c   : > { %v6956_v26 = vpop.eup %5788 }
 0x31d   : > { %5277 = vmatpush3.bf16.msra.mxu1 %v5534_v62  ;;  %v1338_v59 = vmul.f32 1.442695, %v1314_v19 }
 0x31e   : > { %v6949_v12 = vpop.xlane.xlu1 %1244  ;;  %v6951_v21 = vpop.xlane.xlu0 %1246  ;;  %5278 = vmatprep.subr.bf16.mxu1 %v5535_v8 }
 0x31f   : > { %v1315_v23 = vsub.f32 %v6805_v31, %v6949_v12  ;;  %v1316_v27 = vsub.f32 %v6802_v30, %v6951_v21  ;;  %5796 = vpow2.f32 %v1338_v59 }
 0x320   : > { %v6960_v25 = vpop.eup %5790 }
 0x321   : > { %v1340_v28 = vmul.f32 1.442695, %v1315_v23  ;;  %v1420_v32 = vpack.c.bf16 %v6960_v25, %v6956_v26  ;;  %5279 = vmatpush3.bf16.msra.mxu1 %v5535_v8  ;;  %v1342_v1 = vmul.f32 1.442695, %v1316_v27  ;;  %v6969_v41 = vpop.eup %5792 }
 0x322   : > { %v6962_v29 = vpop.xlane.xlu1 %1248  ;;  %5280 = vmatprep.subr.bf16.mxu1 %v5536_v24 }
 0x323   : > { %v1317_v31 = vsub.f32 %v6810_v35, %v6962_v29  ;;  %5798 = vpow2.f32 %v1340_v28  ;;  %5228 = vmatprep.mubr.bf16.mxu1 %v1420_v32 }
 0x324   : > { %v6971_v30 = vpop.eup %5794  ;;  %5800 = vpow2.f32 %v1342_v1 }
 0x325   : > { %v1344_v44 = vmul.f32 1.442695, %v1317_v31  ;;  %v1421_v46 = vpack.c.bf16 %v6971_v30, %v6969_v41  ;;  %5281 = vmatpush3.bf16.msra.mxu1 %v5536_v24 }
 0x326   : > { %5282 = vmatprep.subr.bf16.mxu1 %v5537_v7 }
 0x327   : > { %5802 = vpow2.f32 %v1344_v44  ;;  %5229 = vmatmul.mubr.bf16.gmra.mxu1 %v1421_v46 }
 0x329   : > { %5283 = vmatpush3.bf16.msra.mxu1 %v5537_v7 }
 0x32a   : > { %v6976_v35 = vpop.xlane.xlu0 %1250  ;;  %5284 = vmatprep.subr.bf16.mxu1 %v5538_v50 }
 0x32b   : > { %v1318_v53 = vsub.f32 %v6814_v43, %v6976_v35 }
 0x32c   : > { %v6987_v19 = vpop.eup %5796 }
 0x32d   : > { %5285 = vmatpush3.bf16.msra.mxu1 %v5538_v50  ;;  %v1346_v60 = vmul.f32 1.442695, %v1318_v53 }
 0x32e   : > { %v6981_v15 = vpop.xlane.xlu1 %1252  ;;  %v6983_v56 = vpop.xlane.xlu0 %1254  ;;  %5286 = vmatprep.subr.bf16.mxu1 %v5539_v16 }
 0x32f   : > { %v1319_v62 = vsub.f32 %v6821_v48, %v6981_v15  ;;  %v1320_v8 = vsub.f32 %v6818_v47, %v6983_v56  ;;  %5804 = vpow2.f32 %v1346_v60 }
 0x330   : > { %v6991_v59 = vpop.eup %5798 }
 0x331   : > { %v1348_v43 = vmul.f32 1.442695, %v1319_v62  ;;  %v1422_v27 = vpack.c.bf16 %v6991_v59, %v6987_v19  ;;  %5287 = vmatpush3.bf16.msra.mxu1 %v5539_v16  ;;  %v1350_v28 = vmul.f32 1.442695, %v1320_v8  ;;  %v7001_v32 = vpop.eup %5800 }
 0x332   : > { %v6993_v23 = vpop.xlane.xlu1 %1256  ;;  %v6995_v24 = vpop.xlane.xlu0 %1804 }
 0x333   : > { %v1321_v48 = vsub.f32 %v6829_v52, %v6993_v23  ;;  %5806 = vpow2.f32 %v1348_v43  ;;  %v1884_v47 = vsub.f32 %v6826_v51, %v6995_v24  ;;  %5232 = vmatprep.mubr.bf16.mxu1 %v1422_v27 }
 0x334   : > { %v7005_v1 = vpop.eup %5802  ;;  %5808 = vpow2.f32 %v1350_v28 }
 0x335   : > { %v1352_v31 = vmul.f32 1.442695, %v1321_v48  ;;  %v1900_v7 = vmul.f32 1.442695, %v1884_v47  ;;  %v1423_v50 = vpack.c.bf16 %v7005_v1, %v7001_v32 }
 0x336   : > { %v7007_v44 = vpop.xlane.xlu1 %1806  ;;  %v7009_v46 = vpop.xlane.xlu0 %1808 }
 0x337   : > { %v1885_v52 = vsub.f32 %v6837_v55, %v7007_v44  ;;  %5810 = vpow2.f32 %v1352_v31  ;;  %v1886_v51 = vsub.f32 %v6834_v54, %v7009_v46  ;;  %5233 = vmatmul.mubr.bf16.gmra.mxu1 %v1423_v50 }
 0x338   : > { %5812 = vpow2.f32 %v1900_v7 }
 0x339   : > { %v1902_v53 = vmul.f32 1.442695, %v1885_v52  ;;  %v1904_v62 = vmul.f32 1.442695, %v1886_v51 }
 0x33a   : > { %v7017_v16 = vpop.xlane.xlu1 %1810  ;;  %v7019_v60 = vpop.xlane.xlu0 %1812 }
 0x33b   : > { %v1887_v8 = vsub.f32 %v6842_v57, %v7017_v16  ;;  %5814 = vpow2.f32 %v1902_v53  ;;  %v1888_v43 = vsub.f32 %v6845_v58, %v7019_v60 }
 0x33c   : > { %5816 = vpow2.f32 %v1904_v62  ;;  %v7031_v47 = vpop.eup %5804 }
 0x33d   : > { %v1906_v55 = vmul.f32 1.442695, %v1887_v8  ;;  %v1908_v54 = vmul.f32 1.442695, %v1888_v43 }
 0x33e   : > { %v7025_v27 = vpop.xlane.xlu1 %1814  ;;  %v7027_v28 = vpop.xlane.xlu0 %1816 }
 0x33f   : > { %v1889_v48 = vsub.f32 %v6857_v38, %v7025_v27  ;;  %5818 = vpow2.f32 %v1906_v55  ;;  %v1890_v57 = vsub.f32 %v6854_v61, %v7027_v28 }
 0x340   : > { %v7035_v31 = vpop.eup %5806  ;;  %5820 = vpow2.f32 %v1908_v54 }
 0x341   : > { %v1910_v7 = vmul.f32 1.442695, %v1889_v48  ;;  %v1424_v52 = vpack.c.bf16 %v7035_v31, %v7031_v47  ;;  %v1912_v51 = vmul.f32 1.442695, %v1890_v57  ;;  %v7045_v53 = vpop.eup %5808 }
 0x342   : > { %v7037_v58 = vpop.xlane.xlu1 %1818  ;;  %v7039_v50 = vpop.xlane.xlu0 %1820 }
 0x343   : > { %v1891_v38 = vsub.f32 %v6862_v63, %v7037_v58  ;;  %5822 = vpow2.f32 %v1910_v7  ;;  %v1892_v61 = vsub.f32 %v6865_v0, %v7039_v50  ;;  %5236 = vmatprep.mubr.bf16.mxu1 %v1424_v52 }
 0x344   : > { %v7049_v62 = vpop.eup %5810  ;;  %5824 = vpow2.f32 %v1912_v51 }
 0x345   : > { %v1914_v8 = vmul.f32 1.442695, %v1891_v38  ;;  %v1425_v54 = vpack.c.bf16 %v7049_v62, %v7045_v53  ;;  %v5813_v48 = vpop.eup %5812  ;;  %v1916_v63 = vmul.f32 1.442695, %v1892_v61 }
 0x346   : > { %v7051_v43 = vpop.xlane.xlu1 %1822  ;;  %v7053_v55 = vpop.xlane.xlu0 %1824  ;;  %1948 = vadd.xlane.f32.xlu0 %v5813_v48 }
 0x347   : > { %v1893_v57 = vsub.f32 %v6873_v6, %v7051_v43  ;;  %5826 = vpow2.f32 %v1914_v8  ;;  %v1894_v0 = vsub.f32 %v6870_v4, %v7053_v55  ;;  %5237 = vmatmul.mubr.bf16.gmra.mxu1 %v1425_v54 }
 0x348   : > { %v5815_v7 = vpop.eup %5814  ;;  %5828 = vpow2.f32 %v1916_v63 }
 0x349   : > { %v1918_v52 = vmul.f32 1.442695, %v1893_v57  ;;  %1950 = vadd.xlane.f32.xlu1 %v5815_v7  ;;  %v1996_v36 = vpack.c.bf16 %v5815_v7, %v5813_v48  ;;  %v1920_v51 = vmul.f32 1.442695, %v1894_v0  ;;  %v5817_v6 = vpop.eup %5816 }
 0x34a   : > { %v7061_v38 = vpop.xlane.xlu1 %1826  ;;  %v7063_v33 = vpop.xlane.xlu0 %1828  ;;  %1370 = vadd.xlane.f32.xlu0 %v6921_v39 }
 0x34b   : > { %v1895_v61 = vsub.f32 %v6878_v9, %v7061_v38  ;;  %5830 = vpow2.f32 %v1918_v52  ;;  %v1896_v4 = vsub.f32 %v6881_v10, %v7063_v33  ;;  %5288 = vmatprep.mubr.bf16.mxu1 %v1996_v36 }
 0x34c   : > { %v5819_v8 = vpop.eup %5818  ;;  %5832 = vpow2.f32 %v1920_v51 }
 0x34d   : > { %v1922_v54 = vmul.f32 1.442695, %v1895_v61  ;;  %1372 = vadd.xlane.f32.xlu1 %v6929_v45  ;;  %v1997_v63 = vpack.c.bf16 %v5819_v8, %v5817_v6  ;;  %v1924_v0 = vmul.f32 1.442695, %v1896_v4  ;;  %v5821_v7 = vpop.eup %5820 }
 0x34e   : > { %v7071_v57 = vpop.xlane.xlu1 %1830  ;;  %v7073_v48 = vpop.xlane.xlu0 %1832  ;;  %1952 = vadd.xlane.f32.xlu0 %v5817_v6 }
 0x34f   : > { %v1897_v9 = vsub.f32 %v6889_v14, %v7071_v57  ;;  %5834 = vpow2.f32 %v1922_v54  ;;  %v1898_v36 = vsub.f32 %v6886_v13, %v7073_v48  ;;  %5289 = vmatmul.mubr.bf16.vlgmr.msra.gmra.mxu1 %v1997_v63 }
 0x350   : > { %v5823_v10 = vpop.eup %5822  ;;  %5836 = vpow2.f32 %v1924_v0 }
 0x351   : > { %v1926_v39 = vmul.f32 1.442695, %v1897_v9  ;;  %1954 = vadd.xlane.f32.xlu1 %v5819_v8  ;;  %v1998_v52 = vpack.c.bf16 %v5823_v10, %v5821_v7  ;;  %v1928_v61 = vmul.f32 1.442695, %v1898_v36  ;;  %v5825_v4 = vpop.eup %5824  ;;  %v5542_v9 = vld [vmem:[#allocation10 + $0x74] ss:$8 sps:$4 sm:$0xff]  }
 0x352   : > { %v7079_v45 = vpop.xlane.xlu1 %1834  ;;  %1374 = vadd.xlane.f32.xlu0 %v6931_v11  ;;  %v5540_v36 = vld [vmem:[#allocation10 + $0x70] ss:$8 sps:$4 sm:$0xff]   ;;  %2409 = vmatprep.subr.bf16.mxu0 %v5542_v9  ;;  %v5573_v9 = vld [vmem:[#allocation10 + $0xc0] ss:$8 sps:$4 sm:$0xff]  }
 0x353   : > { %v1899_v51 = vsub.f32 %v6894_v17, %v7079_v45  ;;  %5838 = vpow2.f32 %v1926_v39  ;;  %5292 = vmatprep.mubr.bf16.mxu1 %v1998_v52  ;;  %2410 = vmatpush1.bf16.msra.mxu0 %v5540_v36  ;;  %v5543_v52 = vld [vmem:[#allocation10 + $0x60] ss:$8 sps:$4 sm:$0xff]   ;;  %v5578_v36 = vld [vmem:[#allocation10 + $0xb4] ss:$8 sps:$4 sm:$0xff]  }
 0x354   : > { %v5827_v14 = vpop.eup %5826  ;;  %5840 = vpow2.f32 %v1928_v61 }
 0x355   : > { %v1930_v6 = vmul.f32 1.442695, %v1899_v51  ;;  %1376 = vadd.xlane.f32.xlu1 %v6925_v42  ;;  %v1999_v13 = vpack.c.bf16 %v5827_v14, %v5825_v4  ;;  %v5829_v8 = vpop.eup %5828  ;;  %v5548_v51 = vld [vmem:[#allocation10 + $0x54] ss:$8 sps:$4 sm:$0xff]  }
 0x356   : > { %1956 = vadd.xlane.f32.xlu0 %v5821_v7 }
 0x357   : > { %5842 = vpow2.f32 %v1930_v6  ;;  %5293 = vmatmul.mubr.bf16.gmra.mxu1 %v1999_v13  ;;  %v5549_v6 = vld [vmem:[#allocation10 + $0x40] ss:$8 sps:$4 sm:$0xff]   ;;  %v5552_v13 = vld [vmem:[#allocation10 + $0x30] ss:$8 sps:$4 sm:$0xff]  }
 0x358   : > { %v5831_v54 = vpop.eup %5830 }
 0x359   : > { %1958 = vadd.xlane.f32.xlu1 %v5823_v10  ;;  %v2000_v63 = vpack.c.bf16 %v5831_v54, %v5829_v8  ;;  %v5833_v0 = vpop.eup %5832  ;;  %v5545_v10 = vld [vmem:[#allocation10 + $0x64] ss:$8 sps:$4 sm:$0xff]  }
 0x35a   : > { %1378 = vadd.xlane.f32.xlu0 %v6956_v26  ;;  %2411 = vmatprep.subr.bf16.mxu0 %v5545_v10  ;;  %v5582_v10 = vld [vmem:[#allocation10 + $0x90] ss:$8 sps:$4 sm:$0xff]  }
 0x35b   : > { %5296 = vmatprep.mubr.bf16.mxu1 %v2000_v63  ;;  %2412 = vmatpush1.bf16.msra.mxu0 %v5543_v52  ;;  %v5561_v63 = vld [vmem:[#allocation10] ss:$8 sps:$4 sm:$0xff]  }
 0x35c   : > { %v5835_v17 = vpop.eup %5834  ;;  %2413 = vmatprep.subr.bf16.mxu0 %v5548_v51  ;;  %v5585_v52 = vld [vmem:[#allocation10 + $0x80] ss:$8 sps:$4 sm:$0xff]  }
 0x35d   : > { %1380 = vadd.xlane.f32.xlu1 %v6960_v25  ;;  %v2001_v11 = vpack.c.bf16 %v5835_v17, %v5833_v0  ;;  %v5837_v42 = vpop.eup %5836 }
 0x35e   : > { %1960 = vadd.xlane.f32.xlu0 %v5825_v4  ;;  %v5546_v4 = vld [vmem:[#allocation10 + $0x50] ss:$8 sps:$4 sm:$0xff]  }
 0x35f   : > { %5297 = vmatmul.mubr.bf16.gmra.mxu1 %v2001_v11  ;;  %2414 = vmatpush1.bf16.msra.mxu0 %v5546_v4  ;;  %v5572_v11 = vld [vmem:[#allocation10 + $0xd4] ss:$8 sps:$4 sm:$0xff]  }
 0x360   : > { %v5839_v39 = vpop.eup %5838 }
 0x361   : > { %1962 = vadd.xlane.f32.xlu1 %v5827_v14  ;;  %v2002_v7 = vpack.c.bf16 %v5839_v39, %v5837_v42  ;;  %v5841_v61 = vpop.eup %5840  ;;  %v5551_v14 = vld [vmem:[#allocation10 + $0x44] ss:$8 sps:$4 sm:$0xff]  }
 0x362   : > { %1382 = vadd.xlane.f32.xlu0 %v6969_v41  ;;  %2415 = vmatprep.subr.bf16.mxu0 %v5551_v14  ;;  %v5554_v41 = vld [vmem:[#allocation10 + $0x34] ss:$8 sps:$4 sm:$0xff]  }
 0x363   : > { %5300 = vmatprep.mubr.bf16.mxu1 %v2002_v7  ;;  %2416 = vmatpush1.bf16.msra.mxu0 %v5549_v6  ;;  %v5579_v7 = vld [vmem:[#allocation10 + $0xa0] ss:$8 sps:$4 sm:$0xff]  }
 0x364   : > { %v5843_v26 = vpop.eup %5842  ;;  %2417 = vmatprep.subr.bf16.mxu0 %v5554_v41 }
 0x365   : > { %1384 = vadd.xlane.f32.xlu1 %v6971_v30  ;;  %v2003_v25 = vpack.c.bf16 %v5843_v26, %v5841_v61  ;;  %v5557_v30 = vld [vmem:[#allocation10 + $0x24] ss:$8 sps:$4 sm:$0xff]  }
 0x366   : > { %1964 = vadd.xlane.f32.xlu0 %v5829_v8  ;;  %v5555_v8 = vld [vmem:[#allocation10 + $0x20] ss:$8 sps:$4 sm:$0xff]  }
 0x367   : > { %5301 = vmatmul.mubr.bf16.gmra.mxu1 %v2003_v25  ;;  %2418 = vmatpush1.bf16.msra.mxu0 %v5552_v13 }
 0x368   : > { %2419 = vmatprep.subr.bf16.mxu0 %v5557_v30 }
 0x369   : > { %1966 = vadd.xlane.f32.xlu1 %v5831_v54  ;;  %v5560_v54 = vld [vmem:[#allocation10 + $0x14] ss:$8 sps:$4 sm:$0xff]  }
 0x36a   : > { %1386 = vadd.xlane.f32.xlu0 %v6987_v19  ;;  %v5558_v19 = vld [vmem:[#allocation10 + $0x10] ss:$8 sps:$4 sm:$0xff]  }
 0x36b   : > { %2420 = vmatpush1.bf16.msra.mxu0 %v5555_v8 }
 0x36c   : > { %2421 = vmatprep.subr.bf16.mxu0 %v5560_v54 }
 0x36d   : > { %1388 = vadd.xlane.f32.xlu1 %v6991_v59  ;;  %v5563_v59 = vld [vmem:[#allocation10 + $0x4] ss:$8 sps:$4 sm:$0xff]  }
 0x36e   : > { %1968 = vadd.xlane.f32.xlu0 %v5833_v0  ;;  %v5566_v0 = vld [vmem:[#allocation10 + $0xf4] ss:$8 sps:$4 sm:$0xff]  }
 0x36f   : > { %2422 = vmatpush1.bf16.msra.mxu0 %v5558_v19 }
 0x370   : > { %2423 = vmatprep.subr.bf16.mxu0 %v5563_v59 }
 0x371   : > { %1970 = vadd.xlane.f32.xlu1 %v5835_v17  ;;  %v5567_v17 = vld [vmem:[#allocation10 + $0xe0] ss:$8 sps:$4 sm:$0xff]  }
 0x372   : > { %1390 = vadd.xlane.f32.xlu0 %v7001_v32  ;;  %v5564_v32 = vld [vmem:[#allocation10 + $0xf0] ss:$8 sps:$4 sm:$0xff]  }
 0x373   : > { %2424 = vmatpush1.bf16.msra.mxu0 %v5561_v63  ;;  %v1260_v63 = vsub.f32 -inf, %v6897_v18  ;;  %v1261_v18 = vsub.f32 -inf, %v6903_v22  ;;  %v1263_v22 = vsub.f32 -inf, %v6917_v37 }
 0x374   : > { %2425 = vmatprep.subr.bf16.mxu0 %v5566_v0 }
 0x375   : > { %1392 = vadd.xlane.f32.xlu1 %v7005_v1  ;;  %v5569_v1 = vld [vmem:[#allocation10 + $0xe4] ss:$8 sps:$4 sm:$0xff]   ;;  %v1284_v37 = vmul.f32 1.442695, %v1263_v22 }
 0x376   : > { %1972 = vadd.xlane.f32.xlu0 %v5837_v42  ;;  %v5576_v42 = vld [vmem:[#allocation10 + $0xb0] ss:$8 sps:$4 sm:$0xff]  }
 0x377   : > { %2426 = vmatpush2.bf16.msra.mxu0 %v5564_v32  ;;  %v1258_v32 = vsub.f32 -inf, %v6899_v20  ;;  %v1839_v20 = vsub.f32 -inf, %v7017_v16 }
 0x378   : > { %2427 = vmatprep.subr.bf16.mxu0 %v5569_v1  ;;  %v1836_v1 = vsub.f32 -inf, %v6995_v24 }
 0x379   : > { %1974 = vadd.xlane.f32.xlu1 %v5839_v39  ;;  %v5581_v39 = vld [vmem:[#allocation10 + $0xa4] ss:$8 sps:$4 sm:$0xff]   ;;  %v1858_v16 = vmul.f32 1.442695, %v1839_v20 }
 0x37a   : > { %1394 = vadd.xlane.f32.xlu0 %v7031_v47  ;;  %v5570_v47 = vld [vmem:[#allocation10 + $0xd0] ss:$8 sps:$4 sm:$0xff]  }
 0x37b   : > { %2428 = vmatpush2.bf16.msra.mxu0 %v5567_v17 }
 0x37c   : > { %2429 = vmatprep.subr.bf16.mxu0 %v5572_v11  ;;  %v1259_v11 = vsub.f32 -inf, %v6909_v40  ;;  %v1262_v40 = vsub.f32 -inf, %v6913_v3 }
 0x37d   : > { %1396 = vadd.xlane.f32.xlu1 %v7035_v31  ;;  %v5575_v31 = vld [vmem:[#allocation10 + $0xc4] ss:$8 sps:$4 sm:$0xff]  }
 0x37e   : > { %1976 = vadd.xlane.f32.xlu0 %v5841_v61  ;;  %v1282_v3 = vmul.f32 1.442695, %v1262_v40  ;;  %v1840_v40 = vsub.f32 -inf, %v7019_v60  ;;  %v1270_v60 = vsub.f32 -inf, %v6976_v35  ;;  %v1844_v35 = vsub.f32 -inf, %v7039_v50 }
 0x37f   : > { %2430 = vmatpush2.bf16.msra.mxu0 %v5570_v47 }
 0x380   : > { %2431 = vmatprep.subr.bf16.mxu0 %v5575_v31  ;;  %v1278_v31 = vmul.f32 1.442695, %v1260_v63  ;;  %v1868_v50 = vmul.f32 1.442695, %v1844_v35 }
 0x381   : > { %1978 = vadd.xlane.f32.xlu1 %v5843_v26 }
 0x382   : > { %1398 = vadd.xlane.f32.xlu0 %v7045_v53  ;;  %v5584_v53 = vld [vmem:[#allocation10 + $0x94] ss:$8 sps:$4 sm:$0xff]   ;;  %5844 = vpow2.f32 %v1278_v31 }
 0x383   : > { %2432 = vmatpush2.bf16.msra.mxu0 %v5573_v9  ;;  %v1837_v9 = vsub.f32 -inf, %v7007_v44 }
 0x384   : > { %2433 = vmatprep.subr.bf16.mxu0 %v5578_v36 }
 0x385   : > { %1400 = vadd.xlane.f32.xlu1 %v7049_v62  ;;  %v5587_v62 = vld [vmem:[#allocation10 + $0x84] ss:$8 sps:$4 sm:$0xff]  }
 0x387   : > { %2434 = vmatpush2.bf16.msra.mxu0 %v5576_v42  ;;  %v1274_v42 = vmul.f32 1.442695, %v1258_v32  ;;  %v1264_v32 = vsub.f32 -inf, %v6919_v5 }
 0x388   : > { %2435 = vmatprep.subr.bf16.mxu0 %v5581_v39 }
 0x389   : > { %5846 = vpow2.f32 %v1274_v42  ;;  %v1272_v42 = vsub.f32 -inf, %v6983_v56  ;;  %v1286_v5 = vmul.f32 1.442695, %v1264_v32  ;;  %v1267_v56 = vsub.f32 -inf, %v6949_v12 }
 0x38b   : > { %2436 = vmatpush2.bf16.msra.mxu0 %v5579_v7  ;;  %v1852_v7 = vmul.f32 1.442695, %v1836_v1 }
 0x38c   : > { %2437 = vmatprep.subr.bf16.mxu0 %v5584_v53  ;;  %v1276_v53 = vmul.f32 1.442695, %v1259_v11  ;;  %v1265_v11 = vsub.f32 -inf, %v6933_v49 }
 0x38d   : > { %5848 = vpow2.f32 %v1852_v7  ;;  %v1841_v7 = vsub.f32 -inf, %v7025_v27  ;;  %v1268_v27 = vsub.f32 -inf, %v6951_v21  ;;  %v1842_v21 = vsub.f32 -inf, %v7027_v28 }
 0x38e   : > { %5850 = vpow2.f32 %v1276_v53  ;;  %v1288_v49 = vmul.f32 1.442695, %v1265_v11  ;;  %v1860_v11 = vmul.f32 1.442695, %v1840_v40  ;;  %v1298_v40 = vmul.f32 1.442695, %v1270_v60 }
 0x38f   : > { %2438 = vmatpush2.bf16.msra.mxu0 %v5582_v10  ;;  %v1854_v10 = vmul.f32 1.442695, %v1837_v9  ;;  %v1862_v22 = vmul.f32 1.442695, %v1841_v7 }
 0x390   : > { %2439 = vmatprep.subr.bf16.mxu0 %v5587_v62  ;;  %v1838_v62 = vsub.f32 -inf, %v7009_v46  ;;  %v1266_v46 = vsub.f32 -inf, %v6944_v2  ;;  %v1273_v2 = vsub.f32 -inf, %v6993_v23  ;;  %v1269_v23 = vsub.f32 -inf, %v6962_v29 }
 0x391   : > { %5852 = vpow2.f32 %v1854_v10  ;;  %v1843_v29 = vsub.f32 -inf, %v7037_v58 }
 0x392   : > { %v1856_v31 = vmul.f32 1.442695, %v1838_v62  ;;  %v1290_v53 = vmul.f32 1.442695, %v1266_v46  ;;  %v1302_v62 = vmul.f32 1.442695, %v1272_v42  ;;  %v7180_v46 = vpop.eup %5844 }
 0x393   : > { %2440 = vmatpush2.bf16.msra.mxu0 %v5585_v52  ;;  %v1280_v52 = vmul.f32 1.442695, %v1261_v18  ;;  %v1294_v42 = vmul.f32 1.442695, %v1268_v27  ;;  %v1866_v58 = vmul.f32 1.442695, %v1843_v29 }
 0x394   : > { %v1845_v29 = vsub.f32 -inf, %v7051_v43  ;;  %v1846_v43 = vsub.f32 -inf, %v7053_v55 }
 0x395   : > { %5854 = vpow2.f32 %v1280_v52 }
 0x396   : > { %5856 = vpow2.f32 %v1858_v16  ;;  %v1304_v16 = vmul.f32 1.442695, %v1273_v2 }
 0x397   : > { %5858 = vpow2.f32 %v1282_v3 }
 0x398   : > { %5860 = vpow2.f32 %v1856_v31  ;;  %v1292_v31 = vmul.f32 1.442695, %v1267_v56 }
 0x399   : > { %5862 = vpow2.f32 %v1284_v37  ;;  %v5847_v37 = vpop.eup %5846 }
 0x39a   : > { %5864 = vpow2.f32 %v1286_v5  ;;  %v5849_v7 = vpop.eup %5848 }
 0x39b   : > { %5866 = vpow2.f32 %v1288_v49  ;;  %v1296_v49 = vmul.f32 1.442695, %v1269_v23 }
 0x39c   : > { %5868 = vpow2.f32 %v1290_v53  ;;  %v5851_v53 = vpop.eup %5850 }
 0x39d   : > { %5870 = vpow2.f32 %v1302_v62  ;;  %v1864_v62 = vmul.f32 1.442695, %v1842_v21 }
 0x39e   : > { %5872 = vpow2.f32 %v1862_v22  ;;  %v5853_v28 = vpop.eup %5852  ;;  %v7191_v22 = vmul.f32 0.0, %v5849_v7  ;;  %v7208_v7 = vmul.f32 0.0, %v5847_v37 }
 0x39f   : > { %5874 = vpow2.f32 %v1304_v16  ;;  %v7195_v16 = vmul.f32 0.0, %v5851_v53 }
 0x3a0   : > { %5876 = vpow2.f32 %v1860_v11 }
 0x3a1   : > { %5878 = vpow2.f32 %v1292_v31  ;;  %v7203_v31 = vmul.f32 0.0, %v5853_v28 }
 0x3a2   : > { %v5855_v27 = vpop.eup %5854  ;;  %5880 = vpow2.f32 %v1294_v42 }
 0x3a3   : > { %v5857_v23 = vpop.eup %5856  ;;  %5882 = vpow2.f32 %v1296_v49 }
 0x3a4   : > { %v7199_v60 = vpop.eup %5858  ;;  %5884 = vpow2.f32 %v1298_v40 }
 0x3a5   : > { %v5861_v42 = vpop.eup %5860  ;;  %5886 = vpow2.f32 %v1864_v62 }
 0x3a6   : > { %v7212_v35 = vpop.eup %5862  ;;  %5888 = vpow2.f32 %v1866_v58  ;;  %v7229_v58 = vmul.f32 0.0, %v5861_v42 }
 0x3a7   : > { %v7220_v28 = vpop.eup %5864  ;;  %5890 = vpow2.f32 %v1868_v50  ;;  %v1870_v50 = vmul.f32 1.442695, %v1845_v29  ;;  %v7248_v29 = vmul.f32 0.0, %v7180_v46 }
 0x3cf   : > { %v7097_v61 = vpop.xlane.xlu0 %1948 }
 0x3d0   : > { %v1980_v11 = vadd.f32 %v7097_v61, %v7191_v22  ;;  %v7216_v61 = vmul.f32 0.0, %v5857_v23 }
 0x3d2   : > { %v7099_v26 = vpop.xlane.xlu1 %1950  ;;  %5892 = vrcp.f32 %v1980_v11 }
 0x3d3   : > { %v7101_v25 = vpop.xlane.xlu0 %1370  ;;  %v1981_v53 = vadd.f32 %v7099_v26, %v7203_v31 }
 0x3d4   : > { %v7111_v41 = vpop.f32.mrf.mxu1  ;;  %v1402_v37 = vadd.f32 %v7101_v25, %v7208_v7 }
 0x3d6   : > { %v7103_v51 = vpop.xlane.xlu1 %1372  ;;  %v7117_v8 = vpop.f32.mrf.mxu1 }
 0x3d7   : > { %v7105_v4 = vpop.xlane.xlu0 %1952  ;;  %v1403_v49 = vadd.f32 %v7103_v51, %v7195_v16  ;;  %v7227_v51 = vpop.eup %5866 }
 0x3d8   : > { %v7123_v59 = vpop.f32.mrf.mxu1  ;;  %v1982_v25 = vadd.f32 %v7105_v4, %v7229_v58 }
 0x3d9   : > { %5894 = vrcp.f32 %v1403_v49 }
 0x3da   : > { %v7107_v14 = vpop.xlane.xlu1 %1954  ;;  %v7133_v47 = vpop.f32.mrf.mxu1  ;;  %5896 = vrcp.f32 %v1981_v53 }
 0x3db   : > { %v7109_v6 = vpop.xlane.xlu0 %1374  ;;  %v1983_v26 = vadd.f32 %v7107_v14, %v7216_v61  ;;  %5898 = vrcp.f32 %v1402_v37 }
 0x3dc   : > { %v1404_v46 = vadd.f32 %v7109_v6, %v7248_v29 }
 0x3de   : > { %v7113_v13 = vpop.xlane.xlu1 %1376 }
 0x3df   : > { %v7115_v30 = vpop.xlane.xlu0 %1956 }
 0x3e2   : > { %v7119_v54 = vpop.xlane.xlu1 %1958 }
 0x3e3   : > { %v7121_v19 = vpop.xlane.xlu0 %1378 }
 0x3e6   : > { %v7126_v0 = vpop.xlane.xlu1 %1380 }
 0x3e7   : > { %v7130_v17 = vpop.xlane.xlu0 %1960  ;;  %v7139_v39 = vpop.f32.mrf.mxu1 }
 0x3e8   : > { %8841 = vst [vmem:[#allocation28_spill] sm:$0xff] %v7139_v39 }
 0x3e9   : > { %v7149_v63 = vpop.f32.mrf.mxu1 }
 0x3ea   : > { %v7136_v36 = vpop.xlane.xlu1 %1962 }
 0x3eb   : > { %v7142_v24 = vpop.xlane.xlu0 %1382  ;;  %v7159_v18 = vpop.f32.mrf.mxu1 }
 0x3ec   : > { %8842 = vst [vmem:[#allocation29_spill] sm:$0xff] %v7159_v18 }
 0x3ed   : > { %v7169_v52 = vpop.f32.mrf.mxu1 }
 0x3ee   : > { %v7146_v44 = vpop.xlane.xlu1 %1384 }
 0x3ef   : > { %v7152_v1 = vpop.xlane.xlu0 %1964 }
 0x3f2   : > { %v7156_v9 = vpop.xlane.xlu1 %1966 }
 0x3f3   : > { %v7162_v20 = vpop.xlane.xlu0 %1386 }
 0x3f6   : > { %v7166_v10 = vpop.xlane.xlu1 %1388 }
 0x3f7   : > { %v7172_v32 = vpop.xlane.xlu0 %1968  ;;  %v7175_v3 = vpop.f32.mrf.mxu1 }
 0x3f8   : > { %8843 = vst [vmem:[#allocation30_spill] sm:$0xff] %v7175_v3 }
 0x3f9   : > { %v7187_v2 = vpop.f32.mrf.mxu1 }
 0x3fa   : > { %v7178_v12 = vpop.xlane.xlu1 %1970  ;;  %8845 = vst [vmem:[#allocation32_spill] sm:$0xff] %v7187_v2 }
 0x3fb   : > { %v7184_v5 = vpop.xlane.xlu0 %1390  ;;  %v7197_v3 = vpop.f32.mrf.mxu1 }
 0x3fc   : > { %8844 = vst [vmem:[#allocation31_spill] sm:$0xff] %v7184_v5  ;;  %8848 = vst [vmem:[#allocation35_spill] sm:$0xff] %v7197_v3  ;;  %v7235_v3 = vpop.eup %5868  ;;  %5900 = vrcp.f32 %v1983_v26  ;;  %v7286_v5 = vmul.f32 0.0, %v7212_v35 }
 0x3fd   : > { %v7225_v62 = vpop.f32.mrf.mxu1  ;;  %v5871_v2 = vpop.eup %5870  ;;  %5902 = vpow2.f32 %v1870_v50  ;;  %v1848_v50 = vsub.f32 -inf, %v7063_v33 }
 0x3fe   : > { %v7189_v56 = vpop.xlane.xlu1 %1392  ;;  %8851 = vst [vmem:[#allocation38_spill] sm:$0xff] %v7225_v62  ;;  %v5873_v42 = vpop.eup %5872  ;;  %v1872_v62 = vmul.f32 1.442695, %v1846_v43  ;;  %5904 = vrcp.f32 %v1982_v25 }
 0x3ff   : > { %8846 = vst [vmem:[#allocation33_spill] sm:$0xff] %v7189_v56  ;;  %v7193_v34 = vpop.xlane.xlu0 %1972  ;;  %v7263_v26 = vmul.f32 0.0, %v5873_v42 }
 0x400   : > { %8847 = vst [vmem:[#allocation34_spill] sm:$0xff] %v7193_v34 }
 0x401   : > { %v1985_v6 = vadd.f32 %v7119_v54, %v7263_v26 }
 0x402   : > { %v7205_v21 = vpop.xlane.xlu1 %1974 }
 0x403   : > { %8849 = vst [vmem:[#allocation36_spill] sm:$0xff] %v7205_v21  ;;  %v7218_v40 = vpop.xlane.xlu0 %1394 }
 0x404   : > { %8850 = vst [vmem:[#allocation37_spill] sm:$0xff] %v7218_v40  ;;  %v7241_v40 = vmul.f32 0.0, %v5855_v27  ;;  %v1847_v27 = vsub.f32 -inf, %v7061_v38 }
 0x406   : > { %v7233_v23 = vpop.xlane.xlu1 %1396  ;;  %v1405_v49 = vadd.f32 %v7113_v13, %v7241_v40 }
 0x407   : > { %8852 = vst [vmem:[#allocation39_spill] sm:$0xff] %v7233_v23  ;;  %v7237_v55 = vpop.f32.mrf.mxu1  ;;  %v7243_v11 = vpop.xlane.xlu0 %1976 }
 0x408   : > { %8853 = vst [vmem:[#allocation40_spill] sm:$0xff] %v7243_v11  ;;  %v5875_v23 = vpop.eup %5874  ;;  %v7255_v11 = vmul.f32 0.0, %v5871_v2  ;;  %5906 = vpow2.f32 %v1872_v62  ;;  %v1874_v62 = vmul.f32 1.442695, %v1847_v27  ;;  %v7289_v27 = vmul.f32 0.0, %v7199_v60 }
 0x409   : > { %v7245_v14 = vpop.f32.mrf.mxu1  ;;  %v5877_v4 = vpop.eup %5876  ;;  %v7269_v2 = vmul.f32 0.0, %v5875_v23  ;;  %5908 = vrcp.f32 %v1405_v49  ;;  %v1876_v49 = vmul.f32 1.442695, %v1848_v50  ;;  %v7295_v50 = vmul.f32 0.0, %v7220_v28 }
 0x40a   : > { %8854 = vst [vmem:[#allocation41_spill] sm:$0xff] %v7245_v14  ;;  %v7252_v53 = vpop.xlane.xlu1 %1978  ;;  %v7259_v37 = vpop.eup %5878  ;;  %v7275_v25 = vmul.f32 0.0, %v5877_v4  ;;  %v1849_v4 = vsub.f32 -inf, %v7071_v57 }
 0x40b   : > { %8855 = vst [vmem:[#allocation42_spill] sm:$0xff] %v7252_v53  ;;  %v7257_v43 = vpop.f32.mrf.mxu1  ;;  %v1399_v14 = vpop.xlane.xlu0 %1398 }
 0x40c   : > { %v7265_v13 = vpop.eup %5880  ;;  %v1416_v38 = vadd.f32 %v1399_v14, %v7255_v11  ;;  %v1878_v18 = vmul.f32 1.442695, %v1849_v4 }
 0x40d   : > { %v7271_v53 = vpop.f32.mrf.mxu1  ;;  %v7273_v34 = vpop.eup %5882 }
 0x40e   : > { %8856 = vst [vmem:[#allocation43_spill] sm:$0xff] %v7271_v53  ;;  %v1401_v42 = vpop.xlane.xlu1 %1400  ;;  %v7279_v39 = vpop.eup %5884  ;;  %5910 = vrcp.f32 %v1416_v38  ;;  %v1984_v53 = vadd.f32 %v7115_v30, %v7275_v25  ;;  %v1407_v30 = vadd.f32 %v7126_v0, %v7286_v5  ;;  %v1406_v0 = vadd.f32 %v7121_v19, %v7289_v27 }
 0x40f   : > { %8857 = vst [vmem:[#allocation44_spill] sm:$0xff] %v7279_v39  ;;  %v1417_v33 = vadd.f32 %v1401_v42, %v7269_v2  ;;  %v5290_v14 = vpop.f32.mrf.mxu1  ;;  %v5887_v23 = vpop.eup %5886  ;;  %5912 = vrcp.f32 %v1404_v46  ;;  %v1271_v46 = vsub.f32 -inf, %v6981_v15  ;;  %v1572_v15 = vadd.f32 %v7133_v47, %v7195_v16 }
 0x410   : > { %v5889_v21 = vpop.eup %5888  ;;  %v7305_v56 = vmul.f32 0.0, %v5887_v23  ;;  %v1571_v47 = vadd.f32 %v7117_v8, %v7208_v7  ;;  %v1850_v7 = vsub.f32 -inf, %v7073_v48 }
 0x411   : > { %5914 = vrcp.f32 %v1417_v33  ;;  %v2086_v54 = vpop.f32.mrf.mxu1  ;;  %v5891_v39 = vpop.eup %5890  ;;  %v7297_v42 = vmul.f32 0.0, %v5889_v21 }
 0x412   : > { %5916 = vrcp.f32 %v1985_v6  ;;  %v5893_v38 = vpop.eup %5892  ;;  %v2149_v6 = vadd.f32 %v2086_v54, %v7191_v22  ;;  %v2151_v22 = vadd.f32 %v5290_v14, %v7229_v58  ;;  %v1986_v23 = vadd.f32 %v7130_v17, %v7305_v56 }
 0x413   : > { %5918 = vpow2.f32 %v1874_v62  ;;  %v5291_v57 = vpop.f32.mrf.mxu1  ;;  %v5895_v35 = vpop.eup %5894  ;;  %v1987_v21 = vadd.f32 %v7136_v36, %v7297_v42  ;;  %v1300_v14 = vmul.f32 1.442695, %v1271_v46 }
 0x414   : > { %5920 = vrcp.f32 %v1984_v53  ;;  %v2152_v60 = vadd.f32 %v5291_v57, %v7216_v61  ;;  %v5897_v33 = vpop.eup %5896  ;;  %v1604_v16 = vmul.f32 %v5895_v35, %v1572_v15  ;;  %v2181_v54 = vmul.f32 %v5893_v38, %v2149_v6 }
 0x415   : > { %5922 = vpow2.f32 %v1876_v49  ;;  %v2089_v28 = vpop.f32.mrf.mxu1  ;;  %v5899_v62 = vpop.eup %5898  ;;  %v1851_v49 = vsub.f32 -inf, %v7079_v45  ;;  %v7319_v45 = vmul.f32 0.0, %v7227_v51  ;;  %v7326_v51 = vmul.f32 0.0, %v5891_v39 }
 0x416   : > { %v2150_v61 = vadd.f32 %v2089_v28, %v7203_v31  ;;  %v5901_v53 = vpop.eup %5900  ;;  %5924 = vrcp.f32 %v1407_v30  ;;  %v1603_v31 = vmul.f32 %v5899_v62, %v1571_v47  ;;  %v1574_v62 = vadd.f32 %v7123_v59, %v7241_v40 }
 0x417   : > { %v7314_v19 = vpop.f32.mrf.mxu1  ;;  %v5903_v4 = vpop.eup %5902  ;;  %v2184_v36 = vmul.f32 %v5901_v53, %v2152_v60  ;;  %5926 = vrcp.f32 %v1406_v0  ;;  %v1882_v17 = vmul.f32 1.442695, %v1851_v49  ;;  %v1409_v46 = vadd.f32 %v7146_v44, %v7319_v45 }
 0x418   : > { %v2182_v57 = vmul.f32 %v5897_v33, %v2150_v61  ;;  %v5905_v58 = vpop.eup %5904  ;;  %5928 = vrcp.f32 %v1987_v21  ;;  %v1619_v38 = vpack.c.bf16 %v1604_v16, %v1603_v31  ;;  %v7328_v33 = vmul.f32 0.0, %v5903_v4 }
 0x419   : > { %v2102_v28 = vpop.f32.mrf.mxu1  ;;  %v7321_v8 = vpop.eup %5906  ;;  %v2183_v30 = vmul.f32 %v5905_v58, %v2151_v22  ;;  %5930 = vpow2.f32 %v1878_v18  ;;  %v1408_v18 = vadd.f32 %v7142_v24, %v7295_v50  ;;  %v1585_v21 = vadd.f32 %v7237_v55, %v7255_v11 }
 0x41a   : > { %v2197_v35 = vpack.c.bf16 %v2182_v57, %v2181_v54  ;;  %v5909_v15 = vpop.eup %5908  ;;  %5932 = vrcp.f32 %v1986_v23  ;;  %v1586_v44 = vadd.f32 %v7257_v43, %v7269_v2  ;;  %v1573_v61 = vadd.f32 %v7111_v41, %v7248_v29 }
 0x41b   : > { %v5295_v6 = vpop.f32.mrf.mxu1  ;;  %v5911_v60 = vpop.eup %5910  ;;  %v2198_v0 = vpack.c.bf16 %v2184_v36, %v2183_v30  ;;  %v1989_v53 = vadd.f32 %v7156_v9, %v7328_v33  ;;  %v2153_v59 = vadd.f32 %v2102_v28, %v7275_v25  ;;  %5934 = vrcp.f32 %v1409_v46 }
 0x41c   : > { %2441 = vmatprep.mubr.bf16.mxu0 %v2197_v35  ;;  %v5913_v48 = vpop.eup %5912  ;;  %v1606_v11 = vmul.f32 %v5909_v15, %v1574_v62  ;;  %v7346_v43 = vmul.f32 %v5911_v60, %v1585_v21  ;;  %5936 = vpow2.f32 %v1300_v14  ;;  %v1988_v41 = vadd.f32 %v7152_v1, %v7326_v51 }
 0x41d   : > { %v2105_v22 = vpop.f32.mrf.mxu1  ;;  %2442 = vmatmul.mubr.bf16.vlgmr.msra.gmra.mxu0 %v1619_v38  ;;  %5938 = vrcp.f32 %v1408_v18  ;;  %v1605_v47 = vmul.f32 %v5913_v48, %v1573_v61  ;;  %v1880_v23 = vmul.f32 1.442695, %v1850_v7  ;;  %v7358_v36 = vmul.f32 0.0, %v7235_v3 }
 0x41e   : > { %v5915_v39 = vpop.eup %5914  ;;  %v2154_v40 = vadd.f32 %v2105_v22, %v7263_v26  ;;  %2451 = vmatprep.mubr.bf16.mxu0 %v2198_v0  ;;  %v7353_v26 = vmul.f32 0.0, %v7259_v37  ;;  %5940 = vrcp.f32 %v1989_v53  ;;  %v2156_v14 = vadd.f32 %v5295_v6, %v7297_v42  ;;  %v8861_v53 = vld [vmem:[#allocation36_spill] sm:$0xff] }
 0x41f   : > { %v5917_v24 = vpop.eup %5916  ;;  %v7344_v55 = vpop.f32.mrf.mxu1  ;;  %v7348_v2 = vmul.f32 %v5915_v39, %v1586_v44  ;;  %5942 = vpow2.f32 %v1882_v17  ;;  %v1620_v57 = vpack.c.bf16 %v1606_v11, %v1605_v47  ;;  %v1576_v28 = vadd.f32 %v7169_v52, %v7286_v5  ;;  %v8860_v44 = vld [vmem:[#allocation31_spill] sm:$0xff] }
 0x420   : > { %v5919_v49 = vpop.eup %5918  ;;  %v2186_v9 = vmul.f32 %v5917_v24, %v2154_v40  ;;  %v1411_v1 = vadd.f32 %v7166_v10, %v7353_v26  ;;  %5944 = vrcp.f32 %v1988_v41  ;;  %v1410_v7 = vadd.f32 %v7162_v20, %v7358_v36  ;;  %v8863_v41 = vld [vmem:[#allocation34_spill] sm:$0xff] }
 0x421   : > { %v5921_v29 = vpop.eup %5920  ;;  %v2118_v25 = vpop.f32.mrf.mxu1  ;;  %v1626_v16 = vpack.c.bf16 %v7348_v2, %v7346_v43  ;;  %v7362_v37 = vmul.f32 0.0, %v5919_v49  ;;  %5946 = vpow2.f32 %v1880_v23  ;;  %v7370_v10 = vmul.f32 0.0, %v7321_v8  ;;  %v6036_v2 = vld [vmem:[%s6629_s17] sm:$0xff] }
 0x422   : > { %v5923_v4 = vpop.eup %5922  ;;  %v2185_v54 = vmul.f32 %v5921_v29, %v2153_v59  ;;  %v2155_v42 = vadd.f32 %v7314_v19, %v7305_v56  ;;  %v1575_v52 = vadd.f32 %v7149_v63, %v7289_v27  ;;  %5948 = vrcp.f32 %v1411_v1  ;;  %v8858_v63 = vld [vmem:[#allocation33_spill] sm:$0xff] }
 0x423   : > { %v5925_v58 = vpop.eup %5924  ;;  %v5299_v30 = vpop.f32.mrf.mxu1  ;;  %v1991_v35 = vadd.f32 %v7178_v12, %v7362_v37  ;;  %v1990_v17 = vadd.f32 %v7172_v32, %v7370_v10  ;;  %5950 = vrcp.f32 %v1410_v7  ;;  %v7381_v12 = vmul.f32 0.0, %v7273_v34  ;;  %v8859_v34 = vld [vmem:[#allocation29_spill] sm:$0xff] }
 0x424   : > { %v2199_v31 = vpack.c.bf16 %v2186_v9, %v2185_v54  ;;  %v5927_v3 = vpop.eup %5926  ;;  %v1608_v5 = vmul.f32 %v5925_v58, %v1576_v28  ;;  %v7384_v19 = vmul.f32 0.0, %v7265_v13  ;;  %v1578_v21 = vadd.f32 %v8859_v34, %v7319_v45  ;;  %v8865_v58 = vld [vmem:[#allocation39_spill] sm:$0xff] }
 0x425   : > { %2452 = vmatmul.mubr.bf16.gmra.mxu0 %v1620_v57  ;;  %v5929_v15 = vpop.eup %5928  ;;  %v1607_v46 = vmul.f32 %v5927_v3, %v1575_v52  ;;  %v2121_v6 = vpop.f32.mrf.mxu1  ;;  %5952 = vrcp.f32 %v1991_v35  ;;  %v1413_v27 = vadd.f32 %v8858_v63, %v7381_v12  ;;  %v1944_v61 = vmul.f32 0.0, %v5923_v4  ;;  %v8866_v35 = vld [vmem:[#allocation38_spill] sm:$0xff]  ;;  %v8870_v63 = vld [vmem:[#allocation40_spill] sm:$0xff] }
 0x426   : > { %2461 = vmatprep.mubr.bf16.mxu0 %v2199_v31  ;;  %v5931_v20 = vpop.eup %5930  ;;  %v2188_v38 = vmul.f32 %v5929_v15, %v2156_v14  ;;  %5954 = vrcp.f32 %v1990_v17  ;;  %v2158_v48 = vadd.f32 %v2121_v6, %v7328_v33  ;;  %v1412_v22 = vadd.f32 %v8860_v44, %v7384_v19  ;;  %v8862_v33 = vld [vmem:[#allocation28_spill] sm:$0xff]  ;;  %v8867_v15 = vld [vmem:[#allocation37_spill] sm:$0xff] }
 0x427   : > { %v5933_v8 = vpop.eup %5932  ;;  %v1621_v60 = vpack.c.bf16 %v1608_v5, %v1607_v46  ;;  %v1945_v32 = vmul.f32 0.0, %v5931_v20  ;;  %v7393_v39 = vpop.f32.mrf.mxu1  ;;  %v2157_v40 = vadd.f32 %v2118_v25, %v7326_v51  ;;  %v1577_v11 = vadd.f32 %v8862_v33, %v7295_v50  ;;  %v8864_v51 = vld [vmem:[#allocation44_spill] sm:$0xff] }
 0x428   : > { %v2187_v56 = vmul.f32 %v5933_v8, %v2155_v42  ;;  %v5935_v0 = vpop.eup %5934  ;;  %5956 = vrcp.f32 %v1413_v27  ;;  %v1992_v9 = vadd.f32 %v8863_v41, %v1944_v61  ;;  %v1366_v25 = vmul.f32 0.0, %v8864_v51 }
 0x429   : > { %v5937_v18 = vpop.eup %5936  ;;  %v1993_v59 = vadd.f32 %v8861_v53, %v1945_v32  ;;  %v1610_v49 = vmul.f32 %v5935_v0, %v1578_v21  ;;  %5958 = vrcp.f32 %v1412_v22  ;;  %v2134_v54 = vpop.f32.mrf.mxu1  ;;  %v2160_v7 = vadd.f32 %v5299_v30, %v7362_v37  ;;  %v8871_v21 = vld [vmem:[#allocation35_spill] sm:$0xff]  ;;  %v8872_v53 = vld [vmem:[#allocation30_spill] sm:$0xff] }
 0x42a   : > { %v2200_v62 = vpack.c.bf16 %v2188_v38, %v2187_v56  ;;  %v5939_v13 = vpop.eup %5938  ;;  %v1367_v23 = vmul.f32 0.0, %v5937_v18  ;;  %v1580_v42 = vadd.f32 %v8866_v35, %v7353_v26  ;;  %v1414_v52 = vadd.f32 %v8867_v15, %v1366_v25  ;;  %v8868_v38 = vld [vmem:[#allocation42_spill] sm:$0xff]  ;;  %v8869_v56 = vld [vmem:[#allocation32_spill] sm:$0xff] }
 0x42b   : > { %v5941_v24 = vpop.eup %5940  ;;  %v1609_v4 = vmul.f32 %v5939_v13, %v1577_v11  ;;  %5960 = vrcp.f32 %v1993_v59  ;;  %v5303_v5 = vpop.f32.mrf.mxu1  ;;  %v2159_v46 = vadd.f32 %v7344_v55, %v7370_v10  ;;  %v1579_v37 = vadd.f32 %v8869_v56, %v7358_v36 }
 0x42c   : > { %v5943_v45 = vpop.eup %5942  ;;  %v2190_v29 = vmul.f32 %v5941_v24, %v2158_v48  ;;  %v1415_v14 = vadd.f32 %v8865_v58, %v1367_v23  ;;  %5962 = vrcp.f32 %v1992_v9  ;;  %v1582_v44 = vadd.f32 %v8871_v21, %v7381_v12 }
 0x42d   : > { %2462 = vmatmul.mubr.bf16.gmra.mxu0 %v1621_v60  ;;  %v5945_v47 = vpop.eup %5944  ;;  %v1622_v31 = vpack.c.bf16 %v1610_v49, %v1609_v4  ;;  %v1947_v28 = vmul.f32 0.0, %v5943_v45  ;;  %v2137_v48 = vpop.f32.mrf.mxu1  ;;  %v2161_v22 = vadd.f32 %v2134_v54, %v1944_v61  ;;  %v1581_v59 = vadd.f32 %v8872_v53, %v7384_v19  ;;  %v8874_v4 = vld [vmem:[#allocation41_spill] sm:$0xff]  ;;  %v6043_v53 = vld [vmem:[%s6629_s17 + $0x38] sm:$0xff] }
 0x42e   : > { %2471 = vmatprep.mubr.bf16.mxu0 %v2200_v62  ;;  %v2189_v1 = vmul.f32 %v5945_v47, %v2157_v40  ;;  %v5947_v57 = vpop.eup %5946  ;;  %5964 = vrcp.f32 %v1415_v14  ;;  %v2162_v55 = vadd.f32 %v2137_v48, %v1945_v32  ;;  %v6040_v48 = vld [vmem:[%s6629_s17 + $0x20] sm:$0xff] }
 0x42f   : > { %v5949_v50 = vpop.eup %5948  ;;  %v1946_v17 = vmul.f32 0.0, %v5947_v57  ;;  %v1995_v8 = vadd.f32 %v8868_v38, %v1947_v28  ;;  %5966 = vrcp.f32 %v1414_v52  ;;  %v2164_v32 = vadd.f32 %v5303_v5, %v1947_v28  ;;  %v8876_v28 = vld [vmem:[#allocation27_spill] sm:$0xff]  ;;  %v6037_v52 = vld [vmem:[%s6629_s17 + $0x8] sm:$0xff] }
 0x430   : > { %v2201_v3 = vpack.c.bf16 %v2190_v29, %v2189_v1  ;;  %v5951_v20 = vpop.eup %5950  ;;  %v1612_v30 = vmul.f32 %v5949_v50, %v1580_v42  ;;  %v8873_v29 = vld [vmem:[#allocation43_spill] sm:$0xff]  ;;  %v1583_v1 = vadd.f32 %v8874_v4, %v1366_v25 }
 0x431   : > { %v1994_v26 = vadd.f32 %v8870_v63, %v1946_v17  ;;  %v1611_v0 = vmul.f32 %v5951_v20, %v1579_v37  ;;  %5968 = vrcp.f32 %v1995_v8  ;;  %v1584_v47 = vadd.f32 %v8873_v29, %v1367_v23  ;;  %v8875_v23 = vld [vmem:[#allocation26_spill] sm:$0xff]  ;;  %v6039_v37 = vld [vmem:[%s6629_s17 + $0x18] sm:$0xff] }
 0x432   : > { %v5953_v6 = vpop.eup %5952  ;;  %v2163_v61 = vadd.f32 %v7393_v39, %v1946_v17  ;;  %v2237_v39 = vld [vmem:[%s8737_s6] sm:$0x3]  ;;  %v6046_v4 = vld [vmem:[%s6629_s17 + $0x50] sm:$0xff] }
 0x433   : > { %v2192_v27 = vmul.f32 %v5953_v6, %v2160_v7  ;;  %v5955_v60 = vpop.eup %5954  ;;  %v1623_v18 = vpack.c.bf16 %v1612_v30, %v1611_v0  ;;  %5970 = vrcp.f32 %v1994_v26  ;;  %v7426_v25 = vrot.slane %v2237_v39, %v8875_v23  ;;  %v6038_v6 = vld [vmem:[%s6629_s17 + $0x10] sm:$0xff] }
 0x434   : > { %v2191_v62 = vmul.f32 %v5955_v60, %v2159_v46  ;;  %v7429_v7 = vrot.slane %v2237_v39, %v8876_v28  ;;  %v6048_v39 = vld [vmem:[%s6629_s17 + $0x60] sm:$0xff] }
 0x435   : > { %2472 = vmatmul.mubr.bf16.gmra.mxu0 %v1622_v31  ;;  %v5957_v34 = vpop.eup %5956 }
 0x436   : > { %2481 = vmatprep.mubr.bf16.mxu0 %v2201_v3  ;;  %v2202_v10 = vpack.c.bf16 %v2192_v27, %v2191_v62  ;;  %v5959_v36 = vpop.eup %5958  ;;  %v1614_v40 = vmul.f32 %v5957_v34, %v1582_v44 }
 0x437   : > { %v1613_v11 = vmul.f32 %v5959_v36, %v1581_v59 }
 0x438   : > { %v5961_v13 = vpop.eup %5960 }
 0x439   : > { %v2194_v24 = vmul.f32 %v5961_v13, %v2162_v55  ;;  %v5963_v33 = vpop.eup %5962  ;;  %v1624_v45 = vpack.c.bf16 %v1614_v40, %v1613_v11 }
 0x43a   : > { %v2193_v49 = vmul.f32 %v5963_v33, %v2161_v22  ;;  %v6042_v22 = vld [vmem:[%s6629_s17 + $0x30] sm:$0xff] }
 0x43b   : > { %v5965_v41 = vpop.eup %5964 }
 0x43c   : > { %v2203_v9 = vpack.c.bf16 %v2194_v24, %v2193_v49  ;;  %v5967_v12 = vpop.eup %5966  ;;  %v1616_v19 = vmul.f32 %v5965_v41, %v1584_v47 }
 0x43d   : > { %2482 = vmatmul.mubr.bf16.gmra.mxu0 %v1623_v18  ;;  %v1615_v58 = vmul.f32 %v5967_v12, %v1583_v1  ;;  %v6041_v18 = vld [vmem:[%s6629_s17 + $0x28] sm:$0xff] }
 0x43e   : > { %2491 = vmatprep.mubr.bf16.mxu0 %v2202_v10  ;;  %v5969_v54 = vpop.eup %5968 }
 0x43f   : > { %v2196_v57 = vmul.f32 %v5969_v54, %v2164_v32  ;;  %v1625_v31 = vpack.c.bf16 %v1616_v19, %v1615_v58  ;;  %v6045_v32 = vld [vmem:[%s6629_s17 + $0x48] sm:$0xff]  ;;  %v6047_v19 = vld [vmem:[%s6629_s17 + $0x58] sm:$0xff] }
 0x440   : > { %v5971_v51 = vpop.eup %5970 }
 0x441   : > { %v2195_v14 = vmul.f32 %v5971_v51, %v2163_v61 }
 0x443   : > { %v2204_v50 = vpack.c.bf16 %v2196_v57, %v2195_v14 }
 0x445   : > { %2492 = vmatmul.mubr.bf16.gmra.mxu0 %v1624_v45  ;;  %v6044_v45 = vld [vmem:[%s6629_s17 + $0x40] sm:$0xff] }
 0x446   : > { %2501 = vmatprep.mubr.bf16.mxu0 %v2203_v9 }
 0x44d   : > { %2502 = vmatmul.mubr.bf16.gmra.mxu0 %v1625_v31 }
 0x44e   : > { %2511 = vmatprep.mubr.bf16.mxu0 %v2204_v50 }
 0x455   : > { %2512 = vmatmul.mubr.bf16.gmra.mxu0 %v1626_v16 }
 0x4dd   : > { %v2443_v3 = vpop.f32.mrf.mxu0 }
 0x4de   : > { %v2444_v35 = vadd.f32 %v2443_v3, %v7426_v25 }
 0x4df   : > { %v2445_v42 = vpop.f32.mrf.mxu0 }
 0x4e0   : > { %v2446_v15 = vadd.f32 %v2445_v42, %v7429_v7  ;;  %v7434_v16 = vadd.f32 %v6036_v2, %v2444_v35  ;;  %v6049_v35 = vld [vmem:[%s6629_s17 + $0x68] sm:$0xff] }
 0x4e1   : > { %v2447_v43 = vpop.f32.mrf.mxu0 }
 0x4e2   : > { %v7437_v5 = vadd.f32 %v6037_v52, %v2446_v15  ;;  %v2448_v20 = vadd.f32 %v2447_v43, %v7426_v25 }
 0x4e3   : > { %v2449_v17 = vpop.f32.mrf.mxu0 }
 0x4e4   : > { %v2450_v38 = vadd.f32 %v2449_v17, %v7429_v7  ;;  %v2554_v8 = vadd.f32 %v7437_v5, %v7434_v16  ;;  %v7444_v56 = vadd.f32 %v6038_v6, %v2448_v20  ;;  %v6050_v17 = vld [vmem:[%s6629_s17 + $0x70] sm:$0xff] }
 0x4e5   : > { %v2453_v46 = vpop.f32.mrf.mxu0 }
 0x4e6   : > { %v7447_v30 = vadd.f32 %v6039_v37, %v2450_v38  ;;  %v2454_v63 = vadd.f32 %v2453_v46, %v7426_v25  ;;  %2555 = vadd.xlane.f32.xlu0 %v2554_v8  ;;  %v6051_v8 = vld [vmem:[%s6629_s17 + $0x78] sm:$0xff] }
 0x4e7   : > { %v2455_v26 = vpop.f32.mrf.mxu0 }
 0x4e8   : > { %v2456_v27 = vadd.f32 %v2455_v26, %v7429_v7  ;;  %v2557_v60 = vadd.f32 %v7447_v30, %v7444_v56  ;;  %v7454_v62 = vadd.f32 %v6040_v48, %v2454_v63  ;;  %v6053_v48 = vld [vmem:[%s6629_s17 + $0x88] sm:$0xff] }
 0x4e9   : > { %v2457_v0 = vpop.f32.mrf.mxu0 }
 0x4ea   : > { %v7457_v34 = vadd.f32 %v6041_v18, %v2456_v27  ;;  %v2458_v55 = vadd.f32 %v2457_v0, %v7426_v25  ;;  %2558 = vadd.xlane.f32.xlu1 %v2557_v60  ;;  %v6052_v60 = vld [vmem:[%s6629_s17 + $0x80] sm:$0xff] }
 0x4eb   : > { %v2459_v10 = vpop.f32.mrf.mxu0 }
 0x4ec   : > { %v2460_v21 = vadd.f32 %v2459_v10, %v7429_v7  ;;  %v2560_v44 = vadd.f32 %v7457_v34, %v7454_v62  ;;  %v7464_v13 = vadd.f32 %v6042_v22, %v2458_v55  ;;  %v6054_v22 = vld [vmem:[%s6629_s17 + $0x90] sm:$0xff] }
 0x4ed   : > { %v2463_v36 = vpop.f32.mrf.mxu0 }
 0x4ee   : > { %v7467_v59 = vadd.f32 %v6043_v53, %v2460_v21  ;;  %v2464_v40 = vadd.f32 %v2463_v36, %v7426_v25  ;;  %2561 = vadd.xlane.f32.xlu0 %v2560_v44 }
 0x4ef   : > { %v2465_v24 = vpop.f32.mrf.mxu0 }
 0x4f0   : > { %v2466_v33 = vadd.f32 %v2465_v24, %v7429_v7  ;;  %v2563_v11 = vadd.f32 %v7467_v59, %v7464_v13  ;;  %v7474_v41 = vadd.f32 %v6044_v45, %v2464_v40  ;;  %v6055_v40 = vld [vmem:[%s6629_s17 + $0x98] sm:$0xff] }
 0x4f1   : > { %v2467_v49 = vpop.f32.mrf.mxu0 }
 0x4f2   : > { %v7477_v9 = vadd.f32 %v6045_v32, %v2466_v33  ;;  %v2468_v29 = vadd.f32 %v2467_v49, %v7426_v25  ;;  %2564 = vadd.xlane.f32.xlu1 %v2563_v11 }
 0x4f3   : > { %v2469_v47 = vpop.f32.mrf.mxu0 }
 0x4f4   : > { %v2470_v12 = vadd.f32 %v2469_v47, %v7429_v7  ;;  %v2566_v61 = vadd.f32 %v7477_v9, %v7474_v41  ;;  %v7484_v1 = vadd.f32 %v6046_v4, %v2468_v29  ;;  %v6056_v29 = vld [vmem:[%s6629_s17 + $0xa0] sm:$0xff] }
 0x4f5   : > { %v2473_v54 = vpop.f32.mrf.mxu0 }
 0x4f6   : > { %v7487_v57 = vadd.f32 %v6047_v19, %v2470_v12  ;;  %v2474_v51 = vadd.f32 %v2473_v54, %v7426_v25  ;;  %2567 = vadd.xlane.f32.xlu0 %v2566_v61  ;;  %v6057_v12 = vld [vmem:[%s6629_s17 + $0xa8] sm:$0xff] }
 0x4f7   : > { %v2475_v58 = vpop.f32.mrf.mxu0 }
 0x4f8   : > { %v2476_v14 = vadd.f32 %v2475_v58, %v7429_v7  ;;  %v2569_v31 = vadd.f32 %v7487_v57, %v7484_v1  ;;  %v7494_v3 = vadd.f32 %v6048_v39, %v2474_v51 }
 0x4f9   : > { %v2477_v50 = vpop.f32.mrf.mxu0 }
 0x4fa   : > { %v7497_v42 = vadd.f32 %v6049_v35, %v2476_v14  ;;  %v2478_v15 = vadd.f32 %v2477_v50, %v7426_v25  ;;  %2570 = vadd.xlane.f32.xlu1 %v2569_v31  ;;  %v6058_v14 = vld [vmem:[%s6629_s17 + $0xb0] sm:$0xff]  ;;  %v6059_v50 = vld [vmem:[%s6629_s17 + $0xb8] sm:$0xff] }
 0x4fb   : > { %v2479_v43 = vpop.f32.mrf.mxu0 }
 0x4fc   : > { %v2480_v2 = vadd.f32 %v2479_v43, %v7429_v7  ;;  %v2572_v52 = vadd.f32 %v7497_v42, %v7494_v3  ;;  %v7504_v38 = vadd.f32 %v6050_v17, %v2478_v15 }
 0x4fd   : > { %v2483_v20 = vpop.f32.mrf.mxu0 }
 0x4fe   : > { %v7507_v46 = vadd.f32 %v6051_v8, %v2480_v2  ;;  %v2484_v6 = vadd.f32 %v2483_v20, %v7426_v25  ;;  %2573 = vadd.xlane.f32.xlu0 %v2572_v52  ;;  %v6060_v20 = vld [vmem:[%s6629_s17 + $0xc0] sm:$0xff]  ;;  %v6061_v8 = vld [vmem:[%s6629_s17 + $0xc8] sm:$0xff] }
 0x4ff   : > { %v2485_v37 = vpop.f32.mrf.mxu0 }
 0x500   : > { %v2486_v63 = vadd.f32 %v2485_v37, %v7429_v7  ;;  %v2575_v26 = vadd.f32 %v7507_v46, %v7504_v38  ;;  %v7514_v0 = vadd.f32 %v6052_v60, %v2484_v6 }
 0x501   : > { %v2487_v27 = vpop.f32.mrf.mxu0 }
 0x502   : > { %v7517_v18 = vadd.f32 %v6053_v48, %v2486_v63  ;;  %v2488_v55 = vadd.f32 %v2487_v27, %v7426_v25  ;;  %2576 = vadd.xlane.f32.xlu1 %v2575_v26  ;;  %v6062_v48 = vld [vmem:[%s6629_s17 + $0xd0] sm:$0xff] }
 0x503   : > { %v2489_v10 = vpop.f32.mrf.mxu0 }
 0x504   : > { %v2490_v21 = vadd.f32 %v2489_v10, %v7429_v7  ;;  %v2578_v44 = vadd.f32 %v7517_v18, %v7514_v0  ;;  %v7524_v53 = vadd.f32 %v6054_v22, %v2488_v55  ;;  %v6063_v10 = vld [vmem:[%s6629_s17 + $0xd8] sm:$0xff] }
 0x505   : > { %v2493_v36 = vpop.f32.mrf.mxu0 }
 0x506   : > { %v7527_v24 = vadd.f32 %v6055_v40, %v2490_v21  ;;  %v2494_v33 = vadd.f32 %v2493_v36, %v7426_v25  ;;  %2579 = vadd.xlane.f32.xlu0 %v2578_v44 }
 0x507   : > { %v2495_v11 = vpop.f32.mrf.mxu0 }
 0x508   : > { %v2496_v49 = vadd.f32 %v2495_v11, %v7429_v7  ;;  %v2581_v45 = vadd.f32 %v7527_v24, %v7524_v53  ;;  %v7534_v47 = vadd.f32 %v6056_v29, %v2494_v33  ;;  %v6064_v11 = vld [vmem:[%s6629_s17 + $0xe0] sm:$0xff] }
 0x509   : > { %v2497_v32 = vpop.f32.mrf.mxu0 }
 0x50a   : > { %v7537_v61 = vadd.f32 %v6057_v12, %v2496_v49  ;;  %v2498_v54 = vadd.f32 %v2497_v32, %v7426_v25  ;;  %2582 = vadd.xlane.f32.xlu1 %v2581_v45  ;;  %v6065_v45 = vld [vmem:[%s6629_s17 + $0xe8] sm:$0xff] }
 0x50b   : > { %v2499_v4 = vpop.f32.mrf.mxu0 }
 0x50c   : > { %v2500_v19 = vadd.f32 %v2499_v4, %v7429_v7  ;;  %v2584_v51 = vadd.f32 %v7537_v61, %v7534_v47  ;;  %v7544_v31 = vadd.f32 %v6058_v14, %v2498_v54 }
 0x50d   : > { %v2503_v58 = vpop.f32.mrf.mxu0 }
 0x50e   : > { %v7547_v39 = vadd.f32 %v6059_v50, %v2500_v19  ;;  %v2504_v35 = vadd.f32 %v2503_v58, %v7426_v25  ;;  %2585 = vadd.xlane.f32.xlu0 %v2584_v51  ;;  %v6066_v19 = vld [vmem:[%s6629_s17 + $0xf0] sm:$0xff]  ;;  %v6067_v58 = vld [vmem:[%s6629_s17 + $0xf8] sm:$0xff] }
 0x50f   : > { %v2505_v15 = vpop.f32.mrf.mxu0 }
 0x510   : > { %v2506_v43 = vadd.f32 %v2505_v15, %v7429_v7  ;;  %v2587_v2 = vadd.f32 %v7547_v39, %v7544_v31  ;;  %v7554_v17 = vadd.f32 %v6060_v20, %v2504_v35  ;;  %v5588_v35 = vld [vmem:[#allocation11 + $0xe0] ss:$16 sps:$4 sm:$0xff]   ;;  %v5591_v15 = vld [vmem:[#allocation11 + $0xe8] ss:$16 sps:$4 sm:$0xff]  }
 0x511   : > { %v2507_v52 = vpop.f32.mrf.mxu0  ;;  %v5597_v20 = vld [vmem:[#allocation11 + $0xc8] ss:$16 sps:$4 sm:$0xff]  }
 0x512   : > { %v7557_v6 = vadd.f32 %v6061_v8, %v2506_v43  ;;  %v2508_v37 = vadd.f32 %v2507_v52, %v7426_v25  ;;  %2588 = vadd.xlane.f32.xlu1 %v2587_v2  ;;  %v5593_v43 = vld [vmem:[#allocation11 + $0xec] ss:$16 sps:$4 sm:$0xff]   ;;  %v5596_v2 = vld [vmem:[#allocation11 + $0xc4] ss:$16 sps:$4 sm:$0xff]   ;;  %v5594_v52 = vld [vmem:[#allocation11 + $0xc0] ss:$16 sps:$4 sm:$0xff]  }
 0x513   : > { %v2509_v63 = vpop.f32.mrf.mxu0  ;;  %3434 = vmatprep.subr.bf16.mxu0 %v5593_v43  ;;  %v5602_v8 = vld [vmem:[#allocation11 + $0xa4] ss:$16 sps:$4 sm:$0xff]   ;;  %v5641_v43 = vld [vmem:[#allocation11 + $0x1ec] ss:$16 sps:$4 sm:$0xff]  }
 0x514   : > { %v2510_v26 = vadd.f32 %v2509_v63, %v7429_v7  ;;  %v2590_v27 = vadd.f32 %v7557_v6, %v7554_v17  ;;  %v7564_v55 = vadd.f32 %v6062_v48, %v2508_v37  ;;  %3435 = vmatpush1.bf16.msra.mxu0 %v5591_v15  ;;  %v5605_v37 = vld [vmem:[#allocation11 + $0xac] ss:$16 sps:$4 sm:$0xff]   ;;  %v5600_v63 = vld [vmem:[#allocation11 + $0xa0] ss:$16 sps:$4 sm:$0xff]   ;;  %v5638_v15 = vld [vmem:[#allocation11 + $0x1e4] ss:$16 sps:$4 sm:$0xff]  }
 0x515   : > { %v2513_v60 = vpop.f32.mrf.mxu0  ;;  %v5606_v48 = vld [vmem:[#allocation11 + $0x80] ss:$16 sps:$4 sm:$0xff]  }
 0x516   : > { %v7567_v21 = vadd.f32 %v6063_v10, %v2510_v26  ;;  %v2514_v44 = vadd.f32 %v2513_v60, %v7426_v25  ;;  %2591 = vadd.xlane.f32.xlu0 %v2590_v27  ;;  %v5603_v26 = vld [vmem:[#allocation11 + $0xa8] ss:$16 sps:$4 sm:$0xff]   ;;  %v5608_v27 = vld [vmem:[#allocation11 + $0x84] ss:$16 sps:$4 sm:$0xff]   ;;  %v5611_v60 = vld [vmem:[#allocation11 + $0x8c] ss:$16 sps:$4 sm:$0xff]  }
 0x517   : > { %v2515_v36 = vpop.f32.mrf.mxu0  ;;  %v5609_v10 = vld [vmem:[#allocation11 + $0x88] ss:$16 sps:$4 sm:$0xff]  }
 0x518   : > { %v2516_v22 = vadd.f32 %v2515_v36, %v7429_v7  ;;  %v2593_v40 = vadd.f32 %v7567_v21, %v7564_v55  ;;  %v7574_v49 = vadd.f32 %v6064_v11, %v2514_v44  ;;  %v5614_v44 = vld [vmem:[#allocation11 + $0x64] ss:$16 sps:$4 sm:$0xff]   ;;  %v5617_v36 = vld [vmem:[#allocation11 + $0x6c] ss:$16 sps:$4 sm:$0xff]  }
 0x519   : > { %v2517_v33 = vpop.f32.mrf.mxu0  ;;  %v5623_v11 = vld [vmem:[#allocation11 + $0x4c] ss:$16 sps:$4 sm:$0xff]  }
 0x51a   : > { %v7577_v32 = vadd.f32 %v6065_v45, %v2516_v22  ;;  %v2518_v29 = vadd.f32 %v2517_v33, %v7426_v25  ;;  %2594 = vadd.xlane.f32.xlu1 %v2593_v40  ;;  %v5590_v25 = vld [vmem:[#allocation11 + $0xe4] ss:$16 sps:$4 sm:$0xff]   ;;  %v5612_v22 = vld [vmem:[#allocation11 + $0x60] ss:$16 sps:$4 sm:$0xff]   ;;  %v5615_v40 = vld [vmem:[#allocation11 + $0x68] ss:$16 sps:$4 sm:$0xff]  }
 0x51b   : > { %v2519_v12 = vpop.f32.mrf.mxu0  ;;  %3321 = vmatprep.subr.bf16.mxu1 %v5590_v25  ;;  %v5620_v33 = vld [vmem:[#allocation11 + $0x44] ss:$16 sps:$4 sm:$0xff]   ;;  %v5618_v45 = vld [vmem:[#allocation11 + $0x40] ss:$16 sps:$4 sm:$0xff]   ;;  %v5633_v25 = vld [vmem:[#allocation11 + $0x8] ss:$16 sps:$4 sm:$0xff]  }
 0x51c   : > { %v2520_v54 = vadd.f32 %v2519_v12, %v7429_v7  ;;  %v2596_v4 = vadd.f32 %v7577_v32, %v7574_v49  ;;  %v7584_v51 = vadd.f32 %v6066_v19, %v2518_v29  ;;  %v5599_v7 = vld [vmem:[#allocation11 + $0xcc] ss:$16 sps:$4 sm:$0xff]   ;;  %3322 = vmatpush1.bf16.msra.mxu1 %v5588_v35  ;;  %v5621_v29 = vld [vmem:[#allocation11 + $0x48] ss:$16 sps:$4 sm:$0xff]   ;;  %v5626_v12 = vld [vmem:[#allocation11 + $0x24] ss:$16 sps:$4 sm:$0xff]  }
 0x51d   : > { %3323 = vmatprep.subr.bf16.mxu1 %v5596_v2  ;;  %3436 = vmatprep.subr.bf16.mxu0 %v5599_v7  ;;  %v5627_v19 = vld [vmem:[#allocation11 + $0x28] ss:$16 sps:$4 sm:$0xff]   ;;  %v5630_v35 = vld [vmem:[#allocation11] ss:$16 sps:$4 sm:$0xff]  }
 0x51e   : > { %v7587_v14 = vadd.f32 %v6067_v58, %v2520_v54  ;;  %2597 = vadd.xlane.f32.xlu0 %v2596_v4  ;;  %3437 = vmatpush1.bf16.msra.mxu0 %v5597_v20  ;;  %v5629_v54 = vld [vmem:[#allocation11 + $0x2c] ss:$16 sps:$4 sm:$0xff]   ;;  %v5624_v4 = vld [vmem:[#allocation11 + $0x20] ss:$16 sps:$4 sm:$0xff]   ;;  %v5632_v58 = vld [vmem:[#allocation11 + $0x4] ss:$16 sps:$4 sm:$0xff]  }
 0x51f   : > { %3438 = vmatprep.subr.bf16.mxu0 %v5605_v37  ;;  %v5636_v2 = vld [vmem:[#allocation11 + $0x1e0] ss:$16 sps:$4 sm:$0xff]   ;;  %v5639_v7 = vld [vmem:[#allocation11 + $0x1e8] ss:$16 sps:$4 sm:$0xff]  }
 0x520   : > { %v2599_v50 = vadd.f32 %v7587_v14, %v7584_v51  ;;  %3324 = vmatpush1.bf16.msra.mxu1 %v5594_v52 }
 0x521   : > { %3325 = vmatprep.subr.bf16.mxu1 %v5602_v8 }
 0x522   : > { %2600 = vadd.xlane.f32.xlu1 %v2599_v50  ;;  %3439 = vmatpush1.bf16.msra.mxu0 %v5603_v26  ;;  %v5635_v50 = vld [vmem:[#allocation11 + $0xc] ss:$16 sps:$4 sm:$0xff]  }
 0x523   : > { %3440 = vmatprep.subr.bf16.mxu0 %v5611_v60 }
 0x524   : > { %3326 = vmatpush1.bf16.msra.mxu1 %v5600_v63 }
 0x525   : > { %3327 = vmatprep.subr.bf16.mxu1 %v5608_v27 }
 0x526   : > { %3441 = vmatpush1.bf16.msra.mxu0 %v5609_v10 }
 0x527   : > { %3442 = vmatprep.subr.bf16.mxu0 %v5617_v36 }
 0x528   : > { %3328 = vmatpush1.bf16.msra.mxu1 %v5606_v48 }
 0x529   : > { %3329 = vmatprep.subr.bf16.mxu1 %v5614_v44 }
 0x52a   : > { %3443 = vmatpush1.bf16.msra.mxu0 %v5615_v40 }
 0x52b   : > { %3444 = vmatprep.subr.bf16.mxu0 %v5623_v11 }
 0x52c   : > { %3330 = vmatpush1.bf16.msra.mxu1 %v5612_v22 }
 0x52d   : > { %3331 = vmatprep.subr.bf16.mxu1 %v5620_v33 }
 0x52e   : > { %3445 = vmatpush1.bf16.msra.mxu0 %v5621_v29 }
 0x52f   : > { %3446 = vmatprep.subr.bf16.mxu0 %v5629_v54 }
 0x530   : > { %3332 = vmatpush1.bf16.msra.mxu1 %v5618_v45 }
 0x531   : > { %3333 = vmatprep.subr.bf16.mxu1 %v5626_v12 }
 0x532   : > { %3447 = vmatpush1.bf16.msra.mxu0 %v5627_v19 }
 0x533   : > { %3448 = vmatprep.subr.bf16.mxu0 %v5635_v50 }
 0x534   : > { %3334 = vmatpush1.bf16.msra.mxu1 %v5624_v4 }
 0x535   : > { %3335 = vmatprep.subr.bf16.mxu1 %v5632_v58 }
 0x536   : > { %3449 = vmatpush1.bf16.msra.mxu0 %v5633_v25 }
 0x537   : > { %3450 = vmatprep.subr.bf16.mxu0 %v5641_v43 }
 0x538   : > { %3336 = vmatpush1.bf16.msra.mxu1 %v5630_v35 }
 0x539   : > { %3337 = vmatprep.subr.bf16.mxu1 %v5638_v15 }
 0x53a   : > { %3451 = vmatpush2.bf16.msra.mxu0 %v5639_v7  ;;  %v5647_v7 = vld [vmem:[#allocation11 + $0x1cc] ss:$16 sps:$4 sm:$0xff]  }
 0x53b   : > { %3452 = vmatprep.subr.bf16.mxu0 %v5647_v7 }
 0x53c   : > { %3338 = vmatpush2.bf16.msra.mxu1 %v5636_v2  ;;  %v5644_v2 = vld [vmem:[#allocation11 + $0x1c4] ss:$16 sps:$4 sm:$0xff]  }
 0x53d   : > { %3339 = vmatprep.subr.bf16.mxu1 %v5644_v2 }
 0x56f   : > { %v2556_v52 = vpop.xlane.xlu0 %2555 }
 0x570   : > { %v2603_v20 = vmul.f32 0.00390625, %v2556_v52 }
 0x572   : > { %v7592_v8 = vsub.f32 %v7434_v16, %v2603_v20  ;;  %v7595_v37 = vsub.f32 %v7437_v5, %v2603_v20  ;;  %v5642_v20 = vld [vmem:[#allocation11 + $0x1c0] ss:$16 sps:$4 sm:$0xff]  }
 0x573   : > { %v2559_v63 = vpop.xlane.xlu1 %2558  ;;  %3340 = vmatpush2.bf16.msra.mxu1 %v5642_v20  ;;  %v5663_v20 = vld [vmem:[#allocation11 + $0x168] ss:$16 sps:$4 sm:$0xff]  }
 0x574   : > { %v2604_v26 = vmul.f32 0.00390625, %v2559_v63  ;;  %v2651_v27 = vmul.f32 %v7592_v8, %v7592_v8  ;;  %v2652_v60 = vmul.f32 %v7595_v37, %v7595_v37  ;;  %v5645_v63 = vld [vmem:[#allocation11 + $0x1c8] ss:$16 sps:$4 sm:$0xff]  }
 0x575   : > { %3453 = vmatpush2.bf16.msra.mxu0 %v5645_v63 }
 0x576   : > { %v7602_v48 = vsub.f32 %v7444_v56, %v2604_v26  ;;  %v7605_v10 = vsub.f32 %v7447_v30, %v2604_v26  ;;  %v2683_v44 = vadd.f32 %v2652_v60, %v2651_v27 }
 0x577   : > { %v2562_v16 = vpop.xlane.xlu0 %2561 }
 0x578   : > { %v2605_v36 = vmul.f32 0.00390625, %v2562_v16  ;;  %2684 = vadd.xlane.f32.xlu0 %v2683_v44  ;;  %v2653_v5 = vmul.f32 %v7602_v48, %v7602_v48  ;;  %v2654_v22 = vmul.f32 %v7605_v10, %v7605_v10  ;;  %v5653_v16 = vld [vmem:[#allocation11 + $0x1ac] ss:$16 sps:$4 sm:$0xff]  }
 0x579   : > { %3454 = vmatprep.subr.bf16.mxu0 %v5653_v16 }
 0x57a   : > { %v7612_v40 = vsub.f32 %v7454_v62, %v2605_v36  ;;  %v7615_v33 = vsub.f32 %v7457_v34, %v2605_v36  ;;  %v2686_v56 = vadd.f32 %v2654_v22, %v2653_v5  ;;  %v5648_v22 = vld [vmem:[#allocation11 + $0x1a0] ss:$16 sps:$4 sm:$0xff]  }
 0x57b   : > { %v2565_v11 = vpop.xlane.xlu1 %2564 }
 0x57c   : > { %v2606_v30 = vmul.f32 0.00390625, %v2565_v11  ;;  %2687 = vadd.xlane.f32.xlu1 %v2686_v56  ;;  %v2655_v45 = vmul.f32 %v7612_v40, %v7612_v40  ;;  %v2656_v29 = vmul.f32 %v7615_v33, %v7615_v33  ;;  %v5651_v56 = vld [vmem:[#allocation11 + $0x1a8] ss:$16 sps:$4 sm:$0xff]  }
 0x57d   : > { %3455 = vmatpush2.bf16.msra.mxu0 %v5651_v56 }
 0x57e   : > { %v7622_v12 = vsub.f32 %v7464_v13, %v2606_v30  ;;  %v7625_v54 = vsub.f32 %v7467_v59, %v2606_v30  ;;  %v2689_v62 = vadd.f32 %v2656_v29, %v2655_v45 }
 0x57f   : > { %v2568_v4 = vpop.xlane.xlu0 %2567 }
 0x580   : > { %v2607_v34 = vmul.f32 0.00390625, %v2568_v4  ;;  %2690 = vadd.xlane.f32.xlu0 %v2689_v62  ;;  %v2657_v19 = vmul.f32 %v7622_v12, %v7622_v12  ;;  %v2658_v58 = vmul.f32 %v7625_v54, %v7625_v54  ;;  %v5659_v62 = vld [vmem:[#allocation11 + $0x18c] ss:$16 sps:$4 sm:$0xff]  }
 0x581   : > { %3456 = vmatprep.subr.bf16.mxu0 %v5659_v62 }
 0x582   : > { %v7632_v50 = vsub.f32 %v7474_v41, %v2607_v34  ;;  %v7635_v35 = vsub.f32 %v7477_v9, %v2607_v34  ;;  %v2692_v13 = vadd.f32 %v2658_v58, %v2657_v19  ;;  %v5654_v19 = vld [vmem:[#allocation11 + $0x180] ss:$16 sps:$4 sm:$0xff]   ;;  %v5657_v58 = vld [vmem:[#allocation11 + $0x188] ss:$16 sps:$4 sm:$0xff]  }
 0x583   : > { %v2571_v25 = vpop.xlane.xlu1 %2570  ;;  %3457 = vmatpush2.bf16.msra.mxu0 %v5657_v58 }
 0x584   : > { %v2608_v59 = vmul.f32 0.00390625, %v2571_v25  ;;  %2693 = vadd.xlane.f32.xlu1 %v2692_v13  ;;  %v2659_v15 = vmul.f32 %v7632_v50, %v7632_v50  ;;  %v2660_v43 = vmul.f32 %v7635_v35, %v7635_v35 }
 0x586   : > { %v7642_v52 = vsub.f32 %v7484_v1, %v2608_v59  ;;  %v7645_v41 = vsub.f32 %v7487_v57, %v2608_v59  ;;  %v2695_v9 = vadd.f32 %v2660_v43, %v2659_v15  ;;  %v5650_v1 = vld [vmem:[#allocation11 + $0x1a4] ss:$16 sps:$4 sm:$0xff]   ;;  %v5665_v43 = vld [vmem:[#allocation11 + $0x16c] ss:$16 sps:$4 sm:$0xff]  }
 0x587   : > { %v2574_v26 = vpop.xlane.xlu0 %2573  ;;  %3341 = vmatprep.subr.bf16.mxu1 %v5650_v1  ;;  %3458 = vmatprep.subr.bf16.mxu0 %v5665_v43 }
 0x588   : > { %v2609_v27 = vmul.f32 0.00390625, %v2574_v26  ;;  %2696 = vadd.xlane.f32.xlu0 %v2695_v9  ;;  %v2661_v60 = vmul.f32 %v7642_v52, %v7642_v52  ;;  %v2662_v44 = vmul.f32 %v7645_v41, %v7645_v41  ;;  %3342 = vmatpush2.bf16.msra.mxu1 %v5648_v22  ;;  %v5660_v9 = vld [vmem:[#allocation11 + $0x160] ss:$16 sps:$4 sm:$0xff]   ;;  %v5669_v22 = vld [vmem:[#allocation11 + $0x148] ss:$16 sps:$4 sm:$0xff]  }
 0x589   : > { %3459 = vmatpush2.bf16.msra.mxu0 %v5663_v20 }
 0x58a   : > { %v7652_v57 = vsub.f32 %v7494_v3, %v2609_v27  ;;  %v7655_v36 = vsub.f32 %v7497_v42, %v2609_v27  ;;  %v2698_v5 = vadd.f32 %v2662_v44, %v2661_v60  ;;  %v5656_v3 = vld [vmem:[#allocation11 + $0x184] ss:$16 sps:$4 sm:$0xff]   ;;  %v5671_v44 = vld [vmem:[#allocation11 + $0x14c] ss:$16 sps:$4 sm:$0xff]  }
 0x58b   : > { %v2577_v11 = vpop.xlane.xlu1 %2576  ;;  %3343 = vmatprep.subr.bf16.mxu1 %v5656_v3  ;;  %3460 = vmatprep.subr.bf16.mxu0 %v5671_v44 }
 0x58c   : > { %v2610_v30 = vmul.f32 0.00390625, %v2577_v11  ;;  %2699 = vadd.xlane.f32.xlu1 %v2698_v5  ;;  %v2663_v45 = vmul.f32 %v7652_v57, %v7652_v57  ;;  %v2664_v29 = vmul.f32 %v7655_v36, %v7655_v36  ;;  %3344 = vmatpush2.bf16.msra.mxu1 %v5654_v19  ;;  %v5666_v5 = vld [vmem:[#allocation11 + $0x140] ss:$16 sps:$4 sm:$0xff]   ;;  %v5675_v19 = vld [vmem:[#allocation11 + $0x128] ss:$16 sps:$4 sm:$0xff]  }
 0x58d   : > { %3461 = vmatpush2.bf16.msra.mxu0 %v5669_v22 }
 0x58e   : > { %v7662_v42 = vsub.f32 %v7504_v38, %v2610_v30  ;;  %v7665_v4 = vsub.f32 %v7507_v46, %v2610_v30  ;;  %v2701_v34 = vadd.f32 %v2664_v29, %v2663_v45  ;;  %v5662_v38 = vld [vmem:[#allocation11 + $0x164] ss:$16 sps:$4 sm:$0xff]   ;;  %v5677_v29 = vld [vmem:[#allocation11 + $0x12c] ss:$16 sps:$4 sm:$0xff]  }
 0x58f   : > { %v2580_v13 = vpop.xlane.xlu0 %2579  ;;  %3345 = vmatprep.subr.bf16.mxu1 %v5662_v38  ;;  %3462 = vmatprep.subr.bf16.mxu0 %v5677_v29 }
 0x590   : > { %v2611_v25 = vmul.f32 0.00390625, %v2580_v13  ;;  %2702 = vadd.xlane.f32.xlu0 %v2701_v34  ;;  %v2665_v59 = vmul.f32 %v7662_v42, %v7662_v42  ;;  %v2666_v15 = vmul.f32 %v7665_v4, %v7665_v4  ;;  %3346 = vmatpush2.bf16.msra.mxu1 %v5660_v9  ;;  %v5672_v34 = vld [vmem:[#allocation11 + $0x120] ss:$16 sps:$4 sm:$0xff]   ;;  %v5681_v9 = vld [vmem:[#allocation11 + $0x108] ss:$16 sps:$4 sm:$0xff]  }
 0x591   : > { %3463 = vmatpush2.bf16.msra.mxu0 %v5675_v19 }
 0x592   : > { %v7672_v46 = vsub.f32 %v7514_v0, %v2611_v25  ;;  %v7675_v2 = vsub.f32 %v7517_v18, %v2611_v25  ;;  %v2704_v7 = vadd.f32 %v2666_v15, %v2665_v59  ;;  %v5668_v0 = vld [vmem:[#allocation11 + $0x144] ss:$16 sps:$4 sm:$0xff]   ;;  %v5683_v15 = vld [vmem:[#allocation11 + $0x10c] ss:$16 sps:$4 sm:$0xff]  }
 0x593   : > { %v2583_v63 = vpop.xlane.xlu1 %2582  ;;  %3347 = vmatprep.subr.bf16.mxu1 %v5668_v0  ;;  %3464 = vmatprep.subr.bf16.mxu0 %v5683_v15  ;;  %v7751_v15 = vld [vmem:[#allocation13 + $0x174] ss:$8 sps:$4 sm:$0xff]  }
 0x594   : > { %v2612_v26 = vmul.f32 0.00390625, %v2583_v63  ;;  %2705 = vadd.xlane.f32.xlu1 %v2704_v7  ;;  %v2667_v27 = vmul.f32 %v7672_v46, %v7672_v46  ;;  %v2668_v60 = vmul.f32 %v7675_v2, %v7675_v2  ;;  %3348 = vmatpush2.bf16.msra.mxu1 %v5666_v5  ;;  %v5678_v7 = vld [vmem:[#allocation11 + $0x100] ss:$16 sps:$4 sm:$0xff]  }
 0x595   : > { %3465 = vmatpush2.bf16.msra.mxu0 %v5681_v9 }
 0x596   : > { %v7682_v18 = vsub.f32 %v7524_v53, %v2612_v26  ;;  %v7685_v1 = vsub.f32 %v7527_v24, %v2612_v26  ;;  %v2707_v16 = vadd.f32 %v2668_v60, %v2667_v27  ;;  %v5674_v53 = vld [vmem:[#allocation11 + $0x124] ss:$16 sps:$4 sm:$0xff]   ;;  %4152 = vmatprep.subr.bf16.mxu0 %v7751_v15 }
 0x597   : > { %v2586_v56 = vpop.xlane.xlu0 %2585  ;;  %3349 = vmatprep.subr.bf16.mxu1 %v5674_v53 }
 0x598   : > { %v2613_v11 = vmul.f32 0.00390625, %v2586_v56  ;;  %2708 = vadd.xlane.f32.xlu0 %v2707_v16  ;;  %v2669_v30 = vmul.f32 %v7682_v18, %v7682_v18  ;;  %v2670_v45 = vmul.f32 %v7685_v1, %v7685_v1  ;;  %3350 = vmatpush2.bf16.msra.mxu1 %v5672_v34 }
 0x59a   : > { %v7692_v24 = vsub.f32 %v7534_v47, %v2613_v11  ;;  %v7695_v3 = vsub.f32 %v7537_v61, %v2613_v11  ;;  %v2710_v62 = vadd.f32 %v2670_v45, %v2669_v30  ;;  %v5680_v47 = vld [vmem:[#allocation11 + $0x104] ss:$16 sps:$4 sm:$0xff]  }
 0x59b   : > { %v2589_v58 = vpop.xlane.xlu1 %2588  ;;  %3351 = vmatprep.subr.bf16.mxu1 %v5680_v47  ;;  %v5686_v47 = vld [vmem:[#allocation13 + $0x74] ss:$8 sps:$4 sm:$0xff]  }
 0x59c   : > { %v2614_v13 = vmul.f32 0.00390625, %v2589_v58  ;;  %2711 = vadd.xlane.f32.xlu1 %v2710_v62  ;;  %v2671_v25 = vmul.f32 %v7692_v24, %v7692_v24  ;;  %v2672_v59 = vmul.f32 %v7695_v3, %v7695_v3  ;;  %3352 = vmatpush2.bf16.msra.mxu1 %v5678_v7 }
 0x59d   : > { %4039 = vmatprep.subr.bf16.mxu1 %v5686_v47 }
 0x59e   : > { %v7702_v61 = vsub.f32 %v7544_v31, %v2614_v13  ;;  %v7705_v38 = vsub.f32 %v7547_v39, %v2614_v13  ;;  %v2713_v43 = vadd.f32 %v2672_v59, %v2671_v25 }
 0x59f   : > { %v2592_v20 = vpop.xlane.xlu0 %2591 }
 0x5a0   : > { %v2615_v63 = vmul.f32 0.00390625, %v2592_v20  ;;  %2714 = vadd.xlane.f32.xlu0 %v2713_v43  ;;  %v2673_v26 = vmul.f32 %v7702_v61, %v7702_v61  ;;  %v2674_v27 = vmul.f32 %v7705_v38, %v7705_v38 }
 0x5a2   : > { %v7712_v31 = vsub.f32 %v7554_v17, %v2615_v63  ;;  %v7715_v39 = vsub.f32 %v7557_v6, %v2615_v63  ;;  %v2716_v60 = vadd.f32 %v2674_v27, %v2673_v26 }
 0x5a3   : > { %v2595_v0 = vpop.xlane.xlu1 %2594 }
 0x5a4   : > { %v2616_v44 = vmul.f32 0.00390625, %v2595_v0  ;;  %2717 = vadd.xlane.f32.xlu1 %v2716_v60  ;;  %v2675_v16 = vmul.f32 %v7712_v31, %v7712_v31  ;;  %v2676_v5 = vmul.f32 %v7715_v39, %v7715_v39 }
 0x5a6   : > { %v7722_v22 = vsub.f32 %v7564_v55, %v2616_v44  ;;  %v7725_v56 = vsub.f32 %v7567_v21, %v2616_v44  ;;  %v2719_v17 = vadd.f32 %v2676_v5, %v2675_v16  ;;  %v2811_v16 = vld [vmem:[%s8738_s7] sm:$0x3] }
 0x5a7   : > { %v2598_v11 = vpop.xlane.xlu0 %2597 }
 0x5a8   : > { %v2617_v6 = vmul.f32 0.00390625, %v2598_v11  ;;  %2720 = vadd.xlane.f32.xlu0 %v2719_v17  ;;  %v2677_v30 = vmul.f32 %v7722_v22, %v7722_v22  ;;  %v2678_v45 = vmul.f32 %v7725_v56, %v7725_v56 }
 0x5aa   : > { %v7732_v53 = vsub.f32 %v7574_v49, %v2617_v6  ;;  %v7735_v29 = vsub.f32 %v7577_v32, %v2617_v6  ;;  %v2722_v55 = vadd.f32 %v2678_v45, %v2677_v30  ;;  %v7758_v6 = vrot.slane %v2811_v16, %v8875_v23 }
 0x5ab   : > { %v2601_v62 = vpop.xlane.xlu1 %2600  ;;  %v7761_v30 = vrot.slane %v2811_v16, %v8876_v28 }
 0x5ac   : > { %v2618_v21 = vmul.f32 0.00390625, %v2601_v62  ;;  %2723 = vadd.xlane.f32.xlu1 %v2722_v55  ;;  %v2679_v34 = vmul.f32 %v7732_v53, %v7732_v53  ;;  %v2680_v19 = vmul.f32 %v7735_v29, %v7735_v29 }
 0x5ae   : > { %v7742_v58 = vsub.f32 %v7584_v51, %v2618_v21  ;;  %v7745_v13 = vsub.f32 %v7587_v14, %v2618_v21  ;;  %v2725_v49 = vadd.f32 %v2680_v19, %v2679_v34  ;;  %v2855_v21 = vld [vmem:[%s8739_s8] sm:$0x3] }
 0x5b0   : > { %2726 = vadd.xlane.f32.xlu0 %v2725_v49  ;;  %v2681_v32 = vmul.f32 %v7742_v58, %v7742_v58  ;;  %v2682_v25 = vmul.f32 %v7745_v13, %v7745_v13 }
 0x5b2   : > { %v2728_v59 = vadd.f32 %v2682_v25, %v2681_v32  ;;  %v7770_v25 = vrot.slane %v2855_v21, %v8875_v23 }
 0x5b4   : > { %2729 = vadd.xlane.f32.xlu1 %v2728_v59  ;;  %v7773_v59 = vrot.slane %v2855_v21, %v8876_v28 }
 0x601   : > { %v2685_v51 = vpop.xlane.xlu0 %2684 }
 0x602   : > { %v2731_v43 = vmul.f32 0.00390625, %v2685_v51 }
 0x604   : > { %v2747_v14 = vadd.f32 1e-05, %v2731_v43 }
 0x605   : > { %v2688_v7 = vpop.xlane.xlu1 %2687 }
 0x606   : > { %5972 = vrsqrt.f32 %v2747_v14  ;;  %v2732_v9 = vmul.f32 0.00390625, %v2688_v7 }
 0x608   : > { %v2748_v20 = vadd.f32 1e-05, %v2732_v9 }
 0x609   : > { %v2691_v63 = vpop.xlane.xlu0 %2690 }
 0x60a   : > { %5974 = vrsqrt.f32 %v2748_v20  ;;  %v2733_v26 = vmul.f32 0.00390625, %v2691_v63 }
 0x60c   : > { %v2749_v27 = vadd.f32 1e-05, %v2733_v26 }
 0x60d   : > { %v2694_v60 = vpop.xlane.xlu1 %2693 }
 0x60e   : > { %5976 = vrsqrt.f32 %v2749_v27  ;;  %v2734_v0 = vmul.f32 0.00390625, %v2694_v60 }
 0x610   : > { %v2750_v44 = vadd.f32 1e-05, %v2734_v0 }
 0x611   : > { %v2697_v5 = vpop.xlane.xlu0 %2696 }
 0x612   : > { %5978 = vrsqrt.f32 %v2750_v44  ;;  %v2735_v17 = vmul.f32 0.00390625, %v2697_v5 }
 0x613   : > { %v5973_v11 = vpop.eup %5972 }
 0x614   : > { %v2779_v45 = vmul.f32 %v5973_v11, %v7592_v8  ;;  %v2751_v55 = vadd.f32 1e-05, %v2735_v17  ;;  %v2780_v62 = vmul.f32 %v5973_v11, %v7595_v37  ;;  %v5684_v11 = vld [vmem:[#allocation13 + $0x70] ss:$8 sps:$4 sm:$0xff]  }
 0x615   : > { %v2700_v34 = vpop.xlane.xlu1 %2699 }
 0x616   : > { %5980 = vrsqrt.f32 %v2751_v55  ;;  %v2736_v19 = vmul.f32 0.00390625, %v2700_v34  ;;  %v2824_v32 = vmul.f32 %v7761_v30, %v2780_v62  ;;  %v2823_v8 = vmul.f32 %v7758_v6, %v2779_v45  ;;  %v7798_v45 = vld [vmem:[#allocation13 + $0x170] ss:$8 sps:$4 sm:$0xff]   ;;  %v7802_v34 = vld [vmem:[#allocation13 + $0x164] ss:$8 sps:$4 sm:$0xff]  }
 0x617   : > { %v5975_v49 = vpop.eup %5974 }
 0x618   : > { %v2781_v37 = vmul.f32 %v5975_v49, %v7602_v48  ;;  %v2752_v47 = vadd.f32 1e-05, %v2736_v19  ;;  %v2782_v51 = vmul.f32 %v5975_v49, %v7605_v10  ;;  %v7781_v63 = vadd.f32 %v7773_v59, %v2824_v32 }
 0x619   : > { %v2703_v43 = vpop.xlane.xlu0 %2702  ;;  %v7784_v26 = vadd.f32 %v7770_v25, %v2823_v8 }
 0x61a   : > { %5982 = vrsqrt.f32 %v2752_v47  ;;  %v2737_v14 = vmul.f32 0.00390625, %v2703_v43  ;;  %v2826_v7 = vmul.f32 %v7761_v30, %v2782_v51  ;;  %v2825_v9 = vmul.f32 %v7758_v6, %v2781_v37  ;;  %8877 = vst [vmem:[#allocation33_spill] sm:$0xff] %v7781_v63  ;;  %v5690_v51 = vld [vmem:[#allocation13 + $0x60] ss:$8 sps:$4 sm:$0xff]  }
 0x61b   : > { %v5977_v20 = vpop.eup %5976  ;;  %8878 = vst [vmem:[#allocation29_spill] sm:$0xff] %v7784_v26  ;;  %v7809_v43 = vld [vmem:[#allocation13 + $0x160] ss:$8 sps:$4 sm:$0xff]  }
 0x61c   : > { %v2753_v27 = vadd.f32 1e-05, %v2737_v14  ;;  %v7787_v48 = vadd.f32 %v7773_v59, %v2826_v7  ;;  %v7790_v10 = vadd.f32 %v7770_v25, %v2825_v9  ;;  %v2784_v60 = vmul.f32 %v5977_v20, %v7615_v33  ;;  %v5692_v33 = vld [vmem:[#allocation13 + $0x64] ss:$8 sps:$4 sm:$0xff]   ;;  %v5698_v7 = vld [vmem:[#allocation13 + $0x54] ss:$8 sps:$4 sm:$0xff]  }
 0x61d   : > { %v2706_v0 = vpop.xlane.xlu1 %2705  ;;  %v2783_v44 = vmul.f32 %v5977_v20, %v7612_v40  ;;  %v7818_v9 = vld [vmem:[#allocation13 + $0x154] ss:$8 sps:$4 sm:$0xff]  }
 0x61e   : > { %8879 = vst [vmem:[#allocation31_spill] sm:$0xff] %v7787_v48  ;;  %8880 = vst [vmem:[#allocation36_spill] sm:$0xff] %v7790_v10  ;;  %5984 = vrsqrt.f32 %v2753_v27  ;;  %v2738_v16 = vmul.f32 0.00390625, %v2706_v0  ;;  %v2900_v5 = vpack.c.bf16 %v7787_v48, %v7781_v63  ;;  %v2899_v17 = vpack.c.bf16 %v7790_v10, %v7784_v26 }
 0x61f   : > { %v5979_v55 = vpop.eup %5978  ;;  %v2828_v62 = vmul.f32 %v7761_v30, %v2784_v60  ;;  %v2827_v21 = vmul.f32 %v7758_v6, %v2783_v44 }
 0x620   : > { %v2754_v40 = vadd.f32 1e-05, %v2738_v16  ;;  %3353 = vmatprep.mubr.bf16.mxu1 %v2900_v5  ;;  %3466 = vmatprep.mubr.bf16.mxu0 %v2900_v5  ;;  %v2786_v19 = vmul.f32 %v5979_v55, %v7625_v54  ;;  %v2785_v49 = vmul.f32 %v5979_v55, %v7622_v12  ;;  %v5696_v55 = vld [vmem:[#allocation13 + $0x50] ss:$8 sps:$4 sm:$0xff]  }
 0x621   : > { %3354 = vmatmul.mubr.bf16.vlgmr.msra.gmra.mxu1 %v2899_v17  ;;  %3467 = vmatmul.mubr.bf16.vlgmr.msra.gmra.mxu0 %v2899_v17  ;;  %v2709_v32 = vpop.xlane.xlu0 %2708  ;;  %v7812_v54 = vadd.f32 %v7773_v59, %v2828_v62  ;;  %v7815_v12 = vadd.f32 %v7770_v25, %v2827_v21  ;;  %v7833_v62 = vld [vmem:[#allocation13 + $0x150] ss:$8 sps:$4 sm:$0xff]  }
 0x622   : > { %5986 = vrsqrt.f32 %v2754_v40  ;;  %v2739_v8 = vmul.f32 0.00390625, %v2709_v32  ;;  %v2830_v37 = vmul.f32 %v7761_v30, %v2786_v19  ;;  %v2829_v47 = vmul.f32 %v7758_v6, %v2785_v49  ;;  %4040 = vmatpush1.bf16.msra.mxu1 %v5684_v11  ;;  %4153 = vmatpush1.bf16.msra.mxu0 %v7798_v45  ;;  %v7838_v40 = vld [vmem:[#allocation13 + $0x144] ss:$8 sps:$4 sm:$0xff]  }
 0x623   : > { %v5981_v14 = vpop.eup %5980  ;;  %8881 = vst [vmem:[#allocation28_spill] sm:$0xff] %v7812_v54  ;;  %8882 = vst [vmem:[#allocation34_spill] sm:$0xff] %v7815_v12  ;;  %4041 = vmatprep.subr.bf16.mxu1 %v5692_v33  ;;  %4154 = vmatprep.subr.bf16.mxu0 %v7802_v34 }
 0x624   : > { %v2755_v20 = vadd.f32 1e-05, %v2739_v8  ;;  %v7821_v27 = vadd.f32 %v7773_v59, %v2830_v37  ;;  %v7824_v60 = vadd.f32 %v7770_v25, %v2829_v47  ;;  %v2788_v0 = vmul.f32 %v5981_v14, %v7635_v35 }
 0x625   : > { %v2712_v44 = vpop.xlane.xlu1 %2711  ;;  %v2787_v16 = vmul.f32 %v5981_v14, %v7632_v50  ;;  %v5704_v50 = vld [vmem:[#allocation13 + $0x44] ss:$8 sps:$4 sm:$0xff]   ;;  %v5702_v14 = vld [vmem:[#allocation13 + $0x40] ss:$8 sps:$4 sm:$0xff]  }
 0x626   : > { %8883 = vst [vmem:[#allocation44_spill] sm:$0xff] %v7821_v27  ;;  %8884 = vst [vmem:[#allocation39_spill] sm:$0xff] %v7824_v60  ;;  %5988 = vrsqrt.f32 %v2755_v20  ;;  %v2740_v5 = vmul.f32 0.00390625, %v2712_v44  ;;  %v2902_v17 = vpack.c.bf16 %v7821_v27, %v7812_v54  ;;  %v2901_v11 = vpack.c.bf16 %v7824_v60, %v7815_v12  ;;  %4042 = vmatpush1.bf16.msra.mxu1 %v5690_v51  ;;  %v7854_v44 = vld [vmem:[#allocation13 + $0x134] ss:$8 sps:$4 sm:$0xff]  }
 0x627   : > { %4155 = vmatpush1.bf16.msra.mxu0 %v7809_v43  ;;  %v5983_v21 = vpop.eup %5982  ;;  %v2832_v35 = vmul.f32 %v7761_v30, %v2788_v0  ;;  %v2831_v33 = vmul.f32 %v7758_v6, %v2787_v16  ;;  %4043 = vmatprep.subr.bf16.mxu1 %v5698_v7  ;;  %v7845_v7 = vld [vmem:[#allocation13 + $0x140] ss:$8 sps:$4 sm:$0xff]   ;;  %v5710_v0 = vld [vmem:[#allocation13 + $0x34] ss:$8 sps:$4 sm:$0xff]  }
 0x628   : > { %4156 = vmatprep.subr.bf16.mxu0 %v7818_v9  ;;  %v2756_v19 = vadd.f32 1e-05, %v2740_v5  ;;  %3363 = vmatprep.mubr.bf16.mxu1 %v2902_v17  ;;  %v2790_v49 = vmul.f32 %v5983_v21, %v7645_v41  ;;  %v2789_v32 = vmul.f32 %v5983_v21, %v7642_v52 }
 0x629   : > { %3476 = vmatprep.mubr.bf16.mxu0 %v2902_v17  ;;  %3364 = vmatmul.mubr.bf16.gmra.mxu1 %v2901_v11  ;;  %v2715_v8 = vpop.xlane.xlu0 %2714  ;;  %v7848_v41 = vadd.f32 %v7773_v59, %v2832_v35  ;;  %v7851_v52 = vadd.f32 %v7770_v25, %v2831_v33 }
 0x62a   : > { %3477 = vmatmul.mubr.bf16.gmra.mxu0 %v2901_v11  ;;  %5990 = vrsqrt.f32 %v2756_v19  ;;  %v2741_v37 = vmul.f32 0.00390625, %v2715_v8  ;;  %v2834_v47 = vmul.f32 %v7761_v30, %v2790_v49  ;;  %v2833_v51 = vmul.f32 %v7758_v6, %v2789_v32  ;;  %4044 = vmatpush1.bf16.msra.mxu1 %v5696_v55  ;;  %v5708_v19 = vld [vmem:[#allocation13 + $0x30] ss:$8 sps:$4 sm:$0xff]  }
 0x62b   : > { %4157 = vmatpush1.bf16.msra.mxu0 %v7833_v62  ;;  %v5985_v20 = vpop.eup %5984  ;;  %8885 = vst [vmem:[#allocation38_spill] sm:$0xff] %v7848_v41  ;;  %8886 = vst [vmem:[#allocation37_spill] sm:$0xff] %v7851_v52  ;;  %4045 = vmatprep.subr.bf16.mxu1 %v5704_v50  ;;  %v7869_v49 = vld [vmem:[#allocation13 + $0x130] ss:$8 sps:$4 sm:$0xff]  }
 0x62c   : > { %4158 = vmatprep.subr.bf16.mxu0 %v7838_v40  ;;  %v2757_v16 = vadd.f32 1e-05, %v2741_v37  ;;  %v7857_v5 = vadd.f32 %v7773_v59, %v2834_v47  ;;  %v7860_v17 = vadd.f32 %v7770_v25, %v2833_v51  ;;  %v2792_v11 = vmul.f32 %v5985_v20, %v7655_v36  ;;  %v7874_v37 = vld [vmem:[#allocation13 + $0x124] ss:$8 sps:$4 sm:$0xff]  }
 0x62d   : > { %v2718_v55 = vpop.xlane.xlu1 %2717  ;;  %v2791_v21 = vmul.f32 %v5985_v20, %v7652_v57  ;;  %v5716_v57 = vld [vmem:[#allocation13 + $0x24] ss:$8 sps:$4 sm:$0xff]  }
 0x62e   : > { %8887 = vst [vmem:[#allocation42_spill] sm:$0xff] %v7857_v5  ;;  %8888 = vst [vmem:[#allocation32_spill] sm:$0xff] %v7860_v17  ;;  %5992 = vrsqrt.f32 %v2757_v16  ;;  %v2742_v35 = vmul.f32 0.00390625, %v2718_v55  ;;  %v2904_v33 = vpack.c.bf16 %v7857_v5, %v7848_v41  ;;  %v2903_v50 = vpack.c.bf16 %v7860_v17, %v7851_v52  ;;  %4046 = vmatpush1.bf16.msra.mxu1 %v5702_v14  ;;  %v5714_v55 = vld [vmem:[#allocation13 + $0x20] ss:$8 sps:$4 sm:$0xff]  }
 0x62f   : > { %4159 = vmatpush1.bf16.msra.mxu0 %v7845_v7  ;;  %v5987_v32 = vpop.eup %5986  ;;  %v2836_v36 = vmul.f32 %v7761_v30, %v2792_v11  ;;  %v2835_v8 = vmul.f32 %v7758_v6, %v2791_v21  ;;  %4047 = vmatprep.subr.bf16.mxu1 %v5710_v0  ;;  %v7881_v21 = vld [vmem:[#allocation13 + $0x120] ss:$8 sps:$4 sm:$0xff]  }
 0x630   : > { %4160 = vmatprep.subr.bf16.mxu0 %v7854_v44  ;;  %v2758_v47 = vadd.f32 1e-05, %v2742_v35  ;;  %3373 = vmatprep.mubr.bf16.mxu1 %v2904_v33  ;;  %v2794_v51 = vmul.f32 %v5987_v32, %v7665_v4  ;;  %v2793_v14 = vmul.f32 %v5987_v32, %v7662_v42 }
 0x631   : > { %3486 = vmatprep.mubr.bf16.mxu0 %v2904_v33  ;;  %3374 = vmatmul.mubr.bf16.gmra.mxu1 %v2903_v50  ;;  %v2721_v20 = vpop.xlane.xlu0 %2720  ;;  %v7884_v4 = vadd.f32 %v7773_v59, %v2836_v36  ;;  %v7887_v42 = vadd.f32 %v7770_v25, %v2835_v8  ;;  %v5722_v33 = vld [vmem:[#allocation13 + $0x14] ss:$8 sps:$4 sm:$0xff]  }
 0x632   : > { %3487 = vmatmul.mubr.bf16.gmra.mxu0 %v2903_v50  ;;  %5994 = vrsqrt.f32 %v2758_v47  ;;  %v2743_v16 = vmul.f32 0.00390625, %v2721_v20  ;;  %v2838_v11 = vmul.f32 %v7761_v30, %v2794_v51  ;;  %v2837_v0 = vmul.f32 %v7758_v6, %v2793_v14  ;;  %4048 = vmatpush1.bf16.msra.mxu1 %v5708_v19  ;;  %v7890_v50 = vld [vmem:[#allocation13 + $0x114] ss:$8 sps:$4 sm:$0xff]  }
 0x633   : > { %4161 = vmatpush1.bf16.msra.mxu0 %v7869_v49  ;;  %v5989_v35 = vpop.eup %5988  ;;  %8889 = vst [vmem:[#allocation40_spill] sm:$0xff] %v7884_v4  ;;  %8890 = vst [vmem:[#allocation35_spill] sm:$0xff] %v7887_v42  ;;  %4049 = vmatprep.subr.bf16.mxu1 %v5716_v57 }
 0x634   : > { %4162 = vmatprep.subr.bf16.mxu0 %v7874_v37  ;;  %v2759_v32 = vadd.f32 1e-05, %v2743_v16  ;;  %v7893_v19 = vadd.f32 %v7773_v59, %v2838_v11  ;;  %v7896_v47 = vadd.f32 %v7770_v25, %v2837_v0  ;;  %v2796_v51 = vmul.f32 %v5989_v35, %v7675_v2  ;;  %v5720_v16 = vld [vmem:[#allocation13 + $0x10] ss:$8 sps:$4 sm:$0xff]  }
 0x635   : > { %v2724_v36 = vpop.xlane.xlu1 %2723  ;;  %v2795_v14 = vmul.f32 %v5989_v35, %v7672_v46  ;;  %v7905_v11 = vld [vmem:[#allocation13 + $0x110] ss:$8 sps:$4 sm:$0xff]   ;;  %v5728_v46 = vld [vmem:[#allocation13 + $0x4] ss:$8 sps:$4 sm:$0xff]  }
 0x636   : > { %8891 = vst [vmem:[#allocation30_spill] sm:$0xff] %v7893_v19  ;;  %8892 = vst [vmem:[#allocation43_spill] sm:$0xff] %v7896_v47  ;;  %5996 = vrsqrt.f32 %v2759_v32  ;;  %v2744_v8 = vmul.f32 0.00390625, %v2724_v36  ;;  %v2906_v57 = vpack.c.bf16 %v7893_v19, %v7884_v4  ;;  %v2905_v20 = vpack.c.bf16 %v7896_v47, %v7887_v42  ;;  %4050 = vmatpush1.bf16.msra.mxu1 %v5714_v55  ;;  %v7910_v35 = vld [vmem:[#allocation13 + $0x104] ss:$8 sps:$4 sm:$0xff]  }
 0x637   : > { %4163 = vmatpush1.bf16.msra.mxu0 %v7881_v21  ;;  %v5991_v0 = vpop.eup %5990  ;;  %v2840_v2 = vmul.f32 %v7761_v30, %v2796_v51  ;;  %v2839_v5 = vmul.f32 %v7758_v6, %v2795_v14  ;;  %4051 = vmatprep.subr.bf16.mxu1 %v5722_v33  ;;  %v5726_v47 = vld [vmem:[#allocation13] ss:$8 sps:$4 sm:$0xff]  }
 0x638   : > { %4164 = vmatprep.subr.bf16.mxu0 %v7890_v50  ;;  %v2760_v32 = vadd.f32 1e-05, %v2744_v8  ;;  %3383 = vmatprep.mubr.bf16.mxu1 %v2906_v57  ;;  %v2798_v55 = vmul.f32 %v5991_v0, %v7685_v1  ;;  %v2797_v36 = vmul.f32 %v5991_v0, %v7682_v18  ;;  %v7917_v8 = vld [vmem:[#allocation13 + $0x100] ss:$8 sps:$4 sm:$0xff]  }
 0x639   : > { %3496 = vmatprep.mubr.bf16.mxu0 %v2906_v57  ;;  %3384 = vmatmul.mubr.bf16.gmra.mxu1 %v2905_v20  ;;  %v2727_v19 = vpop.xlane.xlu0 %2726  ;;  %v7920_v1 = vadd.f32 %v7773_v59, %v2840_v2  ;;  %v7923_v18 = vadd.f32 %v7770_v25, %v2839_v5 }
 0x63a   : > { %3497 = vmatmul.mubr.bf16.gmra.mxu0 %v2905_v20  ;;  %5998 = vrsqrt.f32 %v2760_v32  ;;  %v2745_v51 = vmul.f32 0.00390625, %v2727_v19  ;;  %v2842_v14 = vmul.f32 %v7761_v30, %v2798_v55  ;;  %v2841_v33 = vmul.f32 %v7758_v6, %v2797_v36  ;;  %4052 = vmatpush1.bf16.msra.mxu1 %v5720_v16  ;;  %v5734_v19 = vld [vmem:[#allocation13 + $0xf4] ss:$8 sps:$4 sm:$0xff]  }
 0x63b   : > { %4165 = vmatpush1.bf16.msra.mxu0 %v7905_v11  ;;  %v5993_v57 = vpop.eup %5992  ;;  %8893 = vst [vmem:[#allocation41_spill] sm:$0xff] %v7920_v1  ;;  %8894 = vst [vmem:[#allocation26_spill] sm:$0xff] %v7923_v18  ;;  %4053 = vmatprep.subr.bf16.mxu1 %v5728_v46  ;;  %v7926_v20 = vld [vmem:[#allocation13 + $0x1f4] ss:$8 sps:$4 sm:$0xff]  }
 0x63c   : > { %4166 = vmatprep.subr.bf16.mxu0 %v7910_v35  ;;  %v2761_v0 = vadd.f32 1e-05, %v2745_v51  ;;  %v7929_v16 = vadd.f32 %v7773_v59, %v2842_v14  ;;  %v7932_v32 = vadd.f32 %v7770_v25, %v2841_v33  ;;  %v2800_v55 = vmul.f32 %v5993_v57, %v7695_v3  ;;  %v5732_v51 = vld [vmem:[#allocation13 + $0xf0] ss:$8 sps:$4 sm:$0xff]  }
 0x63d   : > { %v2730_v2 = vpop.xlane.xlu1 %2729  ;;  %v2799_v36 = vmul.f32 %v5993_v57, %v7692_v24  ;;  %v7941_v14 = vld [vmem:[#allocation13 + $0x1f0] ss:$8 sps:$4 sm:$0xff]   ;;  %v5740_v24 = vld [vmem:[#allocation13 + $0xe4] ss:$8 sps:$4 sm:$0xff]  }
 0x63e   : > { %8895 = vst [vmem:[#allocation27_spill] sm:$0xff] %v7929_v16  ;;  %8896 = vst [vmem:[#allocation45_spill] sm:$0xff] %v7932_v32  ;;  %6000 = vrsqrt.f32 %v2761_v0  ;;  %v2746_v5 = vmul.f32 0.00390625, %v2730_v2  ;;  %v2908_v46 = vpack.c.bf16 %v7929_v16, %v7920_v1  ;;  %v2907_v4 = vpack.c.bf16 %v7932_v32, %v7923_v18  ;;  %4054 = vmatpush1.bf16.msra.mxu1 %v5726_v47  ;;  %v7946_v57 = vld [vmem:[#allocation13 + $0x1e4] ss:$8 sps:$4 sm:$0xff]  }
 0x63f   : > { %4167 = vmatpush1.bf16.msra.mxu0 %v7917_v8  ;;  %v5995_v33 = vpop.eup %5994  ;;  %v2844_v3 = vmul.f32 %v7761_v30, %v2800_v55  ;;  %v2843_v42 = vmul.f32 %v7758_v6, %v2799_v36  ;;  %4055 = vmatprep.subr.bf16.mxu1 %v5734_v19  ;;  %v5738_v19 = vld [vmem:[#allocation13 + $0xe0] ss:$8 sps:$4 sm:$0xff]  }
 0x640   : > { %4168 = vmatprep.subr.bf16.mxu0 %v7926_v20  ;;  %v2762_v0 = vadd.f32 1e-05, %v2746_v5  ;;  %3393 = vmatprep.mubr.bf16.mxu1 %v2908_v46  ;;  %v2802_v47 = vmul.f32 %v5995_v33, %v7705_v38  ;;  %v2801_v2 = vmul.f32 %v5995_v33, %v7702_v61  ;;  %v7959_v61 = vld [vmem:[#allocation13 + $0x1e0] ss:$8 sps:$4 sm:$0xff]   ;;  %v5746_v38 = vld [vmem:[#allocation13 + $0xd4] ss:$8 sps:$4 sm:$0xff]  }
 0x641   : > { %3506 = vmatprep.mubr.bf16.mxu0 %v2908_v46  ;;  %3394 = vmatmul.mubr.bf16.gmra.mxu1 %v2907_v4  ;;  %v7954_v5 = vadd.f32 %v7773_v59, %v2844_v3  ;;  %v7957_v46 = vadd.f32 %v7770_v25, %v2843_v42 }
 0x642   : > { %3507 = vmatmul.mubr.bf16.gmra.mxu0 %v2907_v4  ;;  %6002 = vrsqrt.f32 %v2762_v0  ;;  %v2846_v55 = vmul.f32 %v7761_v30, %v2802_v47  ;;  %v2845_v36 = vmul.f32 %v7758_v6, %v2801_v2  ;;  %4056 = vmatpush2.bf16.msra.mxu1 %v5732_v51  ;;  %v5744_v0 = vld [vmem:[#allocation13 + $0xd0] ss:$8 sps:$4 sm:$0xff]   ;;  %v7974_v47 = vld [vmem:[#allocation13 + $0x1d4] ss:$8 sps:$4 sm:$0xff]  }
 0x643   : > { %4169 = vmatpush2.bf16.msra.mxu0 %v7941_v14  ;;  %v5997_v16 = vpop.eup %5996  ;;  %8897 = vst [vmem:[#allocation46_spill] sm:$0xff] %v7954_v5  ;;  %8898 = vst [vmem:[#allocation47_spill] sm:$0xff] %v7957_v46  ;;  %4057 = vmatprep.subr.bf16.mxu1 %v5740_v24 }
 0x644   : > { %4170 = vmatprep.subr.bf16.mxu0 %v7946_v57  ;;  %v7963_v4 = vadd.f32 %v7773_v59, %v2846_v55  ;;  %v7966_v51 = vadd.f32 %v7770_v25, %v2845_v36  ;;  %v2804_v33 = vmul.f32 %v5997_v16, %v7715_v39  ;;  %v2803_v3 = vmul.f32 %v5997_v16, %v7712_v31  ;;  %v7979_v39 = vld [vmem:[#allocation13 + $0x1d0] ss:$8 sps:$4 sm:$0xff]   ;;  %v5752_v31 = vld [vmem:[#allocation13 + $0xc4] ss:$8 sps:$4 sm:$0xff]  }
 0x646   : > { %8899 = vst [vmem:[#allocation48_spill] sm:$0xff] %v7963_v4  ;;  %8900 = vst [vmem:[#allocation49_spill] sm:$0xff] %v7966_v51  ;;  %v2910_v42 = vpack.c.bf16 %v7963_v4, %v7954_v5  ;;  %v2909_v24 = vpack.c.bf16 %v7966_v51, %v7957_v46  ;;  %4058 = vmatpush2.bf16.msra.mxu1 %v5738_v19  ;;  %v2848_v55 = vmul.f32 %v7761_v30, %v2804_v33  ;;  %v7983_v4 = vld [vmem:[#allocation13 + $0x1c4] ss:$8 sps:$4 sm:$0xff]  }
 0x647   : > { %v5999_v2 = vpop.eup %5998  ;;  %v2847_v36 = vmul.f32 %v7758_v6, %v2803_v3  ;;  %4171 = vmatpush2.bf16.msra.mxu0 %v7959_v61  ;;  %4059 = vmatprep.subr.bf16.mxu1 %v5746_v38  ;;  %v5750_v38 = vld [vmem:[#allocation13 + $0xc0] ss:$8 sps:$4 sm:$0xff]  }
 0x648   : > { %3403 = vmatprep.mubr.bf16.mxu1 %v2910_v42  ;;  %3516 = vmatprep.mubr.bf16.mxu0 %v2910_v42  ;;  %v2806_v16 = vmul.f32 %v5999_v2, %v7725_v56  ;;  %v2805_v19 = vmul.f32 %v5999_v2, %v7722_v22  ;;  %v7989_v5 = vadd.f32 %v7773_v59, %v2848_v55  ;;  %v7995_v22 = vld [vmem:[#allocation13 + $0x1c0] ss:$8 sps:$4 sm:$0xff]   ;;  %v5758_v42 = vld [vmem:[#allocation13 + $0xb4] ss:$8 sps:$4 sm:$0xff]  }
 0x649   : > { %3404 = vmatmul.mubr.bf16.gmra.mxu1 %v2909_v24  ;;  %4172 = vmatprep.subr.bf16.mxu0 %v7974_v47  ;;  %v7992_v56 = vadd.f32 %v7770_v25, %v2847_v36 }
 0x64a   : > { %3517 = vmatmul.mubr.bf16.gmra.mxu0 %v2909_v24  ;;  %v2850_v33 = vmul.f32 %v7761_v30, %v2806_v16  ;;  %v2849_v3 = vmul.f32 %v7758_v6, %v2805_v19  ;;  %4060 = vmatpush2.bf16.msra.mxu1 %v5744_v0  ;;  %8901 = vst [vmem:[#allocation50_spill] sm:$0xff] %v7989_v5  ;;  %v5756_v16 = vld [vmem:[#allocation13 + $0xb0] ss:$8 sps:$4 sm:$0xff]   ;;  %v8010_v19 = vld [vmem:[#allocation13 + $0x1b4] ss:$8 sps:$4 sm:$0xff]  }
 0x64b   : > { %v6001_v51 = vpop.eup %6000  ;;  %8902 = vst [vmem:[#allocation51_spill] sm:$0xff] %v7992_v56  ;;  %4173 = vmatpush2.bf16.msra.mxu0 %v7979_v39  ;;  %4061 = vmatprep.subr.bf16.mxu1 %v5752_v31 }
 0x64c   : > { %v7998_v24 = vadd.f32 %v7773_v59, %v2850_v33  ;;  %v8001_v0 = vadd.f32 %v7770_v25, %v2849_v3  ;;  %v2808_v2 = vmul.f32 %v6001_v51, %v7735_v29  ;;  %v2807_v55 = vmul.f32 %v6001_v51, %v7732_v53  ;;  %4174 = vmatprep.subr.bf16.mxu0 %v7983_v4  ;;  %v8014_v29 = vld [vmem:[#allocation13 + $0x1b0] ss:$8 sps:$4 sm:$0xff]  }
 0x64e   : > { %8903 = vst [vmem:[#allocation52_spill] sm:$0xff] %v7998_v24  ;;  %8904 = vst [vmem:[#allocation53_spill] sm:$0xff] %v8001_v0  ;;  %v2912_v36 = vpack.c.bf16 %v7998_v24, %v7989_v5  ;;  %v2911_v31 = vpack.c.bf16 %v8001_v0, %v7992_v56  ;;  %4062 = vmatpush2.bf16.msra.mxu1 %v5750_v38  ;;  %v2852_v3 = vmul.f32 %v7761_v30, %v2808_v2 }
 0x64f   : > { %v6003_v33 = vpop.eup %6002  ;;  %4175 = vmatpush2.bf16.msra.mxu0 %v7995_v22  ;;  %4063 = vmatprep.subr.bf16.mxu1 %v5758_v42  ;;  %v2851_v24 = vmul.f32 %v7758_v6, %v2807_v55  ;;  %v5764_v55 = vld [vmem:[#allocation13 + $0xa4] ss:$8 sps:$4 sm:$0xff]  }
 0x650   : > { %3413 = vmatprep.mubr.bf16.mxu1 %v2912_v36  ;;  %3526 = vmatprep.mubr.bf16.mxu0 %v2912_v36  ;;  %v2810_v53 = vmul.f32 %v6003_v33, %v7745_v13  ;;  %v2809_v51 = vmul.f32 %v6003_v33, %v7742_v58  ;;  %v8024_v42 = vadd.f32 %v7773_v59, %v2852_v3  ;;  %v8039_v36 = vld [vmem:[#allocation13 + $0x1a4] ss:$8 sps:$4 sm:$0xff]  }
 0x651   : > { %3414 = vmatmul.mubr.bf16.gmra.mxu1 %v2911_v31  ;;  %4176 = vmatprep.subr.bf16.mxu0 %v8010_v19  ;;  %v8030_v58 = vadd.f32 %v7770_v25, %v2851_v24  ;;  %v8045_v24 = vld [vmem:[#allocation13 + $0x194] ss:$8 sps:$4 sm:$0xff]   ;;  %v5776_v33 = vld [vmem:[#allocation13 + $0x84] ss:$8 sps:$4 sm:$0xff]  }
 0x652   : > { %3527 = vmatmul.mubr.bf16.gmra.mxu0 %v2911_v31  ;;  %v2854_v38 = vmul.f32 %v7761_v30, %v2810_v53  ;;  %v2853_v0 = vmul.f32 %v7758_v6, %v2809_v51  ;;  %4064 = vmatpush2.bf16.msra.mxu1 %v5756_v16  ;;  %8905 = vst [vmem:[#allocation54_spill] sm:$0xff] %v8024_v42  ;;  %v8041_v31 = vld [vmem:[#allocation13 + $0x1a0] ss:$8 sps:$4 sm:$0xff]   ;;  %v8047_v16 = vld [vmem:[#allocation13 + $0x190] ss:$8 sps:$4 sm:$0xff]  }
 0x653   : > { %4177 = vmatpush2.bf16.msra.mxu0 %v8014_v29  ;;  %8907 = vst [vmem:[#allocation56_spill] sm:$0xff] %v8030_v58  ;;  %4065 = vmatprep.subr.bf16.mxu1 %v5764_v55  ;;  %v8051_v3 = vld [vmem:[#allocation13 + $0x184] ss:$8 sps:$4 sm:$0xff]   ;;  %v5774_v53 = vld [vmem:[#allocation13 + $0x80] ss:$8 sps:$4 sm:$0xff]  }
 0x654   : > { %v8027_v13 = vadd.f32 %v7773_v59, %v2854_v38  ;;  %v8033_v2 = vadd.f32 %v7770_v25, %v2853_v0  ;;  %v5762_v59 = vld [vmem:[#allocation13 + $0xa0] ss:$8 sps:$4 sm:$0xff]   ;;  %4178 = vmatprep.subr.bf16.mxu0 %v8039_v36  ;;  %v5770_v25 = vld [vmem:[#allocation13 + $0x94] ss:$8 sps:$4 sm:$0xff]   ;;  %v5768_v0 = vld [vmem:[#allocation13 + $0x90] ss:$8 sps:$4 sm:$0xff]  }
 0x655   : > { %v8053_v51 = vld [vmem:[#allocation13 + $0x180] ss:$8 sps:$4 sm:$0xff]  }
 0x656   : > { %8906 = vst [vmem:[#allocation55_spill] sm:$0xff] %v8027_v13  ;;  %8908 = vst [vmem:[#allocation57_spill] sm:$0xff] %v8033_v2  ;;  %v2914_v6 = vpack.c.bf16 %v8027_v13, %v8024_v42  ;;  %v2913_v30 = vpack.c.bf16 %v8033_v2, %v8030_v58  ;;  %4066 = vmatpush2.bf16.msra.mxu1 %v5762_v59  ;;  %v8909_v38 = vld [vmem:[#allocation25_spill] sm:$0xff] }
 0x657   : > { %4179 = vmatpush2.bf16.msra.mxu0 %v8041_v31  ;;  %4067 = vmatprep.subr.bf16.mxu1 %v5770_v25  ;;  %v2979_v55 = vld [vmem:[%s8910_s15] sm:$0xf]  ;;  %s6363_s15 = smov [#allocation14]  }
 0x658   : > { %3423 = vmatprep.mubr.bf16.mxu1 %v2914_v6  ;;  %3536 = vmatprep.mubr.bf16.mxu0 %v2914_v6  ;;  %v2995_v6 = vsub.s32 3, %v8909_v38  ;;  %s6258_s17 = sshll.u32 %s6363_s15, 4  ;;  %s6259_s17 = int_to_ptr.vmem [resolvable:$false] %s6258_s17 }
 0x659   : > { %3424 = vmatmul.mubr.bf16.gmra.mxu1 %v2913_v30  ;;  %4180 = vmatprep.subr.bf16.mxu0 %v8045_v24  ;;  %s6260_s9 = scalar_lea.vmem %s6259_s17, 8192  ;;  %p6261_p11 = scmp.lt.s32.totalorder %s8679_s12, %s6259_s17 }
 0x65a   : > { %3537 = vmatmul.mubr.bf16.gmra.mxu0 %v2913_v30  ;;  %4068 = vmatpush2.bf16.msra.mxu1 %v5768_v0  ;;  %v2991_v30 = vsub.s32 2, %v8909_v38  ;;  %v8064_v0 = vrot.slane %v2979_v55, %v8876_v28  ;;  %p6262_p12 = scmp.lt.s32.totalorder %s6260_s9, %s6254_s14 }
 0x65b   : > { %4181 = vmatpush2.bf16.msra.mxu0 %v8047_v16  ;;  %4069 = vmatprep.subr.bf16.mxu1 %v5776_v33  ;;  %v8066_v33 = vrot.slane %v2979_v55, %v2995_v6 }
 0x65c   : > { %4182 = vmatprep.subr.bf16.mxu0 %v8051_v3  ;;  %v8071_v13 = vrot.slane %v2979_v55, %v2991_v30  ;;  %p6263_p3 = por %p6262_p12, %p6261_p11 }
 0x65e   : > { %4070 = vmatpush2.bf16.msra.mxu1 %v5774_v53  ;;  %v8069_v53 = vrot.slane %v2979_v55, %v8875_v23  ;;  %p6264_p7 = pnand %p6263_p3, %p6257_p10 }
 0x65f   : > { %4183 = vmatpush2.bf16.msra.mxu0 %v8053_v51  ;;  %5304 = vmatprep.subr.bf16.mxu1 %v7751_v15 }
 0x6e1   : > { %v3355_v59 = vpop.f32.mrf.mxu1  ;;  %v3468_v25 = vpop.f32.mrf.mxu0 }
 0x6e2   : > { %v3356_v6 = vadd.f32 %v3355_v59, %v8069_v53  ;;  %v3469_v32 = vadd.f32 %v3468_v25, %v8071_v13 }
 0x6e3   : > { %v3357_v15 = vpop.f32.mrf.mxu1  ;;  %v3470_v2 = vpop.f32.mrf.mxu0 }
 0x6e4   : > { %v3358_v58 = vadd.f32 %v3357_v15, %v8064_v0  ;;  %v3471_v5 = vadd.f32 %v3470_v2, %v8066_v33  ;;  %v3547_v54 = vmax.f32 %v3356_v6, 0.0 }
 0x6e5   : > { %v3359_v42 = vpop.f32.mrf.mxu1  ;;  %v3472_v38 = vpop.f32.mrf.mxu0 }
 0x6e6   : > { %v3360_v56 = vadd.f32 %v3359_v42, %v8069_v53  ;;  %v3473_v46 = vadd.f32 %v3472_v38, %v8071_v13  ;;  %v3548_v27 = vmax.f32 %v3358_v58, 0.0  ;;  %v3550_v2 = vmax.f32 %v3471_v5, 0.0 }
 0x6e7   : > { %v3361_v1 = vpop.f32.mrf.mxu1  ;;  %v3474_v18 = vpop.f32.mrf.mxu0  ;;  %v3549_v38 = vmax.f32 %v3469_v32, 0.0 }
 0x6e8   : > { %v3362_v30 = vadd.f32 %v3361_v1, %v8064_v0  ;;  %v3475_v55 = vadd.f32 %v3474_v18, %v8066_v33  ;;  %v3551_v17 = vmax.f32 %v3360_v56, 0.0  ;;  %v3553_v41 = vmax.f32 %v3473_v46, 0.0 }
 0x6e9   : > { %v3365_v52 = vpop.f32.mrf.mxu1 }
 0x6ea   : > { %v3478_v15 = vpop.f32.mrf.mxu0  ;;  %v3552_v60 = vmax.f32 %v3362_v30, 0.0  ;;  %v3554_v42 = vmax.f32 %v3475_v55, 0.0  ;;  %v3611_v10 = vpack.c.bf16 %v3551_v17, %v3547_v54  ;;  %v3613_v63 = vpack.c.bf16 %v3553_v41, %v3549_v38 }
 0x6eb   : > { %v3367_v12 = vpop.f32.mrf.mxu1  ;;  %v3366_v32 = vadd.f32 %v3365_v52, %v8069_v53  ;;  %v3479_v58 = vadd.f32 %v3478_v15, %v8071_v13 }
 0x6ec   : > { %v3480_v59 = vpop.f32.mrf.mxu0  ;;  %v3612_v48 = vpack.c.bf16 %v3552_v60, %v3548_v27  ;;  %v3614_v25 = vpack.c.bf16 %v3554_v42, %v3550_v2  ;;  %v3368_v1 = vadd.f32 %v3367_v12, %v8064_v0 }
 0x6ed   : > { %v3369_v26 = vpop.f32.mrf.mxu1  ;;  %v3481_v46 = vadd.f32 %v3480_v59, %v8066_v33  ;;  %v3555_v15 = vmax.f32 %v3366_v32, 0.0  ;;  %v3557_v2 = vmax.f32 %v3479_v58, 0.0 }
 0x6ee   : > { %v3482_v18 = vpop.f32.mrf.mxu0  ;;  %v3370_v56 = vadd.f32 %v3369_v26, %v8069_v53  ;;  %4071 = vmatprep.mubr.bf16.mxu1 %v3612_v48  ;;  %4184 = vmatprep.mubr.bf16.mxu0 %v3614_v25  ;;  %v3556_v48 = vmax.f32 %v3368_v1, 0.0 }
 0x6ef   : > { %v3483_v5 = vadd.f32 %v3482_v18, %v8071_v13  ;;  %v3371_v27 = vpop.f32.mrf.mxu1  ;;  %4072 = vmatmul.mubr.bf16.vlgmr.msra.gmra.mxu1 %v3611_v10  ;;  %4185 = vmatmul.mubr.bf16.vlgmr.msra.gmra.mxu0 %v3613_v63  ;;  %v3558_v52 = vmax.f32 %v3481_v46, 0.0 }
 0x6f0   : > { %v3484_v60 = vpop.f32.mrf.mxu0  ;;  %v3372_v54 = vadd.f32 %v3371_v27, %v8064_v0  ;;  %5320 = vmatpush1.bf16.msra.mxu1 %v7798_v45  ;;  %v3559_v41 = vmax.f32 %v3370_v56, 0.0 }
 0x6f1   : > { %v3485_v12 = vadd.f32 %v3484_v60, %v8066_v33  ;;  %v3561_v26 = vmax.f32 %v3483_v5, 0.0  ;;  %v3375_v17 = vpop.f32.mrf.mxu1  ;;  %5305 = vmatprep.subr.bf16.mxu1 %v7802_v34 }
 0x6f2   : > { %v3488_v6 = vpop.f32.mrf.mxu0  ;;  %v3560_v30 = vmax.f32 %v3372_v54, 0.0  ;;  %v3615_v59 = vpack.c.bf16 %v3559_v41, %v3555_v15  ;;  %v3376_v5 = vadd.f32 %v3375_v17, %v8069_v53 }
 0x6f3   : > { %v3562_v55 = vmax.f32 %v3485_v12, 0.0  ;;  %v3377_v10 = vpop.f32.mrf.mxu1  ;;  %v3617_v45 = vpack.c.bf16 %v3561_v26, %v3557_v2 }
 0x6f4   : > { %v3490_v63 = vpop.f32.mrf.mxu0  ;;  %v3616_v42 = vpack.c.bf16 %v3560_v30, %v3556_v48  ;;  %5321 = vmatpush1.bf16.msra.mxu1 %v7809_v43  ;;  %v3378_v25 = vadd.f32 %v3377_v10, %v8064_v0  ;;  %v3489_v43 = vadd.f32 %v3488_v6, %v8071_v13 }
 0x6f5   : > { %v3618_v38 = vpack.c.bf16 %v3562_v55, %v3558_v52  ;;  %v3379_v18 = vpop.f32.mrf.mxu1  ;;  %5306 = vmatprep.subr.bf16.mxu1 %v7818_v9  ;;  %v3491_v34 = vadd.f32 %v3490_v63, %v8066_v33  ;;  %v3563_v52 = vmax.f32 %v3376_v5, 0.0 }
 0x6f6   : > { %v3492_v56 = vpop.f32.mrf.mxu0  ;;  %v3380_v1 = vadd.f32 %v3379_v18, %v8069_v53  ;;  %4081 = vmatprep.mubr.bf16.mxu1 %v3616_v42  ;;  %v3564_v26 = vmax.f32 %v3378_v25, 0.0  ;;  %v3565_v30 = vmax.f32 %v3489_v43, 0.0 }
 0x6f7   : > { %v3493_v46 = vadd.f32 %v3492_v56, %v8071_v13  ;;  %4194 = vmatprep.mubr.bf16.mxu0 %v3618_v38  ;;  %v3381_v32 = vpop.f32.mrf.mxu1  ;;  %4082 = vmatmul.mubr.bf16.gmra.mxu1 %v3615_v59  ;;  %v3566_v17 = vmax.f32 %v3491_v34, 0.0 }
 0x6f8   : > { %v3494_v58 = vpop.f32.mrf.mxu0  ;;  %4195 = vmatmul.mubr.bf16.gmra.mxu0 %v3617_v45  ;;  %v3382_v27 = vadd.f32 %v3381_v32, %v8064_v0  ;;  %5322 = vmatpush1.bf16.msra.mxu1 %v7833_v62  ;;  %v3567_v60 = vmax.f32 %v3380_v1, 0.0 }
 0x6f9   : > { %v3495_v9 = vadd.f32 %v3494_v58, %v8066_v33  ;;  %v3569_v54 = vmax.f32 %v3493_v46, 0.0  ;;  %v3385_v12 = vpop.f32.mrf.mxu1  ;;  %5307 = vmatprep.subr.bf16.mxu1 %v7838_v40 }
 0x6fa   : > { %v3498_v41 = vpop.f32.mrf.mxu0  ;;  %v3568_v48 = vmax.f32 %v3382_v27, 0.0  ;;  %v3619_v63 = vpack.c.bf16 %v3567_v60, %v3563_v52  ;;  %v3386_v18 = vadd.f32 %v3385_v12, %v8069_v53 }
 0x6fb   : > { %v3570_v6 = vmax.f32 %v3495_v9, 0.0  ;;  %v3387_v55 = vpop.f32.mrf.mxu1  ;;  %v3621_v62 = vpack.c.bf16 %v3569_v54, %v3565_v30 }
 0x6fc   : > { %v3500_v15 = vpop.f32.mrf.mxu0  ;;  %v3620_v2 = vpack.c.bf16 %v3568_v48, %v3564_v26  ;;  %5323 = vmatpush1.bf16.msra.mxu1 %v7845_v7  ;;  %v3388_v42 = vadd.f32 %v3387_v55, %v8064_v0  ;;  %v3499_v7 = vadd.f32 %v3498_v41, %v8071_v13  ;;  %v3571_v54 = vmax.f32 %v3386_v18, 0.0 }
 0x6fd   : > { %v3622_v10 = vpack.c.bf16 %v3570_v6, %v3566_v17  ;;  %v3389_v38 = vpop.f32.mrf.mxu1  ;;  %5308 = vmatprep.subr.bf16.mxu1 %v7854_v44  ;;  %v3501_v40 = vadd.f32 %v3500_v15, %v8066_v33 }
 0x6fe   : > { %v3502_v59 = vpop.f32.mrf.mxu0  ;;  %v3390_v45 = vadd.f32 %v3389_v38, %v8069_v53  ;;  %4091 = vmatprep.mubr.bf16.mxu1 %v3620_v2  ;;  %v3572_v58 = vmax.f32 %v3388_v42, 0.0  ;;  %v3573_v12 = vmax.f32 %v3499_v7, 0.0 }
 0x6ff   : > { %v3503_v25 = vadd.f32 %v3502_v59, %v8071_v13  ;;  %4204 = vmatprep.mubr.bf16.mxu0 %v3622_v10  ;;  %v3391_v56 = vpop.f32.mrf.mxu1  ;;  %4092 = vmatmul.mubr.bf16.gmra.mxu1 %v3619_v63  ;;  %v3574_v27 = vmax.f32 %v3501_v40, 0.0 }
 0x700   : > { %v3504_v34 = vpop.f32.mrf.mxu0  ;;  %4205 = vmatmul.mubr.bf16.gmra.mxu0 %v3621_v62  ;;  %v3392_v1 = vadd.f32 %v3391_v56, %v8064_v0  ;;  %5324 = vmatpush1.bf16.msra.mxu1 %v7869_v49  ;;  %v3575_v46 = vmax.f32 %v3390_v45, 0.0 }
 0x701   : > { %v3505_v44 = vadd.f32 %v3504_v34, %v8066_v33  ;;  %v3577_v5 = vmax.f32 %v3503_v25, 0.0  ;;  %v3395_v43 = vpop.f32.mrf.mxu1  ;;  %5309 = vmatprep.subr.bf16.mxu1 %v7874_v37 }
 0x702   : > { %v8114_v32 = vpop.f32.mrf.mxu0  ;;  %v3576_v9 = vmax.f32 %v3392_v1, 0.0  ;;  %v3623_v49 = vpack.c.bf16 %v3575_v46, %v3571_v54  ;;  %v3396_v15 = vadd.f32 %v3395_v43, %v8069_v53 }
 0x703   : > { %v3578_v60 = vmax.f32 %v3505_v44, 0.0  ;;  %v3397_v41 = vpop.f32.mrf.mxu1  ;;  %v3625_v6 = vpack.c.bf16 %v3577_v5, %v3573_v12 }
 0x704   : > { %v8117_v26 = vpop.f32.mrf.mxu0  ;;  %v3624_v17 = vpack.c.bf16 %v3576_v9, %v3572_v58  ;;  %5325 = vmatpush1.bf16.msra.mxu1 %v7881_v21  ;;  %v3398_v37 = vadd.f32 %v3397_v41, %v8064_v0  ;;  %v3579_v59 = vmax.f32 %v3396_v15, 0.0 }
 0x705   : > { %v3626_v48 = vpack.c.bf16 %v3578_v60, %v3574_v27  ;;  %v3399_v52 = vpop.f32.mrf.mxu1  ;;  %5310 = vmatprep.subr.bf16.mxu1 %v7890_v50 }
 0x706   : > { %v8120_v30 = vpop.f32.mrf.mxu0  ;;  %v3400_v55 = vadd.f32 %v3399_v52, %v8069_v53  ;;  %4101 = vmatprep.mubr.bf16.mxu1 %v3624_v17  ;;  %v3580_v42 = vmax.f32 %v3398_v37, 0.0 }
 0x707   : > { %4214 = vmatprep.mubr.bf16.mxu0 %v3626_v48  ;;  %v3401_v2 = vpop.f32.mrf.mxu1  ;;  %4102 = vmatmul.mubr.bf16.gmra.mxu1 %v3623_v49 }
 0x708   : > { %v8126_v10 = vpop.f32.mrf.mxu0  ;;  %4215 = vmatmul.mubr.bf16.gmra.mxu0 %v3625_v6  ;;  %v3402_v21 = vadd.f32 %v3401_v2, %v8064_v0  ;;  %5326 = vmatpush1.bf16.msra.mxu1 %v7905_v11  ;;  %v3583_v63 = vmax.f32 %v3400_v55, 0.0 }
 0x709   : > { %v3405_v62 = vpop.f32.mrf.mxu1  ;;  %5311 = vmatprep.subr.bf16.mxu1 %v7910_v35 }
 0x70a   : > { %v8130_v50 = vpop.f32.mrf.mxu0  ;;  %v3584_v38 = vmax.f32 %v3402_v21, 0.0  ;;  %v3627_v18 = vpack.c.bf16 %v3583_v63, %v3579_v59  ;;  %v3406_v35 = vadd.f32 %v3405_v62, %v8069_v53  ;;  %v3515_v63 = vadd.f32 %v8126_v10, %v8066_v33 }
 0x70b   : > { %v3407_v40 = vpop.f32.mrf.mxu1 }
 0x70c   : > { %v8133_v45 = vpop.f32.mrf.mxu0  ;;  %v3628_v25 = vpack.c.bf16 %v3584_v38, %v3580_v42  ;;  %5327 = vmatpush1.bf16.msra.mxu1 %v7917_v8  ;;  %v3408_v11 = vadd.f32 %v3407_v40, %v8064_v0  ;;  %v3587_v43 = vmax.f32 %v3406_v35, 0.0  ;;  %v3586_v10 = vmax.f32 %v3515_v63, 0.0 }
 0x70d   : > { %v3409_v7 = vpop.f32.mrf.mxu1  ;;  %5312 = vmatprep.subr.bf16.mxu1 %v7926_v20 }
 0x70e   : > { %v3410_v56 = vadd.f32 %v3409_v7, %v8069_v53  ;;  %4111 = vmatprep.mubr.bf16.mxu1 %v3628_v25  ;;  %v8140_v34 = vpop.f32.mrf.mxu0  ;;  %v3588_v20 = vmax.f32 %v3408_v11, 0.0 }
 0x70f   : > { %v3411_v1 = vpop.f32.mrf.mxu1  ;;  %4112 = vmatmul.mubr.bf16.gmra.mxu1 %v3627_v18 }
 0x710   : > { %v3412_v44 = vadd.f32 %v3411_v1, %v8064_v0  ;;  %5328 = vmatpush2.bf16.msra.mxu1 %v7941_v14  ;;  %v3591_v8 = vmax.f32 %v3410_v56, 0.0  ;;  %v3524_v58 = vpop.f32.mrf.mxu0  ;;  %v3521_v1 = vadd.f32 %v8133_v45, %v8066_v33 }
 0x711   : > { %v3415_v46 = vpop.f32.mrf.mxu1  ;;  %5313 = vmatprep.subr.bf16.mxu1 %v7946_v57 }
 0x712   : > { %v3592_v5 = vmax.f32 %v3412_v44, 0.0  ;;  %v3631_v60 = vpack.c.bf16 %v3591_v8, %v3587_v43  ;;  %v3416_v41 = vadd.f32 %v3415_v46, %v8069_v53  ;;  %v8150_v57 = vpop.f32.mrf.mxu0  ;;  %v3590_v8 = vmax.f32 %v3521_v1, 0.0 }
 0x713   : > { %v3417_v27 = vpop.f32.mrf.mxu1 }
 0x714   : > { %v3632_v9 = vpack.c.bf16 %v3592_v5, %v3588_v20  ;;  %5329 = vmatpush2.bf16.msra.mxu1 %v7959_v61  ;;  %v3418_v12 = vadd.f32 %v3417_v27, %v8064_v0  ;;  %v3595_v52 = vmax.f32 %v3416_v41, 0.0  ;;  %v3530_v37 = vpop.f32.mrf.mxu0 }
 0x715   : > { %v3419_v54 = vpop.f32.mrf.mxu1  ;;  %5314 = vmatprep.subr.bf16.mxu1 %v7974_v47 }
 0x716   : > { %v3420_v14 = vadd.f32 %v3419_v54, %v8069_v53  ;;  %4121 = vmatprep.mubr.bf16.mxu1 %v3632_v9  ;;  %v3596_v47 = vmax.f32 %v3418_v12, 0.0 }
 0x717   : > { %v3421_v17 = vpop.f32.mrf.mxu1  ;;  %4122 = vmatmul.mubr.bf16.gmra.mxu1 %v3631_v60 }
 0x718   : > { %v3422_v48 = vadd.f32 %v3421_v17, %v8064_v0  ;;  %5330 = vmatpush2.bf16.msra.mxu1 %v7979_v39  ;;  %v3599_v61 = vmax.f32 %v3420_v14, 0.0  ;;  %v3529_v14 = vadd.f32 %v8150_v57, %v8071_v13 }
 0x719   : > { %v3425_v49 = vpop.f32.mrf.mxu1  ;;  %5315 = vmatprep.subr.bf16.mxu1 %v7983_v4  ;;  %v3532_v4 = vpop.f32.mrf.mxu0 }
 0x71a   : > { %v3600_v6 = vmax.f32 %v3422_v48, 0.0  ;;  %v3635_v2 = vpack.c.bf16 %v3599_v61, %v3595_v52  ;;  %v3426_v42 = vadd.f32 %v3425_v49, %v8069_v53  ;;  %v3533_v54 = vadd.f32 %v3532_v4, %v8071_v13 }
 0x71b   : > { %v3427_v55 = vpop.f32.mrf.mxu1  ;;  %v3534_v18 = vpop.f32.mrf.mxu0  ;;  %v3597_v48 = vmax.f32 %v3529_v14, 0.0 }
 0x71c   : > { %v3636_v15 = vpack.c.bf16 %v3600_v6, %v3596_v47  ;;  %5331 = vmatpush2.bf16.msra.mxu1 %v7995_v22  ;;  %v3428_v39 = vadd.f32 %v3427_v55, %v8064_v0  ;;  %v3511_v22 = vadd.f32 %v8117_v26, %v8066_v33  ;;  %v3603_v7 = vmax.f32 %v3426_v42, 0.0 }
 0x71d   : > { %v3429_v21 = vpop.f32.mrf.mxu1  ;;  %5316 = vmatprep.subr.bf16.mxu1 %v8010_v19  ;;  %v3538_v35 = vpop.f32.mrf.mxu0  ;;  %v3535_v5 = vadd.f32 %v3534_v18, %v8066_v33  ;;  %v3601_v41 = vmax.f32 %v3533_v54, 0.0 }
 0x71e   : > { %v3430_v62 = vadd.f32 %v3429_v21, %v8069_v53  ;;  %4131 = vmatprep.mubr.bf16.mxu1 %v3636_v15  ;;  %v3604_v40 = vmax.f32 %v3428_v39, 0.0  ;;  %v3582_v11 = vmax.f32 %v3511_v22, 0.0  ;;  %v3513_v53 = vadd.f32 %v8120_v30, %v8071_v13 }
 0x71f   : > { %v3431_v38 = vpop.f32.mrf.mxu1  ;;  %4132 = vmatmul.mubr.bf16.gmra.mxu1 %v3635_v2  ;;  %v3540_v44 = vpop.f32.mrf.mxu0  ;;  %v3637_v49 = vpack.c.bf16 %v3601_v41, %v3597_v48  ;;  %v3539_v52 = vadd.f32 %v3538_v35, %v8071_v13 }
 0x720   : > { %v3432_v59 = vadd.f32 %v3431_v38, %v8064_v0  ;;  %5332 = vmatpush2.bf16.msra.mxu1 %v8014_v29  ;;  %v3607_v19 = vmax.f32 %v3430_v62, 0.0  ;;  %v3630_v0 = vpack.c.bf16 %v3586_v10, %v3582_v11  ;;  %v3525_v29 = vadd.f32 %v3524_v58, %v8066_v33 }
 0x721   : > { %5317 = vmatprep.subr.bf16.mxu1 %v8039_v36  ;;  %v3509_v36 = vadd.f32 %v8114_v32, %v8071_v13  ;;  %v3523_v32 = vadd.f32 %v8140_v34, %v8071_v13  ;;  %v3542_v45 = vpop.f32.mrf.mxu0  ;;  %v3602_v58 = vmax.f32 %v3535_v5, 0.0  ;;  %v3605_v55 = vmax.f32 %v3539_v52, 0.0 }
 0x722   : > { %v3608_v25 = vmax.f32 %v3432_v59, 0.0  ;;  %v3639_v26 = vpack.c.bf16 %v3607_v19, %v3603_v7  ;;  %v3594_v30 = vmax.f32 %v3525_v29, 0.0  ;;  %v3543_v47 = vadd.f32 %v3542_v45, %v8071_v13  ;;  %v8913_v7 = vld [vmem:[#allocation33_spill] sm:$0xff] }
 0x723   : > { %v3593_v43 = vmax.f32 %v3523_v32, 0.0  ;;  %v3544_v9 = vpop.f32.mrf.mxu0 }
 0x724   : > { %v3640_v56 = vpack.c.bf16 %v3608_v25, %v3604_v40  ;;  %5333 = vmatpush2.bf16.msra.mxu1 %v8041_v31  ;;  %v3585_v31 = vmax.f32 %v3513_v53, 0.0  ;;  %v3634_v20 = vpack.c.bf16 %v3594_v30, %v3590_v8  ;;  %v3545_v12 = vadd.f32 %v3544_v9, %v8066_v33  ;;  %v8912_v25 = vld [vmem:[#allocation29_spill] sm:$0xff]  ;;  %v8914_v30 = vld [vmem:[#allocation36_spill] sm:$0xff] }
 0x725   : > { %5318 = vmatprep.subr.bf16.mxu1 %v8045_v24  ;;  %v3581_v24 = vmax.f32 %v3509_v36, 0.0 }
 0x726   : > { %4141 = vmatprep.mubr.bf16.mxu1 %v3640_v56  ;;  %v3610_v17 = vmax.f32 %v3545_v12, 0.0 }
 0x727   : > { %4142 = vmatmul.mubr.bf16.gmra.mxu1 %v3639_v26  ;;  %v3629_v46 = vpack.c.bf16 %v3585_v31, %v3581_v24 }
 0x728   : > { %5334 = vmatpush2.bf16.msra.mxu1 %v8047_v16  ;;  %4224 = vmatprep.mubr.bf16.mxu1 %v3630_v0  ;;  %v3519_v16 = vadd.f32 %v8130_v50, %v8071_v13  ;;  %v3541_v50 = vadd.f32 %v3540_v44, %v8066_v33  ;;  %v8915_v44 = vld [vmem:[#allocation31_spill] sm:$0xff] }
 0x729   : > { %5319 = vmatprep.subr.bf16.mxu1 %v8051_v3  ;;  %v3531_v3 = vadd.f32 %v3530_v37, %v8066_v33  ;;  %v3609_v37 = vmax.f32 %v3543_v47, 0.0  ;;  %v3707_v33 = vld [vmem:[%s8911_s25] sm:$0x3] }
 0x72a   : > { %v3589_v27 = vmax.f32 %v3519_v16, 0.0  ;;  %v3606_v61 = vmax.f32 %v3541_v50, 0.0  ;;  %v8196_v57 = vrot.slane %v3707_v33, %v8875_v23  ;;  %v8199_v2 = vrot.slane %v3707_v33, %v8876_v28 }
 0x72b   : > { %v3641_v15 = vpack.c.bf16 %v3609_v37, %v3605_v55 }
 0x72c   : > { %5335 = vmatpush2.bf16.msra.mxu1 %v8053_v51  ;;  %v3598_v51 = vmax.f32 %v3531_v3, 0.0  ;;  %v3633_v60 = vpack.c.bf16 %v3593_v43, %v3589_v27  ;;  %v3642_v6 = vpack.c.bf16 %v3610_v17, %v3606_v61  ;;  %v8916_v27 = vld [vmem:[#allocation34_spill] sm:$0xff] }
 0x72e   : > { %v3638_v34 = vpack.c.bf16 %v3602_v58, %v3598_v51  ;;  %v8917_v51 = vld [vmem:[#allocation28_spill] sm:$0xff] }
 0x72f   : > { %4225 = vmatmul.mubr.bf16.vlgmr.msra.gmra.mxu1 %v3629_v46 }
 0x730   : > { %4234 = vmatprep.mubr.bf16.mxu1 %v3634_v20 }
 0x737   : > { %4235 = vmatmul.mubr.bf16.gmra.mxu1 %v3633_v60 }
 0x738   : > { %4244 = vmatprep.mubr.bf16.mxu1 %v3638_v34 }
 0x73f   : > { %4245 = vmatmul.mubr.bf16.gmra.mxu1 %v3637_v49  ;;  %v8918_v49 = vld [vmem:[#allocation39_spill] sm:$0xff] }
 0x740   : > { %4254 = vmatprep.mubr.bf16.mxu1 %v3642_v6  ;;  %v8919_v6 = vld [vmem:[#allocation44_spill] sm:$0xff] }
 0x747   : > { %4255 = vmatmul.mubr.bf16.gmra.mxu1 %v3641_v15 }
 0x7af   : > { %v4073_v21 = vpop.f32.mrf.mxu1  ;;  %v4186_v63 = vpop.f32.mrf.mxu0 }
 0x7b0   : > { %v4074_v13 = vadd.f32 %v4073_v21, %v8196_v57 }
 0x7b1   : > { %v4075_v39 = vpop.f32.mrf.mxu1  ;;  %v4188_v62 = vpop.f32.mrf.mxu0 }
 0x7b2   : > { %v4187_v4 = vadd.f32 %v4186_v63, %v4074_v13  ;;  %v4076_v42 = vadd.f32 %v4075_v39, %v8199_v2 }
 0x7b3   : > { %v4077_v38 = vpop.f32.mrf.mxu1  ;;  %v4190_v22 = vpop.f32.mrf.mxu0 }
 0x7b4   : > { %v4189_v59 = vadd.f32 %v4188_v62, %v4076_v42  ;;  %v4078_v19 = vadd.f32 %v4077_v38, %v8196_v57  ;;  %v8205_v18 = vadd.f32 %v4187_v4, %v8912_v25  ;;  %v8920_v4 = vld [vmem:[#allocation37_spill] sm:$0xff]  ;;  %v8921_v38 = vld [vmem:[#allocation38_spill] sm:$0xff] }
 0x7b5   : > { %v4079_v10 = vpop.f32.mrf.mxu1  ;;  %v4192_v40 = vpop.f32.mrf.mxu0 }
 0x7b6   : > { %v8208_v11 = vadd.f32 %v4189_v59, %v8913_v7  ;;  %v4191_v56 = vadd.f32 %v4190_v22, %v4078_v19  ;;  %v4080_v53 = vadd.f32 %v4079_v10, %v8199_v2 }
 0x7b7   : > { %v4083_v26 = vpop.f32.mrf.mxu1 }
 0x7b8   : > { %v4196_v0 = vpop.f32.mrf.mxu0  ;;  %v4193_v29 = vadd.f32 %v4192_v40, %v4080_v53  ;;  %v4084_v36 = vadd.f32 %v4083_v26, %v8196_v57  ;;  %v4297_v35 = vadd.f32 %v8208_v11, %v8205_v18  ;;  %v8215_v24 = vadd.f32 %v4191_v56, %v8914_v30 }
 0x7b9   : > { %v4085_v1 = vpop.f32.mrf.mxu1 }
 0x7ba   : > { %v4198_v31 = vpop.f32.mrf.mxu0  ;;  %v8218_v8 = vadd.f32 %v4193_v29, %v8915_v44  ;;  %v4197_v46 = vadd.f32 %v4196_v0, %v4084_v36  ;;  %v4086_v32 = vadd.f32 %v4085_v1, %v8199_v2  ;;  %4298 = vadd.xlane.f32.xlu0 %v4297_v35  ;;  %v8922_v0 = vld [vmem:[#allocation32_spill] sm:$0xff]  ;;  %v8923_v36 = vld [vmem:[#allocation42_spill] sm:$0xff] }
 0x7bb   : > { %v4087_v20 = vpop.f32.mrf.mxu1 }
 0x7bc   : > { %v4200_v5 = vpop.f32.mrf.mxu0  ;;  %v4199_v16 = vadd.f32 %v4198_v31, %v4086_v32  ;;  %v4088_v45 = vadd.f32 %v4087_v20, %v8196_v57  ;;  %v4300_v3 = vadd.f32 %v8218_v8, %v8215_v24  ;;  %v8225_v9 = vadd.f32 %v4197_v46, %v8916_v27 }
 0x7bd   : > { %v4089_v43 = vpop.f32.mrf.mxu1 }
 0x7be   : > { %v4202_v58 = vpop.f32.mrf.mxu0  ;;  %v8228_v60 = vadd.f32 %v4199_v16, %v8917_v51  ;;  %v4201_v54 = vadd.f32 %v4200_v5, %v4088_v45  ;;  %v4090_v34 = vadd.f32 %v4089_v43, %v8199_v2  ;;  %4301 = vadd.xlane.f32.xlu1 %v4300_v3  ;;  %v8924_v16 = vld [vmem:[#allocation35_spill] sm:$0xff]  ;;  %v8925_v3 = vld [vmem:[#allocation40_spill] sm:$0xff] }
 0x7bf   : > { %v4093_v12 = vpop.f32.mrf.mxu1 }
 0x7c0   : > { %v4206_v14 = vpop.f32.mrf.mxu0  ;;  %v4203_v50 = vadd.f32 %v4202_v58, %v4090_v34  ;;  %v4094_v41 = vadd.f32 %v4093_v12, %v8196_v57  ;;  %v4303_v17 = vadd.f32 %v8228_v60, %v8225_v9  ;;  %v8235_v47 = vadd.f32 %v4201_v54, %v8918_v49 }
 0x7c1   : > { %v4095_v48 = vpop.f32.mrf.mxu1 }
 0x7c2   : > { %v4208_v61 = vpop.f32.mrf.mxu0  ;;  %v8238_v52 = vadd.f32 %v4203_v50, %v8919_v6  ;;  %v4207_v37 = vadd.f32 %v4206_v14, %v4094_v41  ;;  %v4096_v55 = vadd.f32 %v4095_v48, %v8199_v2  ;;  %4304 = vadd.xlane.f32.xlu0 %v4303_v17  ;;  %v8926_v50 = vld [vmem:[#allocation43_spill] sm:$0xff]  ;;  %v8927_v17 = vld [vmem:[#allocation30_spill] sm:$0xff] }
 0x7c3   : > { %v4097_v15 = vpop.f32.mrf.mxu1 }
 0x7c4   : > { %v4210_v33 = vpop.f32.mrf.mxu0  ;;  %v4209_v21 = vadd.f32 %v4208_v61, %v4096_v55  ;;  %v4098_v63 = vadd.f32 %v4097_v15, %v8196_v57  ;;  %v4306_v13 = vadd.f32 %v8238_v52, %v8235_v47  ;;  %v8245_v42 = vadd.f32 %v4207_v37, %v8920_v4 }
 0x7c5   : > { %v4099_v39 = vpop.f32.mrf.mxu1 }
 0x7c6   : > { %v4212_v62 = vpop.f32.mrf.mxu0  ;;  %v8248_v22 = vadd.f32 %v4209_v21, %v8921_v38  ;;  %v4211_v59 = vadd.f32 %v4210_v33, %v4098_v63  ;;  %v4100_v19 = vadd.f32 %v4099_v39, %v8199_v2  ;;  %4307 = vadd.xlane.f32.xlu1 %v4306_v13 }
 0x7c7   : > { %v4103_v10 = vpop.f32.mrf.mxu1 }
 0x7c8   : > { %v4216_v40 = vpop.f32.mrf.mxu0  ;;  %v4213_v25 = vadd.f32 %v4212_v62, %v4100_v19  ;;  %v4104_v7 = vadd.f32 %v4103_v10, %v8196_v57  ;;  %v4309_v56 = vadd.f32 %v8248_v22, %v8245_v42  ;;  %v8255_v29 = vadd.f32 %v4211_v59, %v8922_v0 }
 0x7c9   : > { %v4105_v53 = vpop.f32.mrf.mxu1 }
 0x7ca   : > { %v4218_v26 = vpop.f32.mrf.mxu0  ;;  %v8258_v35 = vadd.f32 %v4213_v25, %v8923_v36  ;;  %v4217_v1 = vadd.f32 %v4216_v40, %v4104_v7  ;;  %v4106_v31 = vadd.f32 %v4105_v53, %v8199_v2  ;;  %4310 = vadd.xlane.f32.xlu0 %v4309_v56  ;;  %v8928_v36 = vld [vmem:[#allocation26_spill] sm:$0xff] }
 0x7cb   : > { %v4107_v30 = vpop.f32.mrf.mxu1 }
 0x7cc   : > { %v4220_v44 = vpop.f32.mrf.mxu0  ;;  %v4219_v46 = vadd.f32 %v4218_v26, %v4106_v31  ;;  %v4108_v32 = vadd.f32 %v4107_v30, %v8196_v57  ;;  %v4312_v20 = vadd.f32 %v8258_v35, %v8255_v29  ;;  %v8265_v45 = vadd.f32 %v4217_v1, %v8924_v16  ;;  %v8929_v31 = vld [vmem:[#allocation41_spill] sm:$0xff] }
 0x7cd   : > { %v4109_v5 = vpop.f32.mrf.mxu1 }
 0x7ce   : > { %v8268_v43 = vadd.f32 %v4219_v46, %v8925_v3  ;;  %v4221_v58 = vadd.f32 %v4220_v44, %v4108_v32  ;;  %v4110_v27 = vadd.f32 %v4109_v5, %v8199_v2  ;;  %4313 = vadd.xlane.f32.xlu1 %v4312_v20  ;;  %v4222_v51 = vpop.f32.mrf.mxu0 }
 0x7cf   : > { %v4113_v54 = vpop.f32.mrf.mxu1 }
 0x7d0   : > { %v4223_v34 = vadd.f32 %v4222_v51, %v4110_v27  ;;  %v4315_v12 = vadd.f32 %v8268_v43, %v8265_v45  ;;  %v8274_v41 = vadd.f32 %v4221_v58, %v8926_v50  ;;  %v4114_v19 = vadd.f32 %v4113_v54, %v8196_v57  ;;  %v8930_v58 = vld [vmem:[#allocation45_spill] sm:$0xff]  ;;  %v8931_v51 = vld [vmem:[#allocation27_spill] sm:$0xff] }
 0x7d1   : > { %v4115_v14 = vpop.f32.mrf.mxu1 }
 0x7d2   : > { %v8277_v48 = vadd.f32 %v4223_v34, %v8927_v17  ;;  %4316 = vadd.xlane.f32.xlu0 %v4315_v12  ;;  %v4116_v40 = vadd.f32 %v4115_v14, %v8199_v2 }
 0x7d3   : > { %v4117_v61 = vpop.f32.mrf.mxu1 }
 0x7d4   : > { %v4318_v49 = vadd.f32 %v8277_v48, %v8274_v41  ;;  %v4118_v56 = vadd.f32 %v4117_v61, %v8196_v57 }
 0x7d5   : > { %v4119_v6 = vpop.f32.mrf.mxu1 }
 0x7d6   : > { %4319 = vadd.xlane.f32.xlu1 %v4318_v49  ;;  %v4120_v0 = vadd.f32 %v4119_v6, %v8199_v2  ;;  %v8932_v6 = vld [vmem:[#allocation47_spill] sm:$0xff] }
 0x7d7   : > { %v4123_v37 = vpop.f32.mrf.mxu1 }
 0x7d8   : > { %v4124_v32 = vadd.f32 %v4123_v37, %v8196_v57 }
 0x7d9   : > { %v4125_v55 = vpop.f32.mrf.mxu1 }
 0x7da   : > { %v4126_v3 = vadd.f32 %v4125_v55, %v8199_v2  ;;  %v8933_v55 = vld [vmem:[#allocation46_spill] sm:$0xff] }
 0x7db   : > { %v4127_v15 = vpop.f32.mrf.mxu1 }
 0x7dc   : > { %v4128_v14 = vadd.f32 %v4127_v15, %v8196_v57 }
 0x7dd   : > { %v4129_v33 = vpop.f32.mrf.mxu1 }
 0x7de   : > { %v4130_v49 = vadd.f32 %v4129_v33, %v8199_v2 }
 0x7df   : > { %v4133_v21 = vpop.f32.mrf.mxu1 }
 0x7e1   : > { %v4135_v63 = vpop.f32.mrf.mxu1 }
 0x7e3   : > { %v4137_v13 = vpop.f32.mrf.mxu1 }
 0x7e5   : > { %v4139_v39 = vpop.f32.mrf.mxu1 }
 0x7e7   : > { %v4143_v62 = vpop.f32.mrf.mxu1 }
 0x7e9   : > { %v4145_v4 = vpop.f32.mrf.mxu1 }
 0x7eb   : > { %v8281_v38 = vpop.f32.mrf.mxu1 }
 0x7ed   : > { %v8283_v59 = vpop.f32.mrf.mxu1 }
 0x7ef   : > { %v4226_v10 = vpop.f32.mrf.mxu1 }
 0x7f0   : > { %v4227_v25 = vadd.f32 %v4226_v10, %v4114_v19 }
 0x7f1   : > { %v4228_v7 = vpop.f32.mrf.mxu1 }
 0x7f2   : > { %v4229_v53 = vadd.f32 %v4228_v7, %v4116_v40  ;;  %v8290_v1 = vadd.f32 %v4227_v25, %v8928_v36  ;;  %v4134_v25 = vadd.f32 %v4133_v21, %v8196_v57 }
 0x7f3   : > { %v4230_v26 = vpop.f32.mrf.mxu1 }
 0x7f4   : > { %v8293_v30 = vadd.f32 %v4229_v53, %v8929_v31  ;;  %v4231_v44 = vadd.f32 %v4230_v26, %v4118_v56  ;;  %v4136_v53 = vadd.f32 %v4135_v63, %v8199_v2  ;;  %v8934_v26 = vld [vmem:[#allocation49_spill] sm:$0xff] }
 0x7f5   : > { %v4232_v46 = vpop.f32.mrf.mxu1 }
 0x7f6   : > { %v4233_v20 = vadd.f32 %v4232_v46, %v4120_v0  ;;  %v4321_v5 = vadd.f32 %v8293_v30, %v8290_v1  ;;  %v8300_v27 = vadd.f32 %v4231_v44, %v8930_v58  ;;  %v8935_v0 = vld [vmem:[#allocation48_spill] sm:$0xff]  ;;  %v4138_v46 = vadd.f32 %v4137_v13, %v8196_v57 }
 0x7f7   : > { %v4236_v16 = vpop.f32.mrf.mxu1 }
 0x7f8   : > { %v8303_v54 = vadd.f32 %v4233_v20, %v8931_v51  ;;  %v4237_v34 = vadd.f32 %v4236_v16, %v4124_v32  ;;  %4322 = vadd.xlane.f32.xlu0 %v4321_v5  ;;  %v4140_v5 = vadd.f32 %v4139_v39, %v8199_v2  ;;  %v8936_v16 = vld [vmem:[#allocation51_spill] sm:$0xff] }
 0x7f9   : > { %v4238_v12 = vpop.f32.mrf.mxu1 }
 0x7fa   : > { %v4239_v50 = vadd.f32 %v4238_v12, %v4126_v3  ;;  %v4324_v17 = vadd.f32 %v8303_v54, %v8300_v27  ;;  %v8310_v37 = vadd.f32 %v4237_v34, %v8932_v6  ;;  %v8937_v3 = vld [vmem:[#allocation50_spill] sm:$0xff]  ;;  %v4144_v12 = vadd.f32 %v4143_v62, %v8196_v57 }
 0x7fb   : > { %v4240_v61 = vpop.f32.mrf.mxu1 }
 0x7fc   : > { %v8313_v19 = vadd.f32 %v4239_v50, %v8933_v55  ;;  %v4241_v10 = vadd.f32 %v4240_v61, %v4128_v14  ;;  %4325 = vadd.xlane.f32.xlu1 %v4324_v17  ;;  %v4146_v17 = vadd.f32 %v4145_v4, %v8199_v2  ;;  %v8938_v61 = vld [vmem:[#allocation53_spill] sm:$0xff]  ;;  %v4150_v4 = vadd.f32 %v8283_v59, %v8199_v2 }
 0x7fd   : > { %v4242_v40 = vpop.f32.mrf.mxu1 }
 0x7fe   : > { %v4243_v7 = vadd.f32 %v4242_v40, %v4130_v49  ;;  %v4327_v15 = vadd.f32 %v8313_v19, %v8310_v37  ;;  %v8320_v33 = vadd.f32 %v4241_v10, %v8934_v26  ;;  %v8939_v49 = vld [vmem:[#allocation52_spill] sm:$0xff]  ;;  %v4148_v40 = vadd.f32 %v8281_v38, %v8196_v57  ;;  %v8942_v38 = vld [vmem:[#allocation57_spill] sm:$0xff] }
 0x7ff   : > { %v4246_v56 = vpop.f32.mrf.mxu1 }
 0x800   : > { %v8323_v36 = vadd.f32 %v4243_v7, %v8935_v0  ;;  %v4247_v31 = vadd.f32 %v4246_v56, %v4134_v25  ;;  %4328 = vadd.xlane.f32.xlu0 %v4327_v15  ;;  %v8940_v15 = vld [vmem:[#allocation56_spill] sm:$0xff] }
 0x801   : > { %v4248_v44 = vpop.f32.mrf.mxu1 }
 0x802   : > { %v4249_v32 = vadd.f32 %v4248_v44, %v4136_v53  ;;  %v4330_v21 = vadd.f32 %v8323_v36, %v8320_v33  ;;  %v8330_v63 = vadd.f32 %v4247_v31, %v8936_v16  ;;  %v8941_v53 = vld [vmem:[#allocation54_spill] sm:$0xff] }
 0x803   : > { %v4250_v20 = vpop.f32.mrf.mxu1 }
 0x804   : > { %v8333_v58 = vadd.f32 %v4249_v32, %v8937_v3  ;;  %v4251_v51 = vadd.f32 %v4250_v20, %v4138_v46  ;;  %4331 = vadd.xlane.f32.xlu1 %v4330_v21  ;;  %v8943_v32 = vld [vmem:[#allocation55_spill] sm:$0xff] }
 0x805   : > { %v4252_v34 = vpop.f32.mrf.mxu1 }
 0x806   : > { %v4253_v14 = vadd.f32 %v4252_v34, %v4140_v5  ;;  %v4333_v13 = vadd.f32 %v8333_v58, %v8330_v63  ;;  %v8340_v39 = vadd.f32 %v4251_v51, %v8938_v61 }
 0x807   : > { %v4256_v50 = vpop.f32.mrf.mxu1 }
 0x808   : > { %v8343_v6 = vadd.f32 %v4253_v14, %v8939_v49  ;;  %v4257_v55 = vadd.f32 %v4256_v50, %v4144_v12  ;;  %4334 = vadd.xlane.f32.xlu0 %v4333_v13 }
 0x809   : > { %v4258_v10 = vpop.f32.mrf.mxu1 }
 0x80a   : > { %v4259_v62 = vadd.f32 %v4258_v10, %v4146_v17  ;;  %v4336_v25 = vadd.f32 %v8343_v6, %v8340_v39  ;;  %v8352_v56 = vadd.f32 %v4257_v55, %v8940_v15 }
 0x80b   : > { %v4260_v7 = vpop.f32.mrf.mxu1 }
 0x80c   : > { %v8355_v26 = vadd.f32 %v4259_v62, %v8941_v53  ;;  %v4261_v0 = vadd.f32 %v4260_v7, %v4148_v40  ;;  %4337 = vadd.xlane.f32.xlu1 %v4336_v25 }
 0x80d   : > { %v4262_v31 = vpop.f32.mrf.mxu1 }
 0x80e   : > { %v4263_v44 = vadd.f32 %v4262_v31, %v4150_v4  ;;  %v4339_v57 = vadd.f32 %v8355_v26, %v8352_v56  ;;  %v8360_v46 = vadd.f32 %v4261_v0, %v8942_v38 }
 0x810   : > { %v8363_v21 = vadd.f32 %v4263_v44, %v8943_v32  ;;  %4340 = vadd.xlane.f32.xlu0 %v4339_v57 }
 0x812   : > { %v4342_v2 = vadd.f32 %v8363_v21, %v8360_v46 }
 0x814   : > { %4343 = vadd.xlane.f32.xlu1 %v4342_v2 }
 0x843   : > { %v4299_v59 = vpop.xlane.xlu0 %4298 }
 0x844   : > { %v4345_v20 = vmul.f32 0.00390625, %v4299_v59 }
 0x846   : > { %v8368_v5 = vsub.f32 %v8205_v18, %v4345_v20  ;;  %v8371_v16 = vsub.f32 %v8208_v11, %v4345_v20 }
 0x847   : > { %v4302_v3 = vpop.xlane.xlu1 %4301 }
 0x848   : > { %v4393_v51 = vmul.f32 %v8368_v5, %v8368_v5  ;;  %v4394_v34 = vmul.f32 %v8371_v16, %v8371_v16  ;;  %v4346_v12 = vmul.f32 0.00390625, %v4302_v3 }
 0x84a   : > { %v8378_v14 = vsub.f32 %v8215_v24, %v4346_v12  ;;  %v8381_v13 = vsub.f32 %v8218_v8, %v4346_v12  ;;  %v4425_v50 = vadd.f32 %v4394_v34, %v4393_v51 }
 0x84b   : > { %v4305_v18 = vpop.xlane.xlu0 %4304 }
 0x84c   : > { %v4395_v11 = vmul.f32 %v8378_v14, %v8378_v14  ;;  %v4396_v17 = vmul.f32 %v8381_v13, %v8381_v13  ;;  %v4347_v61 = vmul.f32 0.00390625, %v4305_v18  ;;  %4426 = vadd.xlane.f32.xlu0 %v4425_v50 }
 0x84e   : > { %v8388_v49 = vsub.f32 %v8225_v9, %v4347_v61  ;;  %v8391_v55 = vsub.f32 %v8228_v60, %v4347_v61  ;;  %v4428_v24 = vadd.f32 %v4396_v17, %v4395_v11 }
 0x84f   : > { %v4308_v10 = vpop.xlane.xlu1 %4307 }
 0x850   : > { %v4397_v8 = vmul.f32 %v8388_v49, %v8388_v49  ;;  %v4398_v40 = vmul.f32 %v8391_v55, %v8391_v55  ;;  %v4348_v62 = vmul.f32 0.00390625, %v4308_v10  ;;  %4429 = vadd.xlane.f32.xlu1 %v4428_v24 }
 0x852   : > { %v8398_v25 = vsub.f32 %v8235_v47, %v4348_v62  ;;  %v8401_v7 = vsub.f32 %v8238_v52, %v4348_v62  ;;  %v4431_v9 = vadd.f32 %v4398_v40, %v4397_v8 }
 0x853   : > { %v4311_v4 = vpop.xlane.xlu0 %4310 }
 0x854   : > { %v4399_v60 = vmul.f32 %v8398_v25, %v8398_v25  ;;  %v4400_v15 = vmul.f32 %v8401_v7, %v8401_v7  ;;  %v4349_v53 = vmul.f32 0.00390625, %v4311_v4  ;;  %4432 = vadd.xlane.f32.xlu0 %v4431_v9 }
 0x856   : > { %v8408_v0 = vsub.f32 %v8245_v42, %v4349_v53  ;;  %v8411_v31 = vsub.f32 %v8248_v22, %v4349_v53  ;;  %v4434_v47 = vadd.f32 %v4400_v15, %v4399_v60 }
 0x857   : > { %v4314_v44 = vpop.xlane.xlu1 %4313 }
 0x858   : > { %v4401_v52 = vmul.f32 %v8408_v0, %v8408_v0  ;;  %v4402_v57 = vmul.f32 %v8411_v31, %v8411_v31  ;;  %v4350_v38 = vmul.f32 0.00390625, %v4314_v44  ;;  %4435 = vadd.xlane.f32.xlu1 %v4434_v47 }
 0x85a   : > { %v8418_v32 = vsub.f32 %v8255_v29, %v4350_v38  ;;  %v8421_v2 = vsub.f32 %v8258_v35, %v4350_v38  ;;  %v4437_v42 = vadd.f32 %v4402_v57, %v4401_v52 }
 0x85b   : > { %v4317_v59 = vpop.xlane.xlu0 %4316 }
 0x85c   : > { %v4403_v22 = vmul.f32 %v8418_v32, %v8418_v32  ;;  %v4404_v20 = vmul.f32 %v8421_v2, %v8421_v2  ;;  %v4351_v3 = vmul.f32 0.00390625, %v4317_v59  ;;  %4438 = vadd.xlane.f32.xlu0 %v4437_v42 }
 0x85e   : > { %v8428_v51 = vsub.f32 %v8265_v45, %v4351_v3  ;;  %v8431_v34 = vsub.f32 %v8268_v43, %v4351_v3  ;;  %v4440_v29 = vadd.f32 %v4404_v20, %v4403_v22 }
 0x85f   : > { %v4320_v12 = vpop.xlane.xlu1 %4319 }
 0x860   : > { %v4405_v35 = vmul.f32 %v8428_v51, %v8428_v51  ;;  %v4406_v50 = vmul.f32 %v8431_v34, %v8431_v34  ;;  %v4352_v18 = vmul.f32 0.00390625, %v4320_v12  ;;  %4441 = vadd.xlane.f32.xlu1 %v4440_v29 }
 0x862   : > { %v8438_v11 = vsub.f32 %v8274_v41, %v4352_v18  ;;  %v8441_v17 = vsub.f32 %v8277_v48, %v4352_v18  ;;  %v4443_v45 = vadd.f32 %v4406_v50, %v4405_v35 }
 0x864   : > { %v4407_v43 = vmul.f32 %v8438_v11, %v8438_v11  ;;  %v4408_v61 = vmul.f32 %v8441_v17, %v8441_v17  ;;  %4444 = vadd.xlane.f32.xlu0 %v4443_v45 }
 0x866   : > { %v4446_v24 = vadd.f32 %v4408_v61, %v4407_v43 }
 0x868   : > { %4447 = vadd.xlane.f32.xlu1 %v4446_v24 }
 0x881   : > { %v4323_v10 = vpop.xlane.xlu0 %4322 }
 0x882   : > { %v4353_v8 = vmul.f32 0.00390625, %v4323_v10 }
 0x884   : > { %v8448_v40 = vsub.f32 %v8290_v1, %v4353_v8  ;;  %v8451_v41 = vsub.f32 %v8293_v30, %v4353_v8 }
 0x885   : > { %v4326_v48 = vpop.xlane.xlu1 %4325 }
 0x886   : > { %v4409_v62 = vmul.f32 %v8448_v40, %v8448_v40  ;;  %v4410_v9 = vmul.f32 %v8451_v41, %v8451_v41  ;;  %v4354_v4 = vmul.f32 0.00390625, %v4326_v48 }
 0x888   : > { %v8458_v60 = vsub.f32 %v8300_v27, %v4354_v4  ;;  %v8461_v15 = vsub.f32 %v8303_v54, %v4354_v4  ;;  %v4449_v53 = vadd.f32 %v4410_v9, %v4409_v62 }
 0x889   : > { %v4329_v1 = vpop.xlane.xlu0 %4328 }
 0x88a   : > { %v4411_v30 = vmul.f32 %v8458_v60, %v8458_v60  ;;  %v4412_v47 = vmul.f32 %v8461_v15, %v8461_v15  ;;  %v4355_v44 = vmul.f32 0.00390625, %v4329_v1  ;;  %4450 = vadd.xlane.f32.xlu0 %v4449_v53 }
 0x88c   : > { %v8468_v52 = vsub.f32 %v8310_v37, %v4355_v44  ;;  %v8471_v57 = vsub.f32 %v8313_v19, %v4355_v44  ;;  %v4452_v27 = vadd.f32 %v4412_v47, %v4411_v30 }
 0x88d   : > { %v4332_v38 = vpop.xlane.xlu1 %4331 }
 0x88e   : > { %v4413_v54 = vmul.f32 %v8468_v52, %v8468_v52  ;;  %v4414_v42 = vmul.f32 %v8471_v57, %v8471_v57  ;;  %v4356_v59 = vmul.f32 0.00390625, %v4332_v38  ;;  %4453 = vadd.xlane.f32.xlu1 %v4452_v27 }
 0x890   : > { %v8478_v22 = vsub.f32 %v8320_v33, %v4356_v59  ;;  %v8481_v20 = vsub.f32 %v8323_v36, %v4356_v59  ;;  %v4455_v37 = vadd.f32 %v4414_v42, %v4413_v54 }
 0x891   : > { %v4335_v3 = vpop.xlane.xlu0 %4334 }
 0x892   : > { %v4415_v19 = vmul.f32 %v8478_v22, %v8478_v22  ;;  %v4416_v29 = vmul.f32 %v8481_v20, %v8481_v20  ;;  %v4357_v12 = vmul.f32 0.00390625, %v4335_v3  ;;  %4456 = vadd.xlane.f32.xlu0 %v4455_v37 }
 0x894   : > { %v8488_v35 = vsub.f32 %v8330_v63, %v4357_v12  ;;  %v8491_v50 = vsub.f32 %v8333_v58, %v4357_v12  ;;  %v4458_v33 = vadd.f32 %v4416_v29, %v4415_v19 }
 0x895   : > { %v4338_v18 = vpop.xlane.xlu1 %4337 }
 0x896   : > { %v4417_v36 = vmul.f32 %v8488_v35, %v8488_v35  ;;  %v4418_v45 = vmul.f32 %v8491_v50, %v8491_v50  ;;  %v4358_v43 = vmul.f32 0.00390625, %v4338_v18  ;;  %4459 = vadd.xlane.f32.xlu1 %v4458_v33  ;;  %v4553_v33 = vld [vmem:[%s8944_s3] sm:$0x3] }
 0x897   : > { %v4597_v18 = vld [vmem:[%s8945_s11] sm:$0x3] }
 0x898   : > { %v8498_v61 = vsub.f32 %v8340_v39, %v4358_v43  ;;  %v8501_v24 = vsub.f32 %v8343_v6, %v4358_v43  ;;  %v4461_v63 = vadd.f32 %v4418_v45, %v4417_v36  ;;  %v8534_v43 = vrot.slane %v4553_v33, %v8875_v23 }
 0x899   : > { %v4341_v10 = vpop.xlane.xlu0 %4340 }
 0x89a   : > { %v4419_v58 = vmul.f32 %v8498_v61, %v8498_v61  ;;  %v4420_v8 = vmul.f32 %v8501_v24, %v8501_v24  ;;  %v4359_v48 = vmul.f32 0.00390625, %v4341_v10  ;;  %4462 = vadd.xlane.f32.xlu0 %v4461_v63  ;;  %v8537_v63 = vrot.slane %v4553_v33, %v8876_v28 }
 0x89c   : > { %v8508_v62 = vsub.f32 %v8352_v56, %v4359_v48  ;;  %v8511_v9 = vsub.f32 %v8355_v26, %v4359_v48  ;;  %v4464_v39 = vadd.f32 %v4420_v8, %v4419_v58  ;;  %v8540_v8 = vrot.slane %v4597_v18, %v8875_v23 }
 0x89d   : > { %v4344_v4 = vpop.xlane.xlu1 %4343  ;;  %v8543_v48 = vrot.slane %v4597_v18, %v8876_v28 }
 0x89e   : > { %v4421_v6 = vmul.f32 %v8508_v62, %v8508_v62  ;;  %v4422_v53 = vmul.f32 %v8511_v9, %v8511_v9  ;;  %v4360_v1 = vmul.f32 0.00390625, %v4344_v4  ;;  %4465 = vadd.xlane.f32.xlu1 %v4464_v39 }
 0x8a0   : > { %v8518_v30 = vsub.f32 %v8360_v46, %v4360_v1  ;;  %v8521_v47 = vsub.f32 %v8363_v21, %v4360_v1  ;;  %v4467_v56 = vadd.f32 %v4422_v53, %v4421_v6 }
 0x8a2   : > { %v4423_v26 = vmul.f32 %v8518_v30, %v8518_v30  ;;  %v4424_v44 = vmul.f32 %v8521_v47, %v8521_v47  ;;  %4468 = vadd.xlane.f32.xlu0 %v4467_v56 }
 0x8a4   : > { %v4470_v27 = vadd.f32 %v4424_v44, %v4423_v26 }
 0x8a6   : > { %4471 = vadd.xlane.f32.xlu1 %v4470_v27 }
 0x8d5   : > { %v4427_v38 = vpop.xlane.xlu0 %4426 }
 0x8d6   : > { %v4473_v54 = vmul.f32 0.00390625, %v4427_v38 }
 0x8d8   : > { %v4489_v42 = vadd.f32 1e-05, %v4473_v54 }
 0x8d9   : > { %v4430_v59 = vpop.xlane.xlu1 %4429 }
 0x8da   : > { %6004 = vrsqrt.f32 %v4489_v42  ;;  %v4474_v46 = vmul.f32 0.00390625, %v4430_v59 }
 0x8dc   : > { %v4490_v37 = vadd.f32 1e-05, %v4474_v46 }
 0x8dd   : > { %v4433_v3 = vpop.xlane.xlu0 %4432 }
 0x8de   : > { %6006 = vrsqrt.f32 %v4490_v37  ;;  %v4475_v21 = vmul.f32 0.00390625, %v4433_v3 }
 0x8e0   : > { %v4491_v19 = vadd.f32 1e-05, %v4475_v21 }
 0x8e1   : > { %v4436_v29 = vpop.xlane.xlu1 %4435 }
 0x8e2   : > { %6008 = vrsqrt.f32 %v4491_v19  ;;  %v4476_v12 = vmul.f32 0.00390625, %v4436_v29 }
 0x8e4   : > { %v4492_v36 = vadd.f32 1e-05, %v4476_v12 }
 0x8e5   : > { %v4439_v45 = vpop.xlane.xlu0 %4438 }
 0x8e6   : > { %6010 = vrsqrt.f32 %v4492_v36  ;;  %v4477_v10 = vmul.f32 0.00390625, %v4439_v45 }
 0x8e7   : > { %v6005_v58 = vpop.eup %6004 }
 0x8e8   : > { %v4521_v39 = vmul.f32 %v6005_v58, %v8368_v5  ;;  %v4522_v4 = vmul.f32 %v6005_v58, %v8371_v16  ;;  %v4493_v6 = vadd.f32 1e-05, %v4477_v10 }
 0x8e9   : > { %v4442_v53 = vpop.xlane.xlu1 %4441 }
 0x8ea   : > { %v4565_v1 = vmul.f32 %v8534_v43, %v4521_v39  ;;  %v4566_v56 = vmul.f32 %v8537_v63, %v4522_v4  ;;  %6012 = vrsqrt.f32 %v4493_v6  ;;  %v4478_v26 = vmul.f32 0.00390625, %v4442_v53 }
 0x8eb   : > { %v6007_v44 = vpop.eup %6006 }
 0x8ec   : > { %v4609_v23 = vadd.f32 %v8540_v8, %v4565_v1  ;;  %v4610_v27 = vadd.f32 %v8543_v48, %v4566_v56  ;;  %v4523_v28 = vmul.f32 %v6007_v44, %v8378_v14  ;;  %v4524_v38 = vmul.f32 %v6007_v44, %v8381_v13 }
 0x8ed   : > { %v4494_v5 = vadd.f32 1e-05, %v4478_v26  ;;  %v4445_v54 = vpop.xlane.xlu0 %4444 }
 0x8ee   : > { %4641 = vst [vmem:[%s8554_s22] sm:$0xff] %v4609_v23  ;;  %4642 = vst [vmem:[%s8554_s22 + $0x8] sm:$0xff] %v4610_v27  ;;  %v4567_v16 = vmul.f32 %v8534_v43, %v4523_v28  ;;  %v4568_v42 = vmul.f32 %v8537_v63, %v4524_v38  ;;  %v4479_v59 = vmul.f32 0.00390625, %v4445_v54 }
 0x8ef   : > { %v6009_v46 = vpop.eup %6008  ;;  %6014 = vrsqrt.f32 %v4494_v5 }
 0x8f0   : > { %v4611_v14 = vadd.f32 %v8540_v8, %v4567_v16  ;;  %v4612_v13 = vadd.f32 %v8543_v48, %v4568_v42  ;;  %v4525_v37 = vmul.f32 %v6009_v46, %v8388_v49  ;;  %v4526_v3 = vmul.f32 %v6009_v46, %v8391_v55 }
 0x8f1   : > { %v4495_v21 = vadd.f32 1e-05, %v4479_v59  ;;  %v4448_v19 = vpop.xlane.xlu1 %4447 }
 0x8f2   : > { %4643 = vst [vmem:[%s8554_s22 + $0x10] sm:$0xff] %v4611_v14  ;;  %4644 = vst [vmem:[%s8554_s22 + $0x18] sm:$0xff] %v4612_v13  ;;  %v4569_v29 = vmul.f32 %v8534_v43, %v4525_v37  ;;  %v4570_v12 = vmul.f32 %v8537_v63, %v4526_v3  ;;  %v4480_v33 = vmul.f32 0.00390625, %v4448_v19 }
 0x8f3   : > { %v6011_v18 = vpop.eup %6010  ;;  %6016 = vrsqrt.f32 %v4495_v21 }
 0x8f4   : > { %v4613_v36 = vadd.f32 %v8540_v8, %v4569_v29  ;;  %v4614_v49 = vadd.f32 %v8543_v48, %v4570_v12  ;;  %v4527_v55 = vmul.f32 %v6011_v18, %v8398_v25  ;;  %v4528_v45 = vmul.f32 %v6011_v18, %v8401_v7 }
 0x8f5   : > { %v4496_v10 = vadd.f32 1e-05, %v4480_v33 }
 0x8f6   : > { %4645 = vst [vmem:[%s8554_s22 + $0x20] sm:$0xff] %v4613_v36  ;;  %4646 = vst [vmem:[%s8554_s22 + $0x28] sm:$0xff] %v4614_v49  ;;  %v4571_v58 = vmul.f32 %v8534_v43, %v4527_v55  ;;  %v4572_v39 = vmul.f32 %v8537_v63, %v4528_v45 }
 0x8f7   : > { %v6013_v4 = vpop.eup %6012  ;;  %6018 = vrsqrt.f32 %v4496_v10 }
 0x8f8   : > { %v4615_v6 = vadd.f32 %v8540_v8, %v4571_v58  ;;  %v4616_v53 = vadd.f32 %v8543_v48, %v4572_v39  ;;  %v4529_v1 = vmul.f32 %v6013_v4, %v8408_v0  ;;  %v4530_v25 = vmul.f32 %v6013_v4, %v8411_v31 }
 0x8fa   : > { %4647 = vst [vmem:[%s8554_s22 + $0x30] sm:$0xff] %v4615_v6  ;;  %4648 = vst [vmem:[%s8554_s22 + $0x38] sm:$0xff] %v4616_v53  ;;  %v4573_v7 = vmul.f32 %v8534_v43, %v4529_v1  ;;  %v4574_v56 = vmul.f32 %v8537_v63, %v4530_v25 }
 0x8fc   : > { %v6015_v26 = vpop.eup %6014  ;;  %v4617_v44 = vadd.f32 %v8540_v8, %v4573_v7  ;;  %v4618_v23 = vadd.f32 %v8543_v48, %v4574_v56 }
 0x8fd   : > { %v4531_v27 = vmul.f32 %v6015_v26, %v8418_v32  ;;  %v4532_v28 = vmul.f32 %v6015_v26, %v8421_v2 }
 0x8fe   : > { %4649 = vst [vmem:[%s8554_s22 + $0x40] sm:$0xff] %v4617_v44  ;;  %4650 = vst [vmem:[%s8554_s22 + $0x48] sm:$0xff] %v4618_v23 }
 0x8ff   : > { %v4575_v0 = vmul.f32 %v8534_v43, %v4531_v27  ;;  %v4576_v31 = vmul.f32 %v8537_v63, %v4532_v28 }
 0x900   : > { %v6017_v38 = vpop.eup %6016 }
 0x901   : > { %v4619_v5 = vadd.f32 %v8540_v8, %v4575_v0  ;;  %v4620_v54 = vadd.f32 %v8543_v48, %v4576_v31  ;;  %v4533_v16 = vmul.f32 %v6017_v38, %v8428_v51  ;;  %v4534_v42 = vmul.f32 %v6017_v38, %v8431_v34 }
 0x903   : > { %4651 = vst [vmem:[%s8554_s22 + $0x50] sm:$0xff] %v4619_v5  ;;  %4652 = vst [vmem:[%s8554_s22 + $0x58] sm:$0xff] %v4620_v54  ;;  %v4577_v32 = vmul.f32 %v8534_v43, %v4533_v16  ;;  %v4578_v2 = vmul.f32 %v8537_v63, %v4534_v42 }
 0x904   : > { %v6019_v59 = vpop.eup %6018 }
 0x905   : > { %v4621_v46 = vadd.f32 %v8540_v8, %v4577_v32  ;;  %v4622_v14 = vadd.f32 %v8543_v48, %v4578_v2  ;;  %v4535_v13 = vmul.f32 %v6019_v59, %v8438_v11  ;;  %v4536_v37 = vmul.f32 %v6019_v59, %v8441_v17 }
 0x907   : > { %4653 = vst [vmem:[%s8554_s22 + $0x60] sm:$0xff] %v4621_v46  ;;  %4654 = vst [vmem:[%s8554_s22 + $0x68] sm:$0xff] %v4622_v14  ;;  %v4579_v51 = vmul.f32 %v8534_v43, %v4535_v13  ;;  %v4580_v34 = vmul.f32 %v8537_v63, %v4536_v37 }
 0x909   : > { %v4623_v3 = vadd.f32 %v8540_v8, %v4579_v51  ;;  %v4624_v21 = vadd.f32 %v8543_v48, %v4580_v34 }
 0x90b   : > { %4655 = vst [vmem:[%s8554_s22 + $0x70] sm:$0xff] %v4623_v3  ;;  %4656 = vst [vmem:[%s8554_s22 + $0x78] sm:$0xff] %v4624_v21 }
 0x913   : > { %v4451_v19 = vpop.xlane.xlu0 %4450 }
 0x914   : > { %v4481_v29 = vmul.f32 0.00390625, %v4451_v19 }
 0x916   : > { %v4497_v12 = vadd.f32 1e-05, %v4481_v29 }
 0x917   : > { %v4454_v33 = vpop.xlane.xlu1 %4453 }
 0x918   : > { %6020 = vrsqrt.f32 %v4497_v12  ;;  %v4482_v11 = vmul.f32 0.00390625, %v4454_v33 }
 0x91a   : > { %v4498_v18 = vadd.f32 1e-05, %v4482_v11 }
 0x91b   : > { %v4457_v17 = vpop.xlane.xlu0 %4456 }
 0x91c   : > { %6022 = vrsqrt.f32 %v4498_v18  ;;  %v4483_v36 = vmul.f32 0.00390625, %v4457_v17 }
 0x91e   : > { %v4499_v49 = vadd.f32 1e-05, %v4483_v36 }
 0x91f   : > { %v4460_v55 = vpop.xlane.xlu1 %4459 }
 0x920   : > { %6024 = vrsqrt.f32 %v4499_v49  ;;  %v4484_v45 = vmul.f32 0.00390625, %v4460_v55 }
 0x922   : > { %v4500_v10 = vadd.f32 1e-05, %v4484_v45 }
 0x923   : > { %v4463_v58 = vpop.xlane.xlu0 %4462 }
 0x924   : > { %6026 = vrsqrt.f32 %v4500_v10  ;;  %v4485_v39 = vmul.f32 0.00390625, %v4463_v58 }
 0x925   : > { %v6021_v4 = vpop.eup %6020 }
 0x926   : > { %v4537_v6 = vmul.f32 %v6021_v4, %v8448_v40  ;;  %v4538_v53 = vmul.f32 %v6021_v4, %v8451_v41  ;;  %v4501_v1 = vadd.f32 1e-05, %v4485_v39 }
 0x927   : > { %v4466_v25 = vpop.xlane.xlu1 %4465 }
 0x928   : > { %v4581_v7 = vmul.f32 %v8534_v43, %v4537_v6  ;;  %v4582_v56 = vmul.f32 %v8537_v63, %v4538_v53  ;;  %6028 = vrsqrt.f32 %v4501_v1  ;;  %v4486_v26 = vmul.f32 0.00390625, %v4466_v25 }
 0x929   : > { %v6023_v44 = vpop.eup %6022 }
 0x92a   : > { %v4625_v23 = vadd.f32 %v8540_v8, %v4581_v7  ;;  %v4626_v27 = vadd.f32 %v8543_v48, %v4582_v56  ;;  %v4539_v28 = vmul.f32 %v6023_v44, %v8458_v60  ;;  %v4540_v40 = vmul.f32 %v6023_v44, %v8461_v15 }
 0x92b   : > { %v4502_v0 = vadd.f32 1e-05, %v4486_v26  ;;  %v4469_v41 = vpop.xlane.xlu0 %4468 }
 0x92c   : > { %4657 = vst [vmem:[%s8554_s22 + $0x80] sm:$0xff] %v4625_v23  ;;  %4658 = vst [vmem:[%s8554_s22 + $0x88] sm:$0xff] %v4626_v27  ;;  %v4583_v31 = vmul.f32 %v8534_v43, %v4539_v28  ;;  %v4584_v38 = vmul.f32 %v8537_v63, %v4540_v40  ;;  %v4487_v5 = vmul.f32 0.00390625, %v4469_v41 }
 0x92d   : > { %v6025_v54 = vpop.eup %6024  ;;  %6030 = vrsqrt.f32 %v4502_v0 }
 0x92e   : > { %v4627_v16 = vadd.f32 %v8540_v8, %v4583_v31  ;;  %v4628_v42 = vadd.f32 %v8543_v48, %v4584_v38  ;;  %v4541_v60 = vmul.f32 %v6025_v54, %v8468_v52  ;;  %v4542_v15 = vmul.f32 %v6025_v54, %v8471_v57 }
 0x92f   : > { %v4503_v32 = vadd.f32 1e-05, %v4487_v5  ;;  %v4472_v2 = vpop.xlane.xlu1 %4471 }
 0x930   : > { %4659 = vst [vmem:[%s8554_s22 + $0x90] sm:$0xff] %v4627_v16  ;;  %4660 = vst [vmem:[%s8554_s22 + $0x98] sm:$0xff] %v4628_v42  ;;  %v4585_v59 = vmul.f32 %v8534_v43, %v4541_v60  ;;  %v4586_v46 = vmul.f32 %v8537_v63, %v4542_v15  ;;  %v4488_v14 = vmul.f32 0.00390625, %v4472_v2 }
 0x931   : > { %v6027_v13 = vpop.eup %6026  ;;  %6032 = vrsqrt.f32 %v4503_v32 }
 0x932   : > { %v4629_v37 = vadd.f32 %v8540_v8, %v4585_v59  ;;  %v4630_v52 = vadd.f32 %v8543_v48, %v4586_v46  ;;  %v4543_v57 = vmul.f32 %v6027_v13, %v8478_v22  ;;  %v4544_v51 = vmul.f32 %v6027_v13, %v8481_v20 }
 0x933   : > { %v4504_v34 = vadd.f32 1e-05, %v4488_v14 }
 0x934   : > { %4661 = vst [vmem:[%s8554_s22 + $0xa0] sm:$0xff] %v4629_v37  ;;  %4662 = vst [vmem:[%s8554_s22 + $0xa8] sm:$0xff] %v4630_v52  ;;  %v4587_v3 = vmul.f32 %v8534_v43, %v4543_v57  ;;  %v4588_v21 = vmul.f32 %v8537_v63, %v4544_v51 }
 0x935   : > { %v6029_v19 = vpop.eup %6028  ;;  %6034 = vrsqrt.f32 %v4504_v34 }
 0x936   : > { %v4631_v29 = vadd.f32 %v8540_v8, %v4587_v3  ;;  %v4632_v12 = vadd.f32 %v8543_v48, %v4588_v21  ;;  %v4545_v33 = vmul.f32 %v6029_v19, %v8488_v35  ;;  %v4546_v22 = vmul.f32 %v6029_v19, %v8491_v50 }
 0x938   : > { %4663 = vst [vmem:[%s8554_s22 + $0xb0] sm:$0xff] %v4631_v29  ;;  %4664 = vst [vmem:[%s8554_s22 + $0xb8] sm:$0xff] %v4632_v12  ;;  %v4589_v20 = vmul.f32 %v8534_v43, %v4545_v33  ;;  %v4590_v11 = vmul.f32 %v8537_v63, %v4546_v22 }
 0x93a   : > { %v6031_v18 = vpop.eup %6030  ;;  %v4633_v17 = vadd.f32 %v8540_v8, %v4589_v20  ;;  %v4634_v36 = vadd.f32 %v8543_v48, %v4590_v11 }
 0x93b   : > { %v4547_v49 = vmul.f32 %v6031_v18, %v8498_v61  ;;  %v4548_v55 = vmul.f32 %v6031_v18, %v8501_v24 }
 0x93c   : > { %4665 = vst [vmem:[%s8554_s22 + $0xc0] sm:$0xff] %v4633_v17  ;;  %4666 = vst [vmem:[%s8554_s22 + $0xc8] sm:$0xff] %v4634_v36 }
 0x93d   : > { %v4591_v35 = vmul.f32 %v8534_v43, %v4547_v49  ;;  %v4592_v50 = vmul.f32 %v8537_v63, %v4548_v55 }
 0x93e   : > { %v6033_v45 = vpop.eup %6032 }
 0x93f   : > { %v4635_v10 = vadd.f32 %v8540_v8, %v4591_v35  ;;  %v4636_v58 = vadd.f32 %v8543_v48, %v4592_v50  ;;  %v4549_v39 = vmul.f32 %v6033_v45, %v8508_v62  ;;  %v4550_v61 = vmul.f32 %v6033_v45, %v8511_v9 }
 0x941   : > { %4667 = vst [vmem:[%s8554_s22 + $0xd0] sm:$0xff] %v4635_v10  ;;  %4668 = vst [vmem:[%s8554_s22 + $0xd8] sm:$0xff] %v4636_v58  ;;  %v4593_v24 = vmul.f32 %v8534_v43, %v4549_v39  ;;  %v4594_v4 = vmul.f32 %v8537_v63, %v4550_v61 }
 0x942   : > { %v6035_v6 = vpop.eup %6034 }
 0x943   : > { %v4637_v53 = vadd.f32 %v8540_v8, %v4593_v24  ;;  %v4638_v1 = vadd.f32 %v8543_v48, %v4594_v4  ;;  %v4551_v25 = vmul.f32 %v6035_v6, %v8518_v30  ;;  %v4552_v62 = vmul.f32 %v6035_v6, %v8521_v47 }
 0x945   : > { %4669 = vst [vmem:[%s8554_s22 + $0xe0] sm:$0xff] %v4637_v53  ;;  %4670 = vst [vmem:[%s8554_s22 + $0xe8] sm:$0xff] %v4638_v1  ;;  %v4595_v9 = vmul.f32 %v8534_v43, %v4551_v25  ;;  %v4596_v7 = vmul.f32 %v8537_v63, %v4552_v62 }
 0x947   : > { %v4639_v30 = vadd.f32 %v8540_v8, %v4595_v9  ;;  %v4640_v47 = vadd.f32 %v8543_v48, %v4596_v7 }
 0x949   : > { %4671 = vst [vmem:[%s8554_s22 + $0xf0] sm:$0xff] %v4639_v30  ;;  %4672 = vst [vmem:[%s8554_s22 + $0xf8] sm:$0xff] %v4640_v47 }
 0x94a   : > { %6267 = shalt.err (!%p6264_p7)
}
 0x94b   : > { %s6268_s25 = scalar_lea.hbm %s8677_s4, 4096  ;;  %s6272_s3 = scalar_lea.hbm %s8946_s26, 8192 }
 0x94c   : > { %p6269_p13 = scmp.ne.s32.totalorder %s8677_s4, %s6268_s25  ;;  %p6273_p5 = scmp.lt.s32.totalorder %s8677_s4, %s8946_s26 }
 0x94d   : > { %p6274_p6 = scmp.lt.s32.totalorder %s6272_s3, %s6268_s25 }
 0x94e   : > { %p6270_p0 = pnand %p6269_p13, %p6571_p2 }
 0x94f   : > { %p6275_p8 = por %p6274_p6, %p6273_p5 }
 0x950   : > { %p6271_p4 = pneg %p6270_p0 }
 0x952   : > { %p6276_p9 = pnand %p6275_p8, %p6271_p4 }
 0x954   : > { %6279 = shalt.err (!%p6276_p9)
}
 0x955   : > { %s6364_s11 = smov 256   ;;  %s6365_s22 = smov 16  }
 0x956   : > { %5360 = dma.vmem_to_hbm [thread:$0]  (%p6571_p2), %s8679_s12, 4096, %s8677_s4, %s4674_s21, %s6364_s11, %s6364_s11, %s6365_s22  }
 0x957 PF: > { %s4705_s20 = sand.u32 1, %s6330_s18   ;;  %p8947_p10 = scmp.ge.s32.totalorder %s6350_s23, 2 }
 0x958   : > { %s4706_s16 = scalar_lea.sflag [#allocation4], %s4705_s20 }
 0x959   : > { %p5386_p11 = pnand %p8947_p10, %p6579_p1 }
 0x95b   : > { %p5387_p12 = pneg %p5386_p11 }
 0x95d   : > { %6325 = dma.done.wait (%p5387_p12), %s4706_s16, 4096  }
 0x95e   : > { %6327 = vsyncadd (%p5387_p12), %s4706_s16, 4294963200  ;;  %s36_s23 = sadd.s32 1, %s6350_s23   ;;  %s8948_s30 = sld [smem:[#allocation21_spill]] }
 0x95f   : > { %p33_p3 = scmp.ge.s32.totalorder %s36_s23, 4   ;;  %s8949_s20 = sld [smem:[#allocation24_spill]] }
 0x960   : > { %s8950_s21 = sld [smem:[#allocation22_spill]]  ;;  %s8952_s18 = smov %s6334_s19 }
 0x961   : > { %s8951_s22 = sld [smem:[#allocation23_spill]]  ;;  %35 = sbr.rel (!%p33_p3) target bundleno = 21 (0x15), region = 161 }
 0x964   : > { %s8953_s19 = smov %s8948_s30 }
 0x966   :  { %4711 = vsyncpa [#allocation3], 1 }
 0x967   :  { %4713 = vsyncpa [#allocation3 + $0x1], 1 }
 0x968   :  { %4714 = vsyncpa [#allocation6], 1 }
 0x969   :  { %4716 = vsyncpa [#allocation6 + $0x1], 1 }
 0x96a   :  { %4717 = vsyncpa [#allocation9], 1 }
 0x96b   :  { %4718 = vsyncpa [#allocation12], 1 }
 0x96c   :  { %4719 = vsyncpa [#allocation4], 1 }
 0x96d   :  { %4721 = vsyncpa [#allocation4 + $0x1], 1 }

</bundles_post_ra>
